<compile_context>
chip_gen: v5e
topology: v5e:2x2
jax: 0.10.0
libtpu: 0.0.40
codegen_flags: <defaults>
</compile_context>

<pallas_src>
import numpy as np
import jax
import jax.numpy as jnp
from jax import lax
from jax.experimental import pallas as pl
from jax.experimental.pallas import tpu as pltpu


# ----------------------------------------------------------------------------
# Pallas kernel
# ----------------------------------------------------------------------------
def _make_kernel(extra, nb, H, W, Cin, Cmid, Cout, compute_dtype):
    M = nb * H * W

    def kernel(x_ref, w1_ref, b1_ref, w2_ref, b2_ref, w3_ref, b3_ref,
               o_ref, pad_ref):
        x2d = x_ref[...].reshape(M, Cin)                         # f32 (M, Cin)

        # --- conv1 (1x1) [+ fused extra 1x1 shortcut]; BN scale pre-folded ---
        y = jnp.dot(x2d.astype(compute_dtype), w1_ref[...],
                    preferred_element_type=jnp.float32)
        y = y + b1_ref[...]                                      # f32
        h1 = jnp.maximum(y[:, :Cmid], 0.0)                       # (M, Cmid)
        if extra:
            idn = y[:, Cmid:]                                    # (M, Cout)
        else:
            idn = x2d                                            # needs Cin == Cout

        # --- dilated 3x3 (dilation=2, padding=2) as one im2col matmul --------
        # Re-zero only the 2-wide border; the interior is fully rewritten.
        pad_ref[:, 0:2, :, :] = jnp.zeros((nb, 2, W + 4, Cmid), jnp.float32)
        pad_ref[:, 2 + H:, :, :] = jnp.zeros((nb, 2, W + 4, Cmid), jnp.float32)
        pad_ref[:, 2:2 + H, 0:2, :] = jnp.zeros((nb, H, 2, Cmid), jnp.float32)
        pad_ref[:, 2:2 + H, 2 + W:, :] = jnp.zeros((nb, H, 2, Cmid), jnp.float32)
        pad_ref[:, 2:2 + H, 2:2 + W, :] = h1.reshape(nb, H, W, Cmid)

        taps = []
        for ky in range(3):
            for kx in range(3):
                win = pad_ref[:, ky * 2:ky * 2 + H, kx * 2:kx * 2 + W, :]
                taps.append(win.reshape(M, Cmid))
        slab = jnp.concatenate(taps, axis=1).astype(compute_dtype)   # (M, 9*Cmid)
        h2 = jnp.dot(slab, w2_ref[...], preferred_element_type=jnp.float32)
        h2 = jnp.maximum(h2 + b2_ref[...], 0.0)                  # (M, Cmid)

        # --- conv3 (1x1, BN folded) + residual + ReLU -------------------------
        h3 = jnp.dot(h2.astype(compute_dtype), w3_ref[...],
                     preferred_element_type=jnp.float32) + b3_ref[...]
        out = jnp.maximum(h3 + idn, 0.0)
        o_ref[...] = out.reshape(nb, H, W, Cout).astype(o_ref.dtype)

    return kernel


# ----------------------------------------------------------------------------
# Wrapper
# ----------------------------------------------------------------------------
def _fold_bn(gamma, beta, mean, var, eps=1e-5):
    scale = (gamma / jnp.sqrt(var + eps)).astype(jnp.float32)
    bias = (beta - mean * scale).astype(jnp.float32)
    return scale, bias


def _pick_nb(N):
    # Largest divisor of N that still leaves >= 2 grid steps (so the batch axis
    # can shard across TensorCores on megacore parts).
    for d in range(N, 0, -1):
        if N % d == 0 and N // d >= 2:
            return d
    return 1


def dilated_bottleneck_pallas(x_nchw, params, extra=True, nb=None, use_bf16=True):
    x = jnp.transpose(x_nchw, (0, 2, 3, 1)).astype(jnp.float32)   # NHWC
    N, H, W, Cin = x.shape
    cdt = jnp.bfloat16 if use_bf16 else jnp.float32

    s1, b1 = _fold_bn(*params["bn1"])
    s2, b2 = _fold_bn(*params["bn2"])
    s3, b3 = _fold_bn(*params["bn3"])

    # Fold BN scale into the conv weights (per output-channel column).
    w1 = jnp.transpose(params["w1"][:, :, 0, 0], (1, 0)) * s1[None, :]    # (Cin, Cmid)
    Cmid = w1.shape[1]
    # (Cout, Cin, 3, 3) -> (ky, kx, Cin, Cout) -> (9*Cin, Cout) for im2col.
    w2 = (jnp.transpose(params["w2"], (2, 3, 1, 0)).reshape(9 * Cmid, Cmid)
          * s2[None, :])                                                   # (9*Cmid, Cmid)
    w3 = jnp.transpose(params["w3"][:, :, 0, 0], (1, 0)) * s3[None, :]    # (Cmid, Cout)
    Cout = w3.shape[1]

    if extra:
        se, be = _fold_bn(*params["bne"])
        we = jnp.transpose(params["we"][:, :, 0, 0], (1, 0)) * se[None, :]  # (Cin, Cout)
        w1e = jnp.concatenate([w1, we], axis=1)                   # (Cin, Cmid+Cout)
        b1e = jnp.concatenate([b1, be], axis=0).reshape(1, Cmid + Cout)
    else:
        assert Cin == Cout, "extra=False requires in_dim == out_dim"
        w1e = w1
        b1e = b1.reshape(1, Cmid)

    inputs = [
        x,
        w1e.astype(cdt), b1e.astype(jnp.float32),
        w2.astype(cdt), b2.reshape(1, Cmid).astype(jnp.float32),
        w3.astype(cdt), b3.reshape(1, Cout).astype(jnp.float32),
    ]

    if nb is None:
        nb = _pick_nb(N)
    assert N % nb == 0, "nb must divide the batch size"

    def full_spec(a):
        nd = a.ndim
        return pl.BlockSpec(a.shape, lambda n, _nd=nd: (0,) * _nd)

    in_specs = ([pl.BlockSpec((nb, H, W, Cin), lambda n: (n, 0, 0, 0))]
                + [full_spec(a) for a in inputs[1:]])

    out_nhwc = pl.pallas_call(
        _make_kernel(extra, nb, H, W, Cin, Cmid, Cout, cdt),
        out_shape=jax.ShapeDtypeStruct((N, H, W, Cout), jnp.float32),
        grid=(N // nb,),
        in_specs=in_specs,
        out_specs=pl.BlockSpec((nb, H, W, Cout), lambda n: (n, 0, 0, 0)),
        scratch_shapes=[pltpu.VMEM((nb, H + 4, W + 4, Cmid), jnp.float32)],
        compiler_params=pltpu.CompilerParams(
            dimension_semantics=("parallel",),
            vmem_limit_bytes=32 * 1024 * 1024),
    )(*inputs)

    return jnp.transpose(out_nhwc, (0, 3, 1, 2))                  # back to NCHW


# ----------------------------------------------------------------------------
# Pure-JAX reference (lax convs, NCHW) for correctness checking.
# ----------------------------------------------------------------------------
def dilated_bottleneck_ref(x, params, extra=True, eps=1e-5):
    def bn(y, g, b, m, v):
        sc = (g / jnp.sqrt(v + eps))[None, :, None, None]
        return (y - m[None, :, None, None]) * sc + b[None, :, None, None]

    dn = ('NCHW', 'OIHW', 'NCHW')
    h = lax.conv_general_dilated(x, params["w1"], (1, 1), [(0, 0), (0, 0)],
                                 dimension_numbers=dn)
    h = jax.nn.relu(bn(h, *params["bn1"]))
    h = lax.conv_general_dilated(h, params["w2"], (1, 1), [(2, 2), (2, 2)],
                                 rhs_dilation=(2, 2), dimension_numbers=dn)
    h = jax.nn.relu(bn(h, *params["bn2"]))
    h = lax.conv_general_dilated(h, params["w3"], (1, 1), [(0, 0), (0, 0)],
                                 dimension_numbers=dn)
    h = bn(h, *params["bn3"])
    idn = x
    if extra:
        idn = lax.conv_general_dilated(x, params["we"], (1, 1), [(0, 0), (0, 0)],
                                       dimension_numbers=dn)
        idn = bn(idn, *params["bne"])
    return jax.nn.relu(h + idn)


if __name__ == "__main__":
    key = jax.random.PRNGKey(0)
    in_dim, out_dim = 4, 32
    N, H, W = 2, 16, 16
    extra = True

    ks = jax.random.split(key, 10)

    def bn_params(k, c):
        k1, k2, k3, k4 = jax.random.split(k, 4)
        gamma = jax.random.uniform(k1, (c,), jnp.float32, 0.5, 1.5)
        beta = jax.random.normal(k2, (c,), jnp.float32) * 0.1
        mean = jax.random.normal(k3, (c,), jnp.float32) * 0.1
        var = jax.random.uniform(k4, (c,), jnp.float32, 0.5, 1.5)
        return gamma, beta, mean, var

    params = {
        "w1": jax.random.normal(ks[0], (out_dim, in_dim, 1, 1), jnp.float32) * 0.1,
        "w2": jax.random.normal(ks[1], (out_dim, out_dim, 3, 3), jnp.float32) * 0.05,
        "w3": jax.random.normal(ks[2], (out_dim, out_dim, 1, 1), jnp.float32) * 0.1,
        "we": jax.random.normal(ks[3], (out_dim, in_dim, 1, 1), jnp.float32) * 0.1,
        "bn1": bn_params(ks[4], out_dim),
        "bn2": bn_params(ks[5], out_dim),
        "bn3": bn_params(ks[6], out_dim),
        "bne": bn_params(ks[7], out_dim),
    }

    x = jax.random.normal(ks[8], (N, in_dim, H, W), jnp.float32)

    out = dilated_bottleneck_pallas(x, params, extra=extra)
    out = jax.block_until_ready(out)

    ref = dilated_bottleneck_ref(x, params, extra=extra)
    # bf16 MXU inputs (f32 accumulation) -> looser tolerance than pure-f32.
    np.testing.assert_allclose(np.asarray(out), np.asarray(ref),
                               atol=2e-2, rtol=2e-2)

    print("KERNEL_OK")
</pallas_src>

<mosaic_0001>
module attributes {stable_mosaic.version = 11 : i64} {
  func.func @kernel(%arg0: i32, %arg1: memref<1x16x16x4xf32, #tpu.memory_space<vmem>>, %arg2: memref<4x64xbf16, #tpu.memory_space<vmem>>, %arg3: memref<1x64xf32, #tpu.memory_space<vmem>>, %arg4: memref<288x32xbf16, #tpu.memory_space<vmem>>, %arg5: memref<1x32xf32, #tpu.memory_space<vmem>>, %arg6: memref<32x32xbf16, #tpu.memory_space<vmem>>, %arg7: memref<1x32xf32, #tpu.memory_space<vmem>>, %arg8: memref<1x16x16x32xf32, #tpu.memory_space<vmem>>, %arg9: memref<1x20x20x32xf32, #tpu.memory_space<vmem>>) attributes {dimension_semantics = [#tpu.dimension_semantics<parallel>], iteration_bounds = array<i64: 2>, scalar_prefetch = 0 : i64, scratch_operands = 1 : i64, tpu.core_type = #tpu.core_type<tc>, window_params = [{transform_indices = @transform_0, window_bounds = array<i64: 1, 16, 16, 4>}, {pipeline_mode = #tpu.pipeline_mode<synchronous>, transform_indices = @transform_1, window_bounds = array<i64: 4, 64>}, {pipeline_mode = #tpu.pipeline_mode<synchronous>, transform_indices = @transform_2, window_bounds = array<i64: 1, 64>}, {pipeline_mode = #tpu.pipeline_mode<synchronous>, transform_indices = @transform_3, window_bounds = array<i64: 288, 32>}, {pipeline_mode = #tpu.pipeline_mode<synchronous>, transform_indices = @transform_4, window_bounds = array<i64: 1, 32>}, {pipeline_mode = #tpu.pipeline_mode<synchronous>, transform_indices = @transform_5, window_bounds = array<i64: 32, 32>}, {pipeline_mode = #tpu.pipeline_mode<synchronous>, transform_indices = @transform_6, window_bounds = array<i64: 1, 32>}, {transform_indices = @transform_7, window_bounds = array<i64: 1, 16, 16, 32>}]} {
    %c0 = arith.constant 0 : index
    %c0_0 = arith.constant 0 : index
    %c0_1 = arith.constant 0 : index
    %c0_2 = arith.constant 0 : index
    %0 = vector.load %arg1[%c0, %c0_0, %c0_1, %c0_2] : memref<1x16x16x4xf32, #tpu.memory_space<vmem>>, vector<1x16x16x4xf32>
    %1 = vector.shape_cast %0 : vector<1x16x16x4xf32> to vector<256x4xf32>
    %2 = arith.truncf %1 : vector<256x4xf32> to vector<256x4xbf16>
    %c0_3 = arith.constant 0 : index
    %c0_4 = arith.constant 0 : index
    %3 = vector.load %arg2[%c0_3, %c0_4] : memref<4x64xbf16, #tpu.memory_space<vmem>>, vector<4x64xbf16>
    %cst = arith.constant dense<0.000000e+00> : vector<256x64xf32>
    %4 = tpu.matmul %2, %3, %cst {dimension_numbers = #tpu.dot_dimension_numbers<[1], [0], [0], [1], [0, 0, 1, 1], [], []>} : vector<256x4xbf16>, vector<4x64xbf16>, vector<256x64xf32> -> vector<256x64xf32>
    %c0_5 = arith.constant 0 : index
    %c0_6 = arith.constant 0 : index
    %5 = vector.load %arg3[%c0_5, %c0_6] : memref<1x64xf32, #tpu.memory_space<vmem>>, vector<1x64xf32>
    %6 = vector.broadcast %5 : vector<1x64xf32> to vector<256x64xf32>
    %7 = arith.addf %4, %6 : vector<256x64xf32>
    %8 = vector.extract_strided_slice %7 {offsets = [0, 0], sizes = [256, 32], strides = [1, 1]} : vector<256x64xf32> to vector<256x32xf32>
    %cst_7 = arith.constant 0.000000e+00 : f32
    %9 = vector.broadcast %cst_7 : f32 to vector<256x32xf32>
    %10 = arith.maximumf %8, %9 : vector<256x32xf32>
    %11 = vector.extract_strided_slice %7 {offsets = [0, 32], sizes = [256, 32], strides = [1, 1]} : vector<256x64xf32> to vector<256x32xf32>
    %cst_8 = arith.constant 0.000000e+00 : f32
    %12 = vector.broadcast %cst_8 : f32 to vector<1x2x20x32xf32>
    %c0_9 = arith.constant 0 : index
    %c0_10 = arith.constant 0 : index
    %c0_11 = arith.constant 0 : index
    %c0_12 = arith.constant 0 : index
    %13 = vector.load %arg9[%c0_9, %c0_10, %c0_11, %c0_12] : memref<1x20x20x32xf32, #tpu.memory_space<vmem>>, vector<1x2x20x32xf32>
    tpu.vector_store %arg9[%c0_9, %c0_10, %c0_11, %c0_12], %12 {strides = array<i32>} : memref<1x20x20x32xf32, #tpu.memory_space<vmem>>, vector<1x2x20x32xf32>,
    %cst_13 = arith.constant 0.000000e+00 : f32
    %14 = vector.broadcast %cst_13 : f32 to vector<1x2x20x32xf32>
    %c0_14 = arith.constant 0 : index
    %c18 = arith.constant 18 : index
    %c0_15 = arith.constant 0 : index
    %c0_16 = arith.constant 0 : index
    %15 = vector.load %arg9[%c0_14, %c18, %c0_15, %c0_16] : memref<1x20x20x32xf32, #tpu.memory_space<vmem>>, vector<1x2x20x32xf32>
    tpu.vector_store %arg9[%c0_14, %c18, %c0_15, %c0_16], %14 {strides = array<i32>} : memref<1x20x20x32xf32, #tpu.memory_space<vmem>>, vector<1x2x20x32xf32>,
    %cst_17 = arith.constant 0.000000e+00 : f32
    %16 = vector.broadcast %cst_17 : f32 to vector<1x16x2x32xf32>
    %c0_18 = arith.constant 0 : index
    %c2 = arith.constant 2 : index
    %c0_19 = arith.constant 0 : index
    %c0_20 = arith.constant 0 : index
    %17 = vector.load %arg9[%c0_18, %c2, %c0_19, %c0_20] : memref<1x20x20x32xf32, #tpu.memory_space<vmem>>, vector<1x16x2x32xf32>
    tpu.vector_store %arg9[%c0_18, %c2, %c0_19, %c0_20], %16 {strides = array<i32>} : memref<1x20x20x32xf32, #tpu.memory_space<vmem>>, vector<1x16x2x32xf32>,
    %cst_21 = arith.constant 0.000000e+00 : f32
    %18 = vector.broadcast %cst_21 : f32 to vector<1x16x2x32xf32>
    %c0_22 = arith.constant 0 : index
    %c2_23 = arith.constant 2 : index
    %c18_24 = arith.constant 18 : index
    %c0_25 = arith.constant 0 : index
    %19 = vector.load %arg9[%c0_22, %c2_23, %c18_24, %c0_25] : memref<1x20x20x32xf32, #tpu.memory_space<vmem>>, vector<1x16x2x32xf32>
    tpu.vector_store %arg9[%c0_22, %c2_23, %c18_24, %c0_25], %18 {strides = array<i32>} : memref<1x20x20x32xf32, #tpu.memory_space<vmem>>, vector<1x16x2x32xf32>,
    %20 = vector.shape_cast %10 : vector<256x32xf32> to vector<1x16x16x32xf32>
    %c0_26 = arith.constant 0 : index
    %c2_27 = arith.constant 2 : index
    %c2_28 = arith.constant 2 : index
    %c0_29 = arith.constant 0 : index
    %21 = vector.load %arg9[%c0_26, %c2_27, %c2_28, %c0_29] : memref<1x20x20x32xf32, #tpu.memory_space<vmem>>, vector<1x16x16x32xf32>
    tpu.vector_store %arg9[%c0_26, %c2_27, %c2_28, %c0_29], %20 {strides = array<i32>} : memref<1x20x20x32xf32, #tpu.memory_space<vmem>>, vector<1x16x16x32xf32>,
    %c0_30 = arith.constant 0 : index
    %c0_31 = arith.constant 0 : index
    %c0_32 = arith.constant 0 : index
    %c0_33 = arith.constant 0 : index
    %22 = vector.load %arg9[%c0_30, %c0_31, %c0_32, %c0_33] : memref<1x20x20x32xf32, #tpu.memory_space<vmem>>, vector<1x16x16x32xf32>
    %23 = vector.shape_cast %22 : vector<1x16x16x32xf32> to vector<256x32xf32>
    %c0_34 = arith.constant 0 : index
    %c0_35 = arith.constant 0 : index
    %c2_36 = arith.constant 2 : index
    %c0_37 = arith.constant 0 : index
    %24 = vector.load %arg9[%c0_34, %c0_35, %c2_36, %c0_37] : memref<1x20x20x32xf32, #tpu.memory_space<vmem>>, vector<1x16x16x32xf32>
    %25 = vector.shape_cast %24 : vector<1x16x16x32xf32> to vector<256x32xf32>
    %c0_38 = arith.constant 0 : index
    %c0_39 = arith.constant 0 : index
    %c4 = arith.constant 4 : index
    %c0_40 = arith.constant 0 : index
    %26 = vector.load %arg9[%c0_38, %c0_39, %c4, %c0_40] : memref<1x20x20x32xf32, #tpu.memory_space<vmem>>, vector<1x16x16x32xf32>
    %27 = vector.shape_cast %26 : vector<1x16x16x32xf32> to vector<256x32xf32>
    %c0_41 = arith.constant 0 : index
    %c2_42 = arith.constant 2 : index
    %c0_43 = arith.constant 0 : index
    %c0_44 = arith.constant 0 : index
    %28 = vector.load %arg9[%c0_41, %c2_42, %c0_43, %c0_44] : memref<1x20x20x32xf32, #tpu.memory_space<vmem>>, vector<1x16x16x32xf32>
    %29 = vector.shape_cast %28 : vector<1x16x16x32xf32> to vector<256x32xf32>
    %c0_45 = arith.constant 0 : index
    %c2_46 = arith.constant 2 : index
    %c2_47 = arith.constant 2 : index
    %c0_48 = arith.constant 0 : index
    %30 = vector.load %arg9[%c0_45, %c2_46, %c2_47, %c0_48] : memref<1x20x20x32xf32, #tpu.memory_space<vmem>>, vector<1x16x16x32xf32>
    %31 = vector.shape_cast %30 : vector<1x16x16x32xf32> to vector<256x32xf32>
    %c0_49 = arith.constant 0 : index
    %c2_50 = arith.constant 2 : index
    %c4_51 = arith.constant 4 : index
    %c0_52 = arith.constant 0 : index
    %32 = vector.load %arg9[%c0_49, %c2_50, %c4_51, %c0_52] : memref<1x20x20x32xf32, #tpu.memory_space<vmem>>, vector<1x16x16x32xf32>
    %33 = vector.shape_cast %32 : vector<1x16x16x32xf32> to vector<256x32xf32>
    %c0_53 = arith.constant 0 : index
    %c4_54 = arith.constant 4 : index
    %c0_55 = arith.constant 0 : index
    %c0_56 = arith.constant 0 : index
    %34 = vector.load %arg9[%c0_53, %c4_54, %c0_55, %c0_56] : memref<1x20x20x32xf32, #tpu.memory_space<vmem>>, vector<1x16x16x32xf32>
    %35 = vector.shape_cast %34 : vector<1x16x16x32xf32> to vector<256x32xf32>
    %c0_57 = arith.constant 0 : index
    %c4_58 = arith.constant 4 : index
    %c2_59 = arith.constant 2 : index
    %c0_60 = arith.constant 0 : index
    %36 = vector.load %arg9[%c0_57, %c4_58, %c2_59, %c0_60] : memref<1x20x20x32xf32, #tpu.memory_space<vmem>>, vector<1x16x16x32xf32>
    %37 = vector.shape_cast %36 : vector<1x16x16x32xf32> to vector<256x32xf32>
    %c0_61 = arith.constant 0 : index
    %c4_62 = arith.constant 4 : index
    %c4_63 = arith.constant 4 : index
    %c0_64 = arith.constant 0 : index
    %38 = vector.load %arg9[%c0_61, %c4_62, %c4_63, %c0_64] : memref<1x20x20x32xf32, #tpu.memory_space<vmem>>, vector<1x16x16x32xf32>
    %39 = vector.shape_cast %38 : vector<1x16x16x32xf32> to vector<256x32xf32>
    %40 = tpu.concatenate %23, %25, %27, %29, %31, %33, %35, %37, %39 in 1 : vector<256x32xf32>, vector<256x32xf32>, vector<256x32xf32>, vector<256x32xf32>, vector<256x32xf32>, vector<256x32xf32>, vector<256x32xf32>, vector<256x32xf32>, vector<256x32xf32> -> vector<256x288xf32>
    %41 = arith.truncf %40 : vector<256x288xf32> to vector<256x288xbf16>
    %c0_65 = arith.constant 0 : index
    %c0_66 = arith.constant 0 : index
    %42 = vector.load %arg4[%c0_65, %c0_66] : memref<288x32xbf16, #tpu.memory_space<vmem>>, vector<288x32xbf16>
    %cst_67 = arith.constant dense<0.000000e+00> : vector<256x32xf32>
    %43 = tpu.matmul %41, %42, %cst_67 {dimension_numbers = #tpu.dot_dimension_numbers<[1], [0], [0], [1], [0, 0, 1, 1], [], []>} : vector<256x288xbf16>, vector<288x32xbf16>, vector<256x32xf32> -> vector<256x32xf32>
    %c0_68 = arith.constant 0 : index
    %c0_69 = arith.constant 0 : index
    %44 = vector.load %arg5[%c0_68, %c0_69] : memref<1x32xf32, #tpu.memory_space<vmem>>, vector<1x32xf32>
    %45 = vector.broadcast %44 : vector<1x32xf32> to vector<256x32xf32>
    %46 = arith.addf %43, %45 : vector<256x32xf32>
    %cst_70 = arith.constant 0.000000e+00 : f32
    %47 = vector.broadcast %cst_70 : f32 to vector<256x32xf32>
    %48 = arith.maximumf %46, %47 : vector<256x32xf32>
    %49 = arith.truncf %48 : vector<256x32xf32> to vector<256x32xbf16>
    %c0_71 = arith.constant 0 : index
    %c0_72 = arith.constant 0 : index
    %50 = vector.load %arg6[%c0_71, %c0_72] : memref<32x32xbf16, #tpu.memory_space<vmem>>, vector<32x32xbf16>
    %cst_73 = arith.constant dense<0.000000e+00> : vector<256x32xf32>
    %51 = tpu.matmul %49, %50, %cst_73 {dimension_numbers = #tpu.dot_dimension_numbers<[1], [0], [0], [1], [0, 0, 1, 1], [], []>} : vector<256x32xbf16>, vector<32x32xbf16>, vector<256x32xf32> -> vector<256x32xf32>
    %c0_74 = arith.constant 0 : index
    %c0_75 = arith.constant 0 : index
    %52 = vector.load %arg7[%c0_74, %c0_75] : memref<1x32xf32, #tpu.memory_space<vmem>>, vector<1x32xf32>
    %53 = vector.broadcast %52 : vector<1x32xf32> to vector<256x32xf32>
    %54 = arith.addf %51, %53 : vector<256x32xf32>
    %55 = arith.addf %54, %11 : vector<256x32xf32>
    %cst_76 = arith.constant 0.000000e+00 : f32
    %56 = vector.broadcast %cst_76 : f32 to vector<256x32xf32>
    %57 = arith.maximumf %55, %56 : vector<256x32xf32>
    %58 = vector.shape_cast %57 : vector<256x32xf32> to vector<1x16x16x32xf32>
    %c0_77 = arith.constant 0 : index
    %c0_78 = arith.constant 0 : index
    %c0_79 = arith.constant 0 : index
    %c0_80 = arith.constant 0 : index
    %59 = vector.load %arg8[%c0_77, %c0_78, %c0_79, %c0_80] : memref<1x16x16x32xf32, #tpu.memory_space<vmem>>, vector<1x16x16x32xf32>
    tpu.vector_store %arg8[%c0_77, %c0_78, %c0_79, %c0_80], %58 {strides = array<i32>} : memref<1x16x16x32xf32, #tpu.memory_space<vmem>>, vector<1x16x16x32xf32>,
    return
  }
  func.func @transform_0(%arg0: i32) -> (i32, i32, i32, i32) {
    %c0_i32 = arith.constant 0 : i32
    %c0_i32_0 = arith.constant 0 : i32
    %c0_i32_1 = arith.constant 0 : i32
    %c0_i32_2 = arith.constant 0 : i32
    return %arg0, %c0_i32, %c0_i32_0, %c0_i32_1 : i32, i32, i32, i32
  }
  func.func @transform_1(%arg0: i32) -> (i32, i32) {
    %c0_i32 = arith.constant 0 : i32
    %c0_i32_0 = arith.constant 0 : i32
    %c0_i32_1 = arith.constant 0 : i32
    return %c0_i32, %c0_i32_0 : i32, i32
  }
  func.func @transform_2(%arg0: i32) -> (i32, i32) {
    %c0_i32 = arith.constant 0 : i32
    %c0_i32_0 = arith.constant 0 : i32
    %c0_i32_1 = arith.constant 0 : i32
    return %c0_i32, %c0_i32_0 : i32, i32
  }
  func.func @transform_3(%arg0: i32) -> (i32, i32) {
    %c0_i32 = arith.constant 0 : i32
    %c0_i32_0 = arith.constant 0 : i32
    %c0_i32_1 = arith.constant 0 : i32
    return %c0_i32, %c0_i32_0 : i32, i32
  }
  func.func @transform_4(%arg0: i32) -> (i32, i32) {
    %c0_i32 = arith.constant 0 : i32
    %c0_i32_0 = arith.constant 0 : i32
    %c0_i32_1 = arith.constant 0 : i32
    return %c0_i32, %c0_i32_0 : i32, i32
  }
  func.func @transform_5(%arg0: i32) -> (i32, i32) {
    %c0_i32 = arith.constant 0 : i32
    %c0_i32_0 = arith.constant 0 : i32
    %c0_i32_1 = arith.constant 0 : i32
    return %c0_i32, %c0_i32_0 : i32, i32
  }
  func.func @transform_6(%arg0: i32) -> (i32, i32) {
    %c0_i32 = arith.constant 0 : i32
    %c0_i32_0 = arith.constant 0 : i32
    %c0_i32_1 = arith.constant 0 : i32
    return %c0_i32, %c0_i32_0 : i32, i32
  }
  func.func @transform_7(%arg0: i32) -> (i32, i32, i32, i32) {
    %c0_i32 = arith.constant 0 : i32
    %c0_i32_0 = arith.constant 0 : i32
    %c0_i32_1 = arith.constant 0 : i32
    %c0_i32_2 = arith.constant 0 : i32
    return %arg0, %c0_i32, %c0_i32_0, %c0_i32_1 : i32, i32, i32, i32
  }
}

</mosaic_0001>

<bundles_post_ra>
// kernel: tpu_custom_call.1
= control target key start
LH: loop header
LB: loop body
LE: loop exit
PB: predicated region body
PF: predicated region fallthrough
CT: control target
= control target key end

     0   :  { %12 = vsyncpa [#allocation4], 0  ;;  %s5316_s0 = inlined_call_operand.vmem [shape: f32[2,16,16,4], index: 0, kind: input, shape index: {}]   ;;  %s5317_s1 = inlined_call_operand.vmem [shape: bf16[4,64], index: 1, kind: input, shape index: {}]   ;;  %s5318_s2 = inlined_call_operand.vmem [shape: f32[1,64], index: 2, kind: input, shape index: {}]   ;;  %s5319_s3 = inlined_call_operand.vmem [shape: bf16[288,32], index: 3, kind: input, shape index: {}]   ;;  %s5320_s4 = inlined_call_operand.vmem [shape: f32[1,32], index: 4, kind: input, shape index: {}]   ;;  %s5321_s5 = inlined_call_operand.vmem [shape: bf16[32,32], index: 5, kind: input, shape index: {}]   ;;  %s5322_s6 = inlined_call_operand.vmem [shape: f32[1,32], index: 6, kind: input, shape index: {}]   ;;  %s5323_s7 = inlined_call_operand.hbm [shape: f32[2,16,16,32], index: 7, kind: output, shape index: {}]  }
   0x1   :  { %14 = vsyncpa [#allocation4 + $0x1], 0  ;;  %s3662_s24 = smov 0   ;;  %s3664_s25 = smov 0  }
   0x2   :  { %s3666_s26 = smov 0   ;;  %s3668_s27 = smov 0  }
   0x3 LB: > { %s3683_s28 = sadd.s32 4294967295, %s3614_s27   ;;  %s2855_s29 = sadd.s32 4294967294, %s3614_s27   ;;  %s3614_s27 = sphi %s3668_s27, %s5503_s27   ;;  %s3610_s26 = sphi %s3666_s26, %s5502_s26   ;;  %s3606_s25 = sphi %s3664_s25, %s5501_s25   ;;  %s3602_s24 = sphi %s3662_s24, %s5500_s24  }
   0x4   : > { %s3687_s30 = sadd.s32 1, %s3614_s27   ;;  %s179_s8 = sadd.s32 1, %s3610_s26 }
   0x5   : > { %s176_s9 = ssub.s32 %s3614_s27, %s3687_s30  ;;  %p189_p0 = scmp.ne.s32.totalorder %s3610_s26, %s3606_s25 }
   0x6   : > { %p177_p1 = scmp.eq.s32.totalorder %s176_s9, 0  ;;  %p190_p2 = scmp.eq.s32.totalorder %s3683_s28, 1 }
   0x7   : > { %p195_p3 = scmp.ne.s32.totalorder %s3606_s25, %s3602_s24  ;;  %p196_p4 = scmp.eq.s32.totalorder %s2855_s29, 1 }
   0x8   : > { %s3698_s10 = scalar_select %p177_p1, %s3610_s26, %s179_s8  }
   0x9   : > { %p3700_p5 = por %p190_p2, %p189_p0  ;;  %p3704_p6 = por %p196_p4, %p195_p3 }
   0xa   : > { %p2858_p7 = scmp.ge.s32.totalorder %s3614_s27, 1  ;;  %p240_p8 = scmp.lt.s32.totalorder %s3614_s27, 3 }
   0xc   : > { %p241_p9 = pnand %p2858_p7, %p240_p8 }
   0xe   : > { %244 = sbr.rel (%p241_p9) target bundleno = 1060 (0x424), region = 48 }
  0x13   : > { %v326_v0 = vld [vmem:[%s5317_s1] sm:$0x3]  ;;  %vm380_vm0 = vcmask 1041408   ;;  %p272_p10 = scmp.lt.s32.totalorder %s3683_s28, 1  ;;  %vm331_vm1 = vcmask 31744   ;;  %vm505_vm2 = vcmask 261120  }
  0x14   : > { %v382_v1 = vsel %vm380_vm0, %v326_v0, 0  ;;  %vm508_vm3 = vcmask 257024   ;;  %v3616_v44 = vmov 0.0   ;;  %vm521_vm4 = vcmask 254976   ;;  %s3617_s20 = smov 32   ;;  %s3618_s21 = smov 64  }
  0x15   : > { %391 = vmatpush.bf16.msra.mxu0 %v382_v1  ;;  %s273_s15 = scalar_select %p272_p10, %s3683_s28, 1  ;;  %3018 = vmatpush.bf16.msra.mxu2 %v382_v1  ;;  %506 = vst.msk [vmem:[#allocation2] sm:$0xff] %vm505_vm2, %v3616_v44  ;;  %v3836_v57 = vld [vmem:[%s5318_s2] ss:$0 sm:$0xff]  ;;  %vm1675_vm5 = vcmask 523264   ;;  %vm1708_vm6 = vcmask 785408  }
  0x16   : > { %3017 = vmatpush.bf16.msra.mxu1 %v382_v1  ;;  %3019 = vmatpush.bf16.msra.mxu3 %v382_v1  ;;  %507 = vst.msk [vmem:[#allocation2 + $0x8] sm:$0xff] %vm505_vm2, %v3616_v44  ;;  %s3619_s29 = smov 96   ;;  %s3016_s8 = sshll.u32 %s3683_s28, 8 }
  0x17   : > { %s2995_s16 = sshll.u32 %s273_s15, 8  ;;  %509 = vst.msk [vmem:[#allocation2 + $0x10] sm:$0xf] %vm508_vm3, %v3616_v44  ;;  %s3572_s18 = scalar_lea.hbm %s5323_s7, 512 }
  0x18   : > { %s3718_s19 = scalar_lea.vmem %s5316_s0, %s2995_s16  ;;  %510 = vst.msk [vmem:[#allocation2 + $0x18] sm:$0xff] %vm505_vm2, %v3616_v44 }
  0x19   : > { %v278_v2 = vld [vmem:[%s3718_s19] sm:$0xff]  ;;  %v279_v3 = vld [vmem:[%s3718_s19 + $0x8] sm:$0xff]  ;;  %v280_v5 = vld [vmem:[%s3718_s19 + $0x10] sm:$0xff]  ;;  %511 = vst.msk [vmem:[#allocation2 + $0x20] sm:$0xff] %vm505_vm2, %v3616_v44 }
  0x1a   : > { %v310_v4 = vpack.c.bf16 %v279_v3, %v278_v2  ;;  %v281_v6 = vld [vmem:[%s3718_s19 + $0x18] sm:$0xff]  ;;  %v292_v8 = vld [vmem:[%s3718_s19 + $0x70] sm:$0xff]  ;;  %v282_v11 = vld [vmem:[%s3718_s19 + $0x20] sm:$0xff]  ;;  %512 = vst.msk [vmem:[#allocation2 + $0x28] sm:$0xf] %vm508_vm3, %v3616_v44 }
  0x1b   : > { %v311_v7 = vpack.c.bf16 %v281_v6, %v280_v5  ;;  %v293_v9 = vld [vmem:[%s3718_s19 + $0x78] sm:$0xff]  ;;  %v283_v12 = vld [vmem:[%s3718_s19 + $0x28] sm:$0xff]  ;;  %v288_v14 = vld [vmem:[%s3718_s19 + $0x50] sm:$0xff]  ;;  %514 = vst.msk [vmem:[#allocation2 + $0x1b0] sm:$0xff] %vm505_vm2, %v3616_v44 }
  0x1c   : > { %2862 = vmatmul.msk.bf16.vlgmr.msra.gmra.mxu0 %vm331_vm1, %v310_v4  ;;  %v317_v10 = vpack.c.bf16 %v293_v9, %v292_v8  ;;  %v312_v13 = vpack.c.bf16 %v283_v12, %v282_v11  ;;  %v289_v15 = vld [vmem:[%s3718_s19 + $0x58] sm:$0xff]  ;;  %v294_v17 = vld [vmem:[%s3718_s19 + $0x80] sm:$0xff]  ;;  %v295_v18 = vld [vmem:[%s3718_s19 + $0x88] sm:$0xff]  ;;  %515 = vst.msk [vmem:[#allocation2 + $0x1b8] sm:$0xff] %vm505_vm2, %v3616_v44 }
  0x1d   : > { %v315_v16 = vpack.c.bf16 %v289_v15, %v288_v14  ;;  %v318_v19 = vpack.c.bf16 %v295_v18, %v294_v17  ;;  %v300_v20 = vld [vmem:[%s3718_s19 + $0xb0] sm:$0xff]  ;;  %v301_v21 = vld [vmem:[%s3718_s19 + $0xb8] sm:$0xff]  ;;  %v290_v25 = vld [vmem:[%s3718_s19 + $0x60] sm:$0xff]  ;;  %516 = vst.msk [vmem:[#allocation2 + $0x1c0] sm:$0xf] %vm508_vm3, %v3616_v44 }
  0x1e   : > { %2869 = vmatmul.msk.bf16.vlgmr.msra.gmra.mxu2 %vm331_vm1, %v317_v10  ;;  %v321_v22 = vpack.c.bf16 %v301_v21, %v300_v20  ;;  %v284_v23 = vld [vmem:[%s3718_s19 + $0x30] sm:$0xff]  ;;  %v285_v24 = vld [vmem:[%s3718_s19 + $0x38] sm:$0xff]  ;;  %v291_v26 = vld [vmem:[%s3718_s19 + $0x68] sm:$0xff]  ;;  %517 = vst.msk [vmem:[#allocation2 + $0x1c8] sm:$0xff] %vm505_vm2, %v3616_v44 }
  0x1f   : > { %2867 = vmatmul.msk.bf16.vlgmr.msra.gmra.mxu1 %vm331_vm1, %v315_v16  ;;  %v313_v27 = vpack.c.bf16 %v285_v24, %v284_v23  ;;  %v316_v28 = vpack.c.bf16 %v291_v26, %v290_v25  ;;  %v296_v29 = vld [vmem:[%s3718_s19 + $0x90] sm:$0xff]  ;;  %v297_v30 = vld [vmem:[%s3718_s19 + $0x98] sm:$0xff]  ;;  %v302_v31 = vld [vmem:[%s3718_s19 + $0xc0] sm:$0xff]  ;;  %518 = vst.msk [vmem:[#allocation2 + $0x1d0] sm:$0xff] %vm505_vm2, %v3616_v44 }
  0x20   : > { %2873 = vmatmul.msk.bf16.vlgmr.msra.gmra.mxu3 %vm331_vm1, %v321_v22  ;;  %v303_v32 = vld [vmem:[%s3718_s19 + $0xc8] sm:$0xff]  ;;  %v319_v33 = vpack.c.bf16 %v297_v30, %v296_v29  ;;  %v286_v35 = vld [vmem:[%s3718_s19 + $0x40] sm:$0xff]  ;;  %v304_v40 = vld [vmem:[%s3718_s19 + $0xd0] sm:$0xff]  ;;  %519 = vst.msk [vmem:[#allocation2 + $0x1d8] sm:$0xf] %vm508_vm3, %v3616_v44 }
  0x21   : > { %v322_v34 = vpack.c.bf16 %v303_v32, %v302_v31  ;;  %v287_v36 = vld [vmem:[%s3718_s19 + $0x48] sm:$0xff]  ;;  %v298_v38 = vld [vmem:[%s3718_s19 + $0xa0] sm:$0xff]  ;;  %v305_v41 = vld [vmem:[%s3718_s19 + $0xd8] sm:$0xff]  ;;  %522 = vst.msk [vmem:[#allocation2 + $0x30] sm:$0x3] %vm521_vm4, %v3616_v44 }
  0x22   : > { %v314_v37 = vpack.c.bf16 %v287_v36, %v286_v35  ;;  %v299_v39 = vld [vmem:[%s3718_s19 + $0xa8] sm:$0xff]  ;;  %v323_v43 = vpack.c.bf16 %v305_v41, %v304_v40  ;;  %v306_v48 = vld [vmem:[%s3718_s19 + $0xe0] sm:$0xff]  ;;  %523 = vst.msk [vmem:[#allocation2 + $0x48] sm:$0x3] %vm521_vm4, %v3616_v44  ;;  %v308_v54 = vld [vmem:[%s3718_s19 + $0xf0] sm:$0xff] }
  0x23   : > { %v320_v42 = vpack.c.bf16 %v299_v39, %v298_v38  ;;  %v618_v45 = vld [vmem:[#allocation2 + $0x2] sm:$0xff]  ;;  %v619_v46 = vld [vmem:[#allocation2 + $0xa] sm:$0xff]  ;;  %524 = vst.msk [vmem:[#allocation2 + $0x60] sm:$0x3] %vm521_vm4, %v3616_v44  ;;  %v309_v55 = vld [vmem:[%s3718_s19 + $0xf8] sm:$0xff] }
  0x24   : > { %v3069_v47 = vpack.i.bf16 %v619_v46, %v618_v45  ;;  %v307_v49 = vld [vmem:[%s3718_s19 + $0xe8] sm:$0xff]  ;;  %525 = vst.msk [vmem:[#allocation2 + $0x78] sm:$0x3] %vm521_vm4, %v3616_v44  ;;  %v325_v56 = vpack.c.bf16 %v309_v55, %v308_v54  ;;  %v652_v0 = vld [vmem:[#allocation2 + $0x1c] sm:$0xff]  ;;  %s269_s19 = sand.u32 1, %s3606_s25  }
  0x25   : > { %v324_v50 = vpack.c.bf16 %v307_v49, %v306_v48  ;;  %v650_v51 = vld [vmem:[#allocation2 + $0x4] sm:$0xff]  ;;  %v651_v52 = vld [vmem:[#allocation2 + $0xc] sm:$0xff]  ;;  %526 = vst.msk [vmem:[#allocation2 + $0x90] sm:$0x3] %vm521_vm4, %v3616_v44  ;;  %s2859_s22 = sshll.u32 %s269_s19, 8  ;;  %s2778_s28 = scalar_lea.sflag [#allocation4], %s269_s19 }
  0x26   : > { %3070 = vrot.lane.b32.xlu0 %v3069_v47, %s3617_s20  ;;  %v3074_v53 = vpack.i.bf16 %v651_v52, %v650_v51  ;;  %527 = vst.msk [vmem:[#allocation2 + $0xa8] sm:$0x3] %vm521_vm4, %v3616_v44  ;;  %v653_v1 = vld [vmem:[#allocation2 + $0x24] sm:$0xff]  ;;  %s5155_s23 = scalar_lea.vmem [#allocation3], %s2859_s22 }
  0x27   : > { %528 = vst.msk [vmem:[#allocation2 + $0xc0] sm:$0x3] %vm521_vm4, %v3616_v44  ;;  %v3089_v2 = vpack.i.bf16 %v653_v1, %v652_v0  ;;  %v621_v14 = vld [vmem:[#allocation2 + $0x22] sm:$0xff] }
  0x28   : > { %529 = vst.msk [vmem:[#allocation2 + $0xd8] sm:$0x3] %vm521_vm4, %v3616_v44  ;;  %v3920_v36 = vld [vmem:[%s5319_s3 + $0x88] sm:$0xff]  ;;  %v3935_v45 = vld [vmem:[%s5319_s3 + $0x80] sm:$0xff] }
  0x29   : > { %530 = vst.msk [vmem:[#allocation2 + $0xf0] sm:$0x3] %vm521_vm4, %v3616_v44  ;;  %3090 = vrot.lane.b32.xlu2 %v3089_v2, %s3618_s21  ;;  %3020 = vmatpush.bf16.msrb.mxu3 %v3920_v36 }
  0x2a   : > { %531 = vst.msk [vmem:[#allocation2 + $0x108] sm:$0x3] %vm521_vm4, %v3616_v44 }
  0x2b   : > { %532 = vst.msk [vmem:[#allocation2 + $0x120] sm:$0x3] %vm521_vm4, %v3616_v44 }
  0x2c   : > { %2863 = vmatmul.msk.bf16.gmra.mxu0 %vm331_vm1, %v311_v7  ;;  %533 = vst.msk [vmem:[#allocation2 + $0x138] sm:$0x3] %vm521_vm4, %v3616_v44 }
  0x2d   : > { %534 = vst.msk [vmem:[#allocation2 + $0x150] sm:$0x3] %vm521_vm4, %v3616_v44  ;;  %3021 = vmatpush.bf16.msrb.mxu3 %v3935_v45 }
  0x2e   : > { %2870 = vmatmul.msk.bf16.gmra.mxu2 %vm331_vm1, %v318_v19  ;;  %3075 = vrot.lane.b32.xlu0 %v3074_v53, %s3618_s21  ;;  %535 = vst.msk [vmem:[#allocation2 + $0x168] sm:$0x3] %vm521_vm4, %v3616_v44 }
  0x2f   : > { %2868 = vmatmul.msk.bf16.gmra.mxu1 %vm331_vm1, %v316_v28  ;;  %536 = vst.msk [vmem:[#allocation2 + $0x180] sm:$0x3] %vm521_vm4, %v3616_v44 }
  0x30   : > { %2874 = vmatmul.msk.bf16.gmra.mxu3 %vm331_vm1, %v322_v34  ;;  %537 = vst.msk [vmem:[#allocation2 + $0x198] sm:$0x3] %vm521_vm4, %v3616_v44 }
  0x31   : > { %538 = vst.msk [vmem:[#allocation2 + $0x42] sm:$0x3] %vm521_vm4, %v3616_v44 }
  0x32   : > { %539 = vst.msk [vmem:[#allocation2 + $0x5a] sm:$0x3] %vm521_vm4, %v3616_v44 }
  0x33   : > { %540 = vst.msk [vmem:[#allocation2 + $0x72] sm:$0x3] %vm521_vm4, %v3616_v44 }
  0x34   : > { %541 = vst.msk [vmem:[#allocation2 + $0x8a] sm:$0x3] %vm521_vm4, %v3616_v44 }
  0x35   : > { %542 = vst.msk [vmem:[#allocation2 + $0xa2] sm:$0x3] %vm521_vm4, %v3616_v44 }
  0x36   : > { %543 = vst.msk [vmem:[#allocation2 + $0xba] sm:$0x3] %vm521_vm4, %v3616_v44 }
  0x37   : > { %544 = vst.msk [vmem:[#allocation2 + $0xd2] sm:$0x3] %vm521_vm4, %v3616_v44 }
  0x38   : > { %545 = vst.msk [vmem:[#allocation2 + $0xea] sm:$0x3] %vm521_vm4, %v3616_v44 }
  0x39   : > { %546 = vst.msk [vmem:[#allocation2 + $0x102] sm:$0x3] %vm521_vm4, %v3616_v44 }
  0x3a   : > { %547 = vst.msk [vmem:[#allocation2 + $0x11a] sm:$0x3] %vm521_vm4, %v3616_v44 }
  0x3b   : > { %548 = vst.msk [vmem:[#allocation2 + $0x132] sm:$0x3] %vm521_vm4, %v3616_v44 }
  0x3c   : > { %2864 = vmatmul.msk.bf16.gmra.mxu0 %vm331_vm1, %v312_v13  ;;  %549 = vst.msk [vmem:[#allocation2 + $0x14a] sm:$0x3] %vm521_vm4, %v3616_v44  ;;  %v620_v13 = vld [vmem:[#allocation2 + $0x1a] sm:$0xff] }
  0x3d   : > { %550 = vst.msk [vmem:[#allocation2 + $0x162] sm:$0x3] %vm521_vm4, %v3616_v44  ;;  %v3084_v17 = vpack.i.bf16 %v621_v14, %v620_v13 }
  0x3e   : > { %2871 = vmatmul.msk.bf16.gmra.mxu2 %vm331_vm1, %v319_v33  ;;  %551 = vst.msk [vmem:[#allocation2 + $0x17a] sm:$0x3] %vm521_vm4, %v3616_v44 }
  0x3f   : > { %552 = vst.msk [vmem:[#allocation2 + $0x192] sm:$0x3] %vm521_vm4, %v3616_v44 }
  0x40   : > { %2875 = vmatmul.msk.bf16.gmra.mxu3 %vm331_vm1, %v323_v43  ;;  %553 = vst.msk [vmem:[#allocation2 + $0x1aa] sm:$0x3] %vm521_vm4, %v3616_v44 }
  0x4c   : > { %2865 = vmatmul.msk.bf16.gmra.mxu0 %vm331_vm1, %v313_v27 }
  0x4e   : > { %2872 = vmatmul.msk.bf16.gmra.mxu2 %vm331_vm1, %v320_v42 }
  0x50   : > { %2876 = vmatmul.msk.bf16.gmra.mxu3 %vm331_vm1, %v324_v50 }
  0x5c   : > { %2866 = vmatmul.msk.bf16.gmra.mxu0 %vm331_vm1, %v314_v37 }
  0x60   : > { %2877 = vmatmul.msk.bf16.gmra.mxu3 %vm331_vm1, %v325_v56 }
  0x99   : > { %v393_v58 = vpop.f32.mrf.mxu0 }
  0x9a   : > { %v3848_v59 = vadd.f32 %v3836_v57, %v393_v58 }
  0x9c   : > { %5384 = vst [vmem:[#allocation6_spill] sm:$0xff] %v3848_v59  ;;  %v473_v60 = vmax.f32 %v3848_v59, 0.0  ;;  %v418_v20 = vpop.f32.mrf.mxu1 }
  0x9d   : > { %v3905_v31 = vadd.f32 %v3836_v57, %v418_v20 }
  0x9e   : > { %554 = vst.msk [vmem:[#allocation2 + $0x32] sm:$0xff] %vm505_vm2, %v473_v60 }
  0x9f   : > { %5389 = vst [vmem:[#allocation11_spill] sm:$0xff] %v3905_v31  ;;  %v483_v34 = vmax.f32 %v3905_v31, 0.0  ;;  %v3071_v31 = vpop.permute.xlu0 %3070 }
  0xa1   : > { %v395_v61 = vpop.f32.mrf.mxu0  ;;  %v428_v21 = vpop.f32.mrf.mxu2  ;;  %564 = vst.msk [vmem:[#allocation2 + $0xaa] sm:$0xff] %vm505_vm2, %v483_v34 }
  0xa2   : > { %v3867_v62 = vadd.f32 %v3836_v57, %v395_v61  ;;  %v3908_v32 = vadd.f32 %v3836_v57, %v428_v21 }
  0xa4   : > { %5385 = vst [vmem:[#allocation7_spill] sm:$0xff] %v3867_v62  ;;  %v474_v63 = vmax.f32 %v3867_v62, 0.0  ;;  %v487_v35 = vmax.f32 %v3908_v32, 0.0  ;;  %v420_v41 = vpop.f32.mrf.mxu1 }
  0xa5   : > { %v3878_v6 = vld [vmem:[#allocation2 + $0x30] sm:$0xff]  ;;  %5390 = vst [vmem:[#allocation12_spill] sm:$0xff] %v3908_v32  ;;  %v3939_v46 = vadd.f32 %v3836_v57, %v420_v41  ;;  %v2996_v32 = vld [vmem:[%s5319_s3] sm:$0xff] }
  0xa6   : > { %555 = vst.msk [vmem:[#allocation2 + $0x3a] sm:$0xff] %vm505_vm2, %v474_v63  ;;  %v622_v8 = vld [vmem:[#allocation2 + $0x32] sm:$0xff] }
  0xa7   : > { %568 = vst.msk [vmem:[#allocation2 + $0xda] sm:$0xff] %vm505_vm2, %v487_v35  ;;  %v484_v48 = vmax.f32 %v3939_v46, 0.0 }
  0xa8   : > { %5392 = vst [vmem:[#allocation14_spill] sm:$0xff] %v3939_v46 }
  0xa9   : > { %v398_v3 = vpop.f32.mrf.mxu0  ;;  %v430_v42 = vpop.f32.mrf.mxu2  ;;  %565 = vst.msk [vmem:[#allocation2 + $0xb2] sm:$0xff] %vm505_vm2, %v484_v48 }
  0xaa   : > { %v3875_v4 = vadd.f32 %v3836_v57, %v398_v3  ;;  %v3942_v47 = vadd.f32 %v3836_v57, %v430_v42 }
  0xac   : > { %5386 = vst [vmem:[#allocation8_spill] sm:$0xff] %v3875_v4  ;;  %v475_v5 = vmax.f32 %v3875_v4, 0.0  ;;  %v488_v49 = vmax.f32 %v3942_v47, 0.0  ;;  %v423_v52 = vpop.f32.mrf.mxu1 }
  0xad   : > { %v3880_v7 = vld [vmem:[#allocation2 + $0x38] sm:$0xff]  ;;  %5393 = vst [vmem:[#allocation15_spill] sm:$0xff] %v3942_v47  ;;  %v3955_v55 = vadd.f32 %v3836_v57, %v423_v52 }
  0xae   : > { %v623_v9 = vld [vmem:[#allocation2 + $0x3a] sm:$0xff]  ;;  %556 = vst.msk [vmem:[#allocation2 + $0x4a] sm:$0xff] %vm505_vm2, %v475_v5  ;;  %v3079_v10 = vpack.i.bf16 %v3880_v7, %v3878_v6 }
  0xaf   : > { %v3099_v11 = vpack.i.bf16 %v623_v9, %v622_v8  ;;  %v654_v22 = vld [vmem:[#allocation2 + $0x34] sm:$0xff]  ;;  %v655_v23 = vld [vmem:[#allocation2 + $0x3c] sm:$0xff]  ;;  %569 = vst.msk [vmem:[#allocation2 + $0xe2] sm:$0xff] %vm505_vm2, %v488_v49  ;;  %v485_v1 = vmax.f32 %v3955_v55, 0.0 }
  0xb0   : > { %3080 = vrot.lane.b32.xlu1 %v3079_v10, %s3619_s29  ;;  %v3900_v28 = vpack.i.bf16 %v655_v23, %v654_v22  ;;  %5395 = vst [vmem:[#allocation17_spill] sm:$0xff] %v3955_v55  ;;  %v448_v22 = vpop.f32.mrf.mxu3 }
  0xb1   : > { %3100 = vrot.lane.b32.xlu0 %v3099_v11, %s3617_s20  ;;  %v400_v12 = vpop.f32.mrf.mxu0  ;;  %v433_v53 = vpop.f32.mrf.mxu2  ;;  %566 = vst.msk [vmem:[#allocation2 + $0xc2] sm:$0xff] %vm505_vm2, %v485_v1 }
  0xb2   : > { %v3888_v15 = vadd.f32 %v3836_v57, %v400_v12  ;;  %v3958_v56 = vadd.f32 %v3836_v57, %v433_v53 }
  0xb4   : > { %5387 = vst [vmem:[#allocation9_spill] sm:$0xff] %v3888_v15  ;;  %v476_v16 = vmax.f32 %v3888_v15, 0.0  ;;  %v489_v2 = vmax.f32 %v3958_v56, 0.0  ;;  %v425_v12 = vpop.f32.mrf.mxu1 }
  0xb5   : > { %v624_v24 = vld [vmem:[#allocation2 + $0x4a] sm:$0xff]  ;;  %5396 = vst [vmem:[#allocation18_spill] sm:$0xff] %v3958_v56  ;;  %v3988_v14 = vadd.f32 %v3836_v57, %v425_v12 }
  0xb6   : > { %557 = vst.msk [vmem:[#allocation2 + $0x52] sm:$0xff] %vm505_vm2, %v476_v16  ;;  %v3897_v26 = vld [vmem:[#allocation2 + $0x48] sm:$0xff] }
  0xb7   : > { %570 = vst.msk [vmem:[#allocation2 + $0xf2] sm:$0xff] %vm505_vm2, %v489_v2 }
  0xb8   : > { %3085 = vrot.lane.b32.xlu1 %v3084_v17, %s3617_s20  ;;  %5398 = vst [vmem:[#allocation20_spill] sm:$0xff] %v3988_v14  ;;  %v450_v53 = vpop.f32.mrf.mxu3 }
  0xb9   : > { %v403_v18 = vpop.f32.mrf.mxu0  ;;  %v435_v13 = vpop.f32.mrf.mxu2 }
  0xba   : > { %v3894_v19 = vadd.f32 %v3836_v57, %v403_v18  ;;  %v3991_v16 = vadd.f32 %v3836_v57, %v435_v13  ;;  %v486_v18 = vmax.f32 %v3988_v14, 0.0  ;;  %v3002_v13 = vld [vmem:[%s5319_s3 + $0x30] sm:$0xff] }
  0xbc   : > { %5388 = vst [vmem:[#allocation10_spill] sm:$0xff] %v3894_v19  ;;  %v477_v25 = vmax.f32 %v3894_v19, 0.0  ;;  %v490_v20 = vmax.f32 %v3991_v16, 0.0 }
  0xbd   : > { %v625_v27 = vld [vmem:[#allocation2 + $0x52] sm:$0xff]  ;;  %5399 = vst [vmem:[#allocation21_spill] sm:$0xff] %v3991_v16 }
  0xbe   : > { %558 = vst.msk [vmem:[#allocation2 + $0x62] sm:$0xff] %vm505_vm2, %v477_v25  ;;  %v3114_v29 = vpack.i.bf16 %v625_v27, %v624_v24  ;;  %v3902_v30 = vld [vmem:[#allocation2 + $0x50] sm:$0xff]  ;;  %v4003_v25 = vadd.f32 %v3836_v57, %v448_v22  ;;  %v3001_v22 = vld [vmem:[%s5319_s3 + $0x28] sm:$0xff] }
  0xbf   : > { %v3094_v33 = vpack.i.bf16 %v3902_v30, %v3897_v26  ;;  %v656_v38 = vld [vmem:[#allocation2 + $0x4c] sm:$0xff]  ;;  %v657_v39 = vld [vmem:[#allocation2 + $0x54] sm:$0xff]  ;;  %567 = vst.msk [vmem:[#allocation2 + $0xca] sm:$0xff] %vm505_vm2, %v486_v18 }
  0xc0   : > { %3105 = vrot.lane.b32.xlu1 %v3900_v28, %s3618_s21  ;;  %3115 = vrot.lane.b32.xlu0 %v3114_v29, %s3617_s20  ;;  %v3930_v44 = vpack.i.bf16 %v657_v39, %v656_v38  ;;  %571 = vst.msk [vmem:[#allocation2 + $0xfa] sm:$0xff] %vm505_vm2, %v490_v20  ;;  %v495_v35 = vmax.f32 %v4003_v25, 0.0  ;;  %v453_v12 = vpop.f32.mrf.mxu3 }
  0xc1   : > { %v405_v37 = vpop.f32.mrf.mxu0  ;;  %3095 = vrot.lane.b32.xlu2 %v3094_v33, %s3619_s29  ;;  %v438_v24 = vpop.f32.mrf.mxu2  ;;  %5401 = vst [vmem:[#allocation23_spill] sm:$0xff] %v4003_v25  ;;  %v4055_v18 = vadd.f32 %v3836_v57, %v453_v12  ;;  %v3000_v12 = vld [vmem:[%s5319_s3 + $0x20] sm:$0xff] }
  0xc2   : > { %v3924_v40 = vadd.f32 %v3836_v57, %v405_v37  ;;  %v4008_v33 = vadd.f32 %v3836_v57, %v438_v24  ;;  %576 = vst.msk [vmem:[#allocation2 + $0x13a] sm:$0xff] %vm505_vm2, %v495_v35 }
  0xc3   : > { %5406 = vst [vmem:[#allocation28_spill] sm:$0xff] %v4055_v18 }
  0xc4   : > { %5391 = vst [vmem:[#allocation13_spill] sm:$0xff] %v3924_v40  ;;  %v478_v43 = vmax.f32 %v3924_v40, 0.0  ;;  %v491_v41 = vmax.f32 %v4008_v33, 0.0 }
  0xc5   : > { %v626_v54 = vld [vmem:[#allocation2 + $0x62] sm:$0xff]  ;;  %5402 = vst [vmem:[#allocation24_spill] sm:$0xff] %v4008_v33 }
  0xc6   : > { %559 = vst.msk [vmem:[#allocation2 + $0x6a] sm:$0xff] %vm505_vm2, %v478_v43  ;;  %v3961_v60 = vld [vmem:[#allocation2 + $0x60] sm:$0xff] }
  0xc7   : > { %572 = vst.msk [vmem:[#allocation2 + $0x10a] sm:$0xff] %vm505_vm2, %v491_v41 }
  0xc8   : > { %3120 = vrot.lane.b32.xlu1 %v3930_v44, %s3618_s21 }
  0xc9   : > { %v408_v50 = vpop.f32.mrf.mxu0 }
  0xca   : > { %v3950_v51 = vadd.f32 %v3836_v57, %v408_v50 }
  0xcc   : > { %5394 = vst [vmem:[#allocation16_spill] sm:$0xff] %v3950_v51  ;;  %v479_v58 = vmax.f32 %v3950_v51, 0.0 }
  0xcd   : > { %v627_v61 = vld [vmem:[#allocation2 + $0x6a] sm:$0xff] }
  0xce   : > { %v658_v63 = vld [vmem:[#allocation2 + $0x64] sm:$0xff]  ;;  %v659_v0 = vld [vmem:[#allocation2 + $0x6c] sm:$0xff]  ;;  %560 = vst.msk [vmem:[#allocation2 + $0x7a] sm:$0xff] %vm505_vm2, %v479_v58  ;;  %v3966_v3 = vpack.i.bf16 %v627_v61, %v626_v54  ;;  %v3003_v54 = vld [vmem:[%s5319_s3 + $0x38] sm:$0xff]  ;;  %v440_v61 = vpop.f32.mrf.mxu2 }
  0xcf   : > { %v3968_v5 = vpack.i.bf16 %v659_v0, %v658_v63  ;;  %v3970_v8 = vld [vmem:[#allocation2 + $0x68] sm:$0xff]  ;;  %v4040_v63 = vadd.f32 %v3836_v57, %v450_v53  ;;  %v4043_v0 = vadd.f32 %v3836_v57, %v440_v61  ;;  %2081 = vmatpush.bf16.msrb.mxu1 %v3003_v54  ;;  %v4085_v61 = vld [vmem:[#allocation2 + $0xb0] sm:$0xff] }
  0xd0   : > { %v3974_v9 = vpack.i.bf16 %v3970_v8, %v3961_v60  ;;  %3130 = vrot.lane.b32.xlu0 %v3966_v3, %s3617_s20  ;;  %v4083_v54 = vld [vmem:[#allocation2 + $0xa8] sm:$0xff]  ;;  %5409 = vst [vmem:[#allocation31_spill] sm:$0xff] %v4085_v61 }
  0xd1   : > { %3135 = vrot.lane.b32.xlu1 %v3968_v5, %s3618_s21  ;;  %v410_v10 = vpop.f32.mrf.mxu0  ;;  %5404 = vst [vmem:[#allocation26_spill] sm:$0xff] %v4040_v63  ;;  %v496_v2 = vmax.f32 %v4040_v63, 0.0 }
  0xd2   : > { %3110 = vrot.lane.b32.xlu2 %v3974_v9, %s3619_s29  ;;  %v3985_v11 = vadd.f32 %v3836_v57, %v410_v10  ;;  %5405 = vst [vmem:[#allocation27_spill] sm:$0xff] %v4043_v0  ;;  %v492_v10 = vmax.f32 %v4043_v0, 0.0 }
  0xd3   : > { %577 = vst.msk [vmem:[#allocation2 + $0x142] sm:$0xff] %vm505_vm2, %v496_v2  ;;  %2082 = vmatpush.bf16.msrb.mxu1 %v3002_v13  ;;  %v665_v2 = vld [vmem:[#allocation2 + $0xb4] sm:$0xff]  ;;  %v632_v13 = vld [vmem:[#allocation2 + $0xaa] sm:$0xff] }
  0xd4   : > { %5397 = vst [vmem:[#allocation19_spill] sm:$0xff] %v3985_v11  ;;  %v480_v17 = vmax.f32 %v3985_v11, 0.0 }
  0xd5   : > { %v628_v27 = vld [vmem:[#allocation2 + $0x7a] sm:$0xff]  ;;  %573 = vst.msk [vmem:[#allocation2 + $0x112] sm:$0xff] %vm505_vm2, %v492_v10  ;;  %v455_v10 = vpop.f32.mrf.mxu3 }
  0xd6   : > { %561 = vst.msk [vmem:[#allocation2 + $0x82] sm:$0xff] %vm505_vm2, %v480_v17  ;;  %v4005_v29 = vld [vmem:[#allocation2 + $0x78] sm:$0xff]  ;;  %v443_v17 = vpop.f32.mrf.mxu2 }
  0xd7   : > { %2083 = vmatpush.bf16.msrb.mxu1 %v3001_v22  ;;  %5408 = vst [vmem:[#allocation30_spill] sm:$0xff] %v4083_v54 }
  0xd9   : > { %v413_v21 = vpop.f32.mrf.mxu0 }
  0xda   : > { %v4000_v23 = vadd.f32 %v3836_v57, %v413_v21  ;;  %v4060_v21 = vadd.f32 %v3836_v57, %v443_v17  ;;  %v633_v17 = vld [vmem:[#allocation2 + $0xb2] sm:$0xff] }
  0xdb   : > { %2084 = vmatpush.bf16.msrb.mxu1 %v3000_v12  ;;  %v4118_v12 = vld [vmem:[#allocation2 + $0xc0] sm:$0xff] }
  0xdc   : > { %5400 = vst [vmem:[#allocation22_spill] sm:$0xff] %v4000_v23  ;;  %v481_v34 = vmax.f32 %v4000_v23, 0.0 }
  0xdd   : > { %v629_v37 = vld [vmem:[#allocation2 + $0x82] sm:$0xff]  ;;  %5407 = vst [vmem:[#allocation29_spill] sm:$0xff] %v4060_v21  ;;  %v458_v63 = vpop.f32.mrf.mxu3 }
  0xde   : > { %v4012_v38 = vld [vmem:[#allocation2 + $0x80] sm:$0xff]  ;;  %562 = vst.msk [vmem:[#allocation2 + $0x92] sm:$0xff] %vm505_vm2, %v481_v34  ;;  %v4016_v42 = vpack.i.bf16 %v629_v37, %v628_v27  ;;  %v497_v27 = vmax.f32 %v4055_v18, 0.0  ;;  %v445_v22 = vpop.f32.mrf.mxu2  ;;  %v4128_v18 = vadd.f32 %v3836_v57, %v458_v63  ;;  %v4147_v63 = vld [vmem:[#allocation2 + $0xd8] sm:$0xff] }
  0xdf   : > { %v660_v39 = vld [vmem:[#allocation2 + $0x7c] sm:$0xff]  ;;  %v4020_v43 = vpack.i.bf16 %v4012_v38, %v4005_v29  ;;  %v661_v48 = vld [vmem:[#allocation2 + $0x84] sm:$0xff]  ;;  %5412 = vst [vmem:[#allocation34_spill] sm:$0xff] %v4118_v12 }
  0xe0   : > { %v4022_v49 = vpack.i.bf16 %v661_v48, %v660_v39  ;;  %v1842_v50 = vpack.c.bf16 %v661_v48, %v660_v39  ;;  %3145 = vrot.lane.b32.xlu0 %v4016_v42, %s3617_s20  ;;  %v493_v39 = vmax.f32 %v4060_v21, 0.0  ;;  %578 = vst.msk [vmem:[#allocation2 + $0x152] sm:$0xff] %vm505_vm2, %v497_v27  ;;  %v4097_v27 = vadd.f32 %v3836_v57, %v445_v22  ;;  %v4120_v22 = vld [vmem:[#allocation2 + $0xc8] sm:$0xff] }
  0xe1   : > { %3125 = vrot.lane.b32.xlu2 %v4020_v43, %s3619_s29  ;;  %v415_v52 = vpop.f32.mrf.mxu0  ;;  %5413 = vst [vmem:[#allocation35_spill] sm:$0xff] %v4120_v22  ;;  %v4135_v21 = vpack.i.bf16 %v4120_v22, %v4118_v12  ;;  %v499_v25 = vmax.f32 %v4128_v18, 0.0 }
  0xe2   : > { %3150 = vrot.lane.b32.xlu1 %v4022_v49, %s3618_s21  ;;  %2951 = vmatmul.msk.bf16.vlgmr.msrb.gmra.mxu3 %vm505_vm2, %v1842_v50  ;;  %v4037_v58 = vadd.f32 %v3836_v57, %v415_v52  ;;  %574 = vst.msk [vmem:[#allocation2 + $0x122] sm:$0xff] %vm505_vm2, %v493_v39 }
  0xe3   : > { %5411 = vst [vmem:[#allocation33_spill] sm:$0xff] %v4097_v27 }
  0xe4   : > { %5403 = vst [vmem:[#allocation25_spill] sm:$0xff] %v4037_v58  ;;  %v482_v1 = vmax.f32 %v4037_v58, 0.0 }
  0xe5   : > { %v4057_v20 = vld [vmem:[#allocation2 + $0x90] sm:$0xff]  ;;  %5414 = vst [vmem:[#allocation36_spill] sm:$0xff] %v4128_v18 }
  0xe6   : > { %563 = vst.msk [vmem:[#allocation2 + $0x9a] sm:$0xff] %vm505_vm2, %v482_v1  ;;  %v630_v24 = vld [vmem:[#allocation2 + $0x92] sm:$0xff] }
  0xe7   : > { %v664_v1 = vld [vmem:[#allocation2 + $0xac] sm:$0xff]  ;;  %580 = vst.msk [vmem:[#allocation2 + $0x16a] sm:$0xff] %vm505_vm2, %v499_v25  ;;  %v460_v25 = vpop.f32.mrf.mxu3 }
  0xe8   : > { %v4106_v39 = vpack.i.bf16 %v665_v2, %v664_v1  ;;  %v1848_v33 = vpack.c.bf16 %v665_v2, %v664_v1  ;;  %5415 = vst [vmem:[#allocation37_spill] sm:$0xff] %v4147_v63  ;;  %v4156_v1 = vld [vmem:[#allocation2 + $0xe4] sm:$0xff]  ;;  %v636_v2 = vld [vmem:[#allocation2 + $0xda] sm:$0xff] }
  0xed   : > { %v4066_v34 = vld [vmem:[#allocation2 + $0x98] sm:$0xff] }
  0xee   : > { %v662_v35 = vld [vmem:[#allocation2 + $0x94] sm:$0xff]  ;;  %v663_v37 = vld [vmem:[#allocation2 + $0x9c] sm:$0xff]  ;;  %v4071_v41 = vpack.i.bf16 %v4066_v34, %v4057_v20 }
  0xef   : > { %v4073_v48 = vpack.i.bf16 %v663_v37, %v662_v35  ;;  %v631_v50 = vld [vmem:[#allocation2 + $0x9a] sm:$0xff]  ;;  %v1845_v52 = vpack.c.bf16 %v663_v37, %v662_v35  ;;  %v4104_v37 = vpack.i.bf16 %v4085_v61, %v4083_v54 }
  0xf0   : > { %v4076_v53 = vpack.i.bf16 %v631_v50, %v630_v24  ;;  %3140 = vrot.lane.b32.xlu2 %v4071_v41, %s3619_s29  ;;  %v4094_v24 = vadd.f32 %v3836_v57, %v455_v10  ;;  %v2999_v35 = vld [vmem:[%s5319_s3 + $0x18] sm:$0xff]  ;;  %v494_v10 = vmax.f32 %v4097_v27, 0.0 }
  0xf1   : > { %3165 = vrot.lane.b32.xlu1 %v4073_v48, %s3618_s21  ;;  %2085 = vmatpush.bf16.msrb.mxu1 %v2999_v35  ;;  %v2998_v35 = vld [vmem:[%s5319_s3 + $0x10] sm:$0xff] }
  0xf2   : > { %3160 = vrot.lane.b32.xlu0 %v4076_v53, %s3617_s20  ;;  %2952 = vmatmul.msk.bf16.gmra.mxu3 %vm505_vm2, %v1845_v52  ;;  %5410 = vst [vmem:[#allocation32_spill] sm:$0xff] %v4094_v24  ;;  %v498_v50 = vmax.f32 %v4094_v24, 0.0  ;;  %v4109_v52 = vpack.i.bf16 %v633_v17, %v632_v13  ;;  %v666_v13 = vld [vmem:[#allocation2 + $0xc4] sm:$0xff]  ;;  %v667_v17 = vld [vmem:[#allocation2 + $0xcc] sm:$0xff] }
  0xf3   : > { %575 = vst.msk [vmem:[#allocation2 + $0x12a] sm:$0xff] %vm505_vm2, %v494_v10  ;;  %v635_v10 = vld [vmem:[#allocation2 + $0xca] sm:$0xff]  ;;  %v4137_v27 = vpack.i.bf16 %v667_v17, %v666_v13  ;;  %v1851_v58 = vpack.c.bf16 %v667_v17, %v666_v13  ;;  %v4220_v13 = vld [vmem:[#allocation2 + $0x114] sm:$0xff] }
  0xf4   : > { %579 = vst.msk [vmem:[#allocation2 + $0x15a] sm:$0xff] %vm505_vm2, %v498_v50  ;;  %v634_v50 = vld [vmem:[#allocation2 + $0xc2] sm:$0xff]  ;;  %v640_v17 = vld [vmem:[#allocation2 + $0x10a] sm:$0xff] }
  0xf5   : > { %2086 = vmatpush.bf16.msrb.mxu1 %v2998_v35  ;;  %v2997_v24 = vld [vmem:[%s5319_s3 + $0x8] sm:$0xff]  ;;  %v4140_v16 = vpack.i.bf16 %v635_v10, %v634_v50  ;;  %v4152_v35 = vld [vmem:[#allocation2 + $0xe0] sm:$0xff]  ;;  %v4159_v10 = vadd.f32 %v3836_v57, %v460_v25  ;;  %v4181_v25 = vld [vmem:[#allocation2 + $0xf0] sm:$0xff] }
  0xf6   : > { %5416 = vst [vmem:[#allocation38_spill] sm:$0xff] %v4152_v35  ;;  %v4154_v50 = vld [vmem:[#allocation2 + $0xdc] sm:$0xff]  ;;  %v4163_v18 = vpack.i.bf16 %v4152_v35, %v4147_v63  ;;  %v3072_v63 = vunpack.i.l.bf16 %v3071_v31  ;;  %v3076_v35 = vpop.permute.xlu0 %3075 }
  0xf7   : > { %5417 = vst [vmem:[#allocation39_spill] sm:$0xff] %v4159_v10  ;;  %v4167_v0 = vpack.i.bf16 %v4156_v1, %v4154_v50  ;;  %v1854_v22 = vpack.c.bf16 %v4156_v1, %v4154_v50  ;;  %v4277_v50 = vld [vmem:[#allocation2 + $0x138] sm:$0xff]  ;;  %v4279_v1 = vld [vmem:[#allocation2 + $0x140] sm:$0xff] }
  0xf8   : > { %3155 = vrot.lane.b32.xlu2 %v4104_v37, %s3619_s29  ;;  %5418 = vst [vmem:[#allocation40_spill] sm:$0xff] %v4181_v25  ;;  %v4292_v54 = vpack.i.bf16 %v4279_v1, %v4277_v50 }
  0xf9   : > { %3180 = vrot.lane.b32.xlu1 %v4106_v39, %s3618_s21  ;;  %2087 = vmatpush.bf16.msrb.mxu1 %v2997_v24  ;;  %v637_v24 = vld [vmem:[#allocation2 + $0xe2] sm:$0xff]  ;;  %5431 = vst [vmem:[#allocation53_spill] sm:$0xff] %v4277_v50 }
  0xfa   : > { %3175 = vrot.lane.b32.xlu0 %v4109_v52, %s3617_s20  ;;  %v4173_v47 = vpack.i.bf16 %v637_v24, %v636_v2  ;;  %v4187_v2 = vld [vmem:[#allocation2 + $0xf4] sm:$0xff]  ;;  %v4189_v24 = vld [vmem:[#allocation2 + $0xfc] sm:$0xff]  ;;  %v4245_v4 = vld [vmem:[#allocation2 + $0x128] sm:$0xff]  ;;  %5432 = vst [vmem:[#allocation54_spill] sm:$0xff] %v4279_v1 }
  0xfb   : > { %v4201_v55 = vpack.i.bf16 %v4189_v24, %v4187_v2  ;;  %5427 = vst [vmem:[#allocation49_spill] sm:$0xff] %v4245_v4  ;;  %v4247_v15 = vld [vmem:[#allocation2 + $0x124] sm:$0xff] }
  0xfd   : > { %2088 = vmatpush.bf16.msrb.mxu1 %v2996_v32  ;;  %v463_v32 = vpop.f32.mrf.mxu3 }
  0xfe   : > { %v4192_v56 = vadd.f32 %v3836_v57, %v463_v32  ;;  %v4216_v32 = vld [vmem:[#allocation2 + $0x110] sm:$0xff] }
  0xff   : > { %5422 = vst [vmem:[#allocation44_spill] sm:$0xff] %v4216_v32 }
 0x100   : > { %3170 = vrot.lane.b32.xlu2 %v4135_v21, %s3619_s29  ;;  %5420 = vst [vmem:[#allocation42_spill] sm:$0xff] %v4192_v56  ;;  %v501_v14 = vmax.f32 %v4192_v56, 0.0 }
 0x101   : > { %3195 = vrot.lane.b32.xlu1 %v4137_v27, %s3618_s21  ;;  %2265 = vmatpush.bf16.msra.mxu1 %v3920_v36  ;;  %v639_v36 = vld [vmem:[#allocation2 + $0xfa] sm:$0xff] }
 0x102   : > { %3190 = vrot.lane.b32.xlu0 %v4140_v16, %s3617_s20  ;;  %2953 = vmatmul.msk.bf16.gmra.mxu3 %vm505_vm2, %v1848_v33  ;;  %v500_v33 = vmax.f32 %v4159_v10, 0.0  ;;  %v4185_v10 = vld [vmem:[#allocation2 + $0xf8] sm:$0xff]  ;;  %582 = vst.msk [vmem:[#allocation2 + $0x182] sm:$0xff] %vm505_vm2, %v501_v14 }
 0x103   : > { %5419 = vst [vmem:[#allocation41_spill] sm:$0xff] %v4185_v10  ;;  %v4197_v46 = vpack.i.bf16 %v4185_v10, %v4181_v25  ;;  %v3073_v10 = vunpack.i.h.bf16 %v3071_v31 }
 0x104   : > { %581 = vst.msk [vmem:[#allocation2 + $0x172] sm:$0xff] %vm505_vm2, %v500_v33  ;;  %v638_v33 = vld [vmem:[#allocation2 + $0xf2] sm:$0xff] }
 0x105   : > { %2266 = vmatpush.bf16.msra.mxu1 %v3935_v45  ;;  %v4204_v23 = vpack.i.bf16 %v639_v36, %v638_v33  ;;  %v4211_v45 = vld [vmem:[#allocation2 + $0x108] sm:$0xff]  ;;  %v465_v14 = vpop.f32.mrf.mxu3  ;;  %v641_v36 = vld [vmem:[#allocation2 + $0x112] sm:$0xff] }
 0x106   : > { %5421 = vst [vmem:[#allocation43_spill] sm:$0xff] %v4211_v45  ;;  %v4218_v33 = vld [vmem:[#allocation2 + $0x10c] sm:$0xff]  ;;  %v4223_v56 = vadd.f32 %v3836_v57, %v465_v14  ;;  %v4227_v40 = vpack.i.bf16 %v4216_v32, %v4211_v45  ;;  %v4234_v11 = vpack.i.bf16 %v641_v36, %v640_v17  ;;  %v4241_v14 = vld [vmem:[#allocation2 + $0x120] sm:$0xff]  ;;  %v3091_v32 = vpop.permute.xlu2 %3090 }
 0x107   : > { %5426 = vst [vmem:[#allocation48_spill] sm:$0xff] %v4241_v14  ;;  %v642_v36 = vld [vmem:[#allocation2 + $0x122] sm:$0xff]  ;;  %v4256_v59 = vpack.i.bf16 %v4245_v4, %v4241_v14  ;;  %v3078_v14 = vunpack.i.h.bf16 %v3076_v35  ;;  %v3077_v4 = vunpack.i.l.bf16 %v3076_v35 }
 0x108   : > { %3185 = vrot.lane.b32.xlu2 %v4163_v18, %s3619_s29  ;;  %5423 = vst [vmem:[#allocation45_spill] sm:$0xff] %v4223_v56  ;;  %v502_v51 = vmax.f32 %v4223_v56, 0.0  ;;  %v4249_v56 = vld [vmem:[#allocation2 + $0x12c] sm:$0xff]  ;;  %v586_v45 = vld [vmem:[#allocation2] sm:$0xff] }
 0x109   : > { %3210 = vrot.lane.b32.xlu1 %v4167_v0, %s3618_s21  ;;  %5425 = vst [vmem:[#allocation47_spill] sm:$0xff] %v4234_v11  ;;  %v4260_v62 = vpack.i.bf16 %v4249_v56, %v4247_v15  ;;  %v4281_v35 = vld [vmem:[#allocation2 + $0x13c] sm:$0xff] }
 0x10a   : > { %3205 = vrot.lane.b32.xlu0 %v4173_v47, %s3617_s20  ;;  %583 = vst.msk [vmem:[#allocation2 + $0x18a] sm:$0xff] %vm505_vm2, %v502_v51  ;;  %v643_v51 = vld [vmem:[#allocation2 + $0x12a] sm:$0xff] }
 0x10b   : > { %5429 = vst [vmem:[#allocation51_spill] sm:$0xff] %v4260_v62  ;;  %v4263_v12 = vpack.i.bf16 %v643_v51, %v642_v36  ;;  %v1643_v36 = vsel %vm505_vm2, %v586_v45, %v3072_v63 }
 0x10d   : > { %v468_v17 = vpop.f32.mrf.mxu3  ;;  %5430 = vst [vmem:[#allocation52_spill] sm:$0xff] %v4263_v12 }
 0x10e   : > { %v4252_v19 = vadd.f32 %v3836_v57, %v468_v17  ;;  %v587_v17 = vld [vmem:[#allocation2 + $0x8] sm:$0xff] }
 0x10f   : > { %v1644_v31 = vsel %vm505_vm2, %v587_v17, %v3073_v10  ;;  %v644_v10 = vld [vmem:[#allocation2 + $0x13a] sm:$0xff]  ;;  %v645_v17 = vld [vmem:[#allocation2 + $0x142] sm:$0xff] }
 0x110   : > { %3200 = vrot.lane.b32.xlu2 %v4197_v46, %s3619_s29  ;;  %5428 = vst [vmem:[#allocation50_spill] sm:$0xff] %v4252_v19  ;;  %v503_v25 = vmax.f32 %v4252_v19, 0.0  ;;  %v4283_v19 = vld [vmem:[#allocation2 + $0x144] sm:$0xff] }
 0x111   : > { %3225 = vrot.lane.b32.xlu1 %v4201_v55, %s3618_s21 }
 0x112   : > { %3220 = vrot.lane.b32.xlu0 %v4204_v23, %s3617_s20  ;;  %2954 = vmatmul.msk.bf16.gmra.mxu3 %vm505_vm2, %v1851_v58  ;;  %v4231_v58 = vpack.i.bf16 %v4220_v13, %v4218_v33  ;;  %584 = vst.msk [vmem:[#allocation2 + $0x19a] sm:$0xff] %vm505_vm2, %v503_v25 }
 0x114   : > { %5424 = vst [vmem:[#allocation46_spill] sm:$0xff] %v4231_v58 }
 0x115   : > { %v470_v25 = vpop.f32.mrf.mxu3 }
 0x116   : > { %v4286_v63 = vadd.f32 %v3836_v57, %v470_v25  ;;  %v4299_v57 = vpack.i.bf16 %v4283_v19, %v4281_v35  ;;  %v4301_v25 = vpack.i.bf16 %v645_v17, %v644_v10 }
 0x118   : > { %3215 = vrot.lane.b32.xlu2 %v4227_v40, %s3619_s29  ;;  %5433 = vst [vmem:[#allocation55_spill] sm:$0xff] %v4286_v63  ;;  %v504_v61 = vmax.f32 %v4286_v63, 0.0 }
 0x119   : > { %3240 = vrot.lane.b32.xlu1 %v4231_v58, %s3618_s21  ;;  %5434 = vst [vmem:[#allocation56_spill] sm:$0xff] %v4299_v57 }
 0x11a   : > { %3235 = vrot.lane.b32.xlu0 %v4234_v11, %s3617_s20  ;;  %5435 = vst [vmem:[#allocation57_spill] sm:$0xff] %v4301_v25 }
 0x11b   : > { %585 = vst.msk [vmem:[#allocation2 + $0x1a2] sm:$0xff] %vm505_vm2, %v504_v61  ;;  %v4316_v61 = vld [vmem:[#allocation2 + $0x15c] sm:$0xff] }
 0x120   : > { %3230 = vrot.lane.b32.xlu2 %v4256_v59, %s3619_s29 }
 0x121   : > { %3255 = vrot.lane.b32.xlu1 %v4260_v62, %s3618_s21 }
 0x122   : > { %3250 = vrot.lane.b32.xlu0 %v4263_v12, %s3617_s20  ;;  %2955 = vmatmul.msk.bf16.gmra.mxu3 %vm505_vm2, %v1854_v22  ;;  %v3081_v51 = vpop.permute.xlu1 %3080  ;;  %v1676_v22 = vsel %vm1675_vm5, %v1643_v36, %v3077_v4  ;;  %v1677_v12 = vsel %vm1675_vm5, %v1644_v31, %v3078_v14  ;;  %v588_v14 = vld [vmem:[#allocation2 + $0x18] sm:$0xff]  ;;  %v589_v31 = vld [vmem:[#allocation2 + $0x20] sm:$0xff] }
 0x123   : > { %v3083_v45 = vunpack.i.h.bf16 %v3081_v51  ;;  %v3082_v62 = vunpack.i.l.bf16 %v3081_v51  ;;  %v4314_v36 = vld [vmem:[#allocation2 + $0x154] sm:$0xff] }
 0x124   : > { %v647_v51 = vld [vmem:[#allocation2 + $0x15a] sm:$0xff]  ;;  %v4326_v1 = vpack.i.bf16 %v4316_v61, %v4314_v36 }
 0x125   : > { %v1709_v58 = vsel %vm1708_vm6, %v1676_v22, %v3082_v62  ;;  %v1710_v11 = vsel %vm1708_vm6, %v1677_v12, %v3083_v45  ;;  %v4310_v62 = vld [vmem:[#allocation2 + $0x150] sm:$0xff]  ;;  %v4312_v12 = vld [vmem:[#allocation2 + $0x158] sm:$0xff]  ;;  %v3093_v45 = vunpack.i.h.bf16 %v3091_v32  ;;  %v3092_v22 = vunpack.i.l.bf16 %v3091_v32 }
 0x126   : > { %v1837_v4 = vpack.c.bf16 %v1710_v11, %v1709_v58  ;;  %5436 = vst [vmem:[#allocation58_spill] sm:$0xff] %v4310_v62  ;;  %v646_v58 = vld [vmem:[#allocation2 + $0x152] sm:$0xff] }
 0x127   : > { %5437 = vst [vmem:[#allocation59_spill] sm:$0xff] %v4312_v12 }
 0x128   : > { %3245 = vrot.lane.b32.xlu2 %v4292_v54, %s3619_s29  ;;  %2089 = vmatmul.bf16.vlgmr.msrb.gmra.mxu1 %v1837_v4  ;;  %v4320_v4 = vpack.i.bf16 %v4312_v12, %v4310_v62  ;;  %5438 = vst [vmem:[#allocation60_spill] sm:$0xff] %v4326_v1 }
 0x129   : > { %3270 = vrot.lane.b32.xlu1 %v4299_v57, %s3618_s21  ;;  %v4328_v57 = vpack.i.bf16 %v647_v51, %v646_v58  ;;  %v4342_v58 = vld [vmem:[#allocation2 + $0x170] sm:$0xff] }
 0x12a   : > { %3265 = vrot.lane.b32.xlu0 %v4301_v25, %s3617_s20  ;;  %v3086_v11 = vpop.permute.xlu1 %3085  ;;  %v3096_v25 = vpop.permute.xlu2 %3095  ;;  %5441 = vst [vmem:[#allocation63_spill] sm:$0xff] %v4342_v58 }
 0x12b   : > { %v3088_v10 = vunpack.i.h.bf16 %v3086_v11  ;;  %v3087_v17 = vunpack.i.l.bf16 %v3086_v11  ;;  %5439 = vst [vmem:[#allocation61_spill] sm:$0xff] %v4328_v57  ;;  %v1857_v11 = vpack.c.bf16 %v4189_v24, %v4187_v2 }
 0x12d   : > { %v1646_v63 = vsel %vm505_vm2, %v589_v31, %v3088_v10  ;;  %v1645_v50 = vsel %vm505_vm2, %v588_v14, %v3087_v17  ;;  %v3098_v31 = vunpack.i.h.bf16 %v3096_v25  ;;  %v3097_v10 = vunpack.i.l.bf16 %v3096_v25  ;;  %v4340_v14 = vld [vmem:[#allocation2 + $0x168] sm:$0xff]  ;;  %v3101_v25 = vpop.permute.xlu0 %3100 }
 0x12e   : > { %v1678_v32 = vsel %vm1675_vm5, %v1645_v50, %v3092_v22  ;;  %v1679_v62 = vsel %vm1675_vm5, %v1646_v63, %v3093_v45  ;;  %5440 = vst [vmem:[#allocation62_spill] sm:$0xff] %v4340_v14  ;;  %v4349_v50 = vpack.i.bf16 %v4342_v58, %v4340_v14  ;;  %v710_v45 = vld [vmem:[#allocation2 + $0x180] sm:$0xff]  ;;  %v4357_v22 = vld [vmem:[#allocation2 + $0x16c] sm:$0xff] }
 0x12f   : > { %v1711_v2 = vsel %vm1708_vm6, %v1678_v32, %v3097_v10  ;;  %v1712_v24 = vsel %vm1708_vm6, %v1679_v62, %v3098_v31  ;;  %v711_v62 = vld [vmem:[#allocation2 + $0x188] sm:$0xff]  ;;  %v649_v31 = vld [vmem:[#allocation2 + $0x172] sm:$0xff]  ;;  %v3103_v10 = vunpack.i.h.bf16 %v3101_v25 }
 0x130   : > { %3260 = vrot.lane.b32.xlu2 %v4320_v4, %s3619_s29  ;;  %v1840_v63 = vpack.c.bf16 %v1712_v24, %v1711_v2  ;;  %v648_v32 = vld [vmem:[#allocation2 + $0x16a] sm:$0xff]  ;;  %v3102_v2 = vunpack.i.l.bf16 %v3101_v25 }
 0x131   : > { %3285 = vrot.lane.b32.xlu1 %v4326_v1, %s3618_s21  ;;  %v4367_v58 = vpack.i.bf16 %v649_v31, %v648_v32  ;;  %v1648_v1 = vsel %vm505_vm2, %v3880_v7, %v3103_v10 }
 0x132   : > { %3280 = vrot.lane.b32.xlu0 %v4328_v57, %s3617_s20  ;;  %2956 = vmatmul.msk.bf16.gmra.mxu3 %vm505_vm2, %v1857_v11  ;;  %v3111_v51 = vpop.permute.xlu2 %3110  ;;  %v3106_v17 = vpop.permute.xlu1 %3105  ;;  %v4359_v11 = vld [vmem:[#allocation2 + $0x174] sm:$0xff]  ;;  %v1647_v12 = vsel %vm505_vm2, %v3878_v6, %v3102_v2 }
 0x133   : > { %v3108_v24 = vunpack.i.h.bf16 %v3106_v17  ;;  %v3107_v14 = vunpack.i.l.bf16 %v3106_v17  ;;  %v3113_v25 = vunpack.i.h.bf16 %v3111_v51  ;;  %v3112_v57 = vunpack.i.l.bf16 %v3111_v51 }
 0x135   : > { %v1680_v17 = vsel %vm1675_vm5, %v1647_v12, %v3107_v14  ;;  %v3116_v51 = vpop.permute.xlu0 %3115  ;;  %v713_v12 = vld [vmem:[#allocation2 + $0x1a0] sm:$0xff] }
 0x136   : > { %v1713_v6 = vsel %vm1708_vm6, %v1680_v17, %v3112_v57  ;;  %v3118_v32 = vunpack.i.h.bf16 %v3116_v51  ;;  %v3117_v57 = vunpack.i.l.bf16 %v3116_v51 }
 0x138   : > { %3275 = vrot.lane.b32.xlu2 %v4349_v50, %s3619_s29  ;;  %2094 = vmatmul.bf16.gmra.mxu1 %v1840_v63  ;;  %v4361_v63 = vpack.i.bf16 %v711_v62, %v710_v45  ;;  %v1681_v45 = vsel %vm1675_vm5, %v1648_v1, %v3108_v24  ;;  %v712_v1 = vld [vmem:[#allocation2 + $0x198] sm:$0xff]  ;;  %v1863_v24 = vpack.c.bf16 %v4249_v56, %v4247_v15 }
 0x139   : > { %3300 = vrot.lane.b32.xlu1 %v3974_v9, %s3618_s21  ;;  %v4365_v9 = vpack.i.bf16 %v4359_v11, %v4357_v22  ;;  %v1714_v7 = vsel %vm1708_vm6, %v1681_v45, %v3113_v25  ;;  %v4392_v2 = vpack.i.bf16 %v713_v12, %v712_v1  ;;  %v1866_v1 = vpack.c.bf16 %v4283_v19, %v4281_v35 }
 0x13a   : > { %3295 = vrot.lane.b32.xlu0 %v3900_v28, %s3617_s20  ;;  %v1860_v28 = vpack.c.bf16 %v4220_v13, %v4218_v33  ;;  %v1843_v13 = vpack.c.bf16 %v1714_v7, %v1713_v6  ;;  %v3121_v62 = vpop.permute.xlu1 %3120 }
 0x13b   : > { %v3126_v33 = vpop.permute.xlu2 %3125  ;;  %v3123_v31 = vunpack.i.h.bf16 %v3121_v62  ;;  %v3122_v10 = vunpack.i.l.bf16 %v3121_v62 }
 0x140   : > { %3290 = vrot.lane.b32.xlu2 %v4361_v63, %s3619_s29 }
 0x141   : > { %3315 = vrot.lane.b32.xlu1 %v4365_v9, %s3618_s21 }
 0x142   : > { %3310 = vrot.lane.b32.xlu0 %v4367_v58, %s3617_s20  ;;  %2957 = vmatmul.msk.bf16.gmra.mxu3 %vm505_vm2, %v1860_v28  ;;  %v3128_v28 = vunpack.i.h.bf16 %v3126_v33 }
 0x143   : > { %v3136_v15 = vpop.permute.xlu1 %3135 }
 0x144   : > { %v3138_v51 = vunpack.i.h.bf16 %v3136_v15  ;;  %v3137_v62 = vunpack.i.l.bf16 %v3136_v15 }
 0x148   : > { %3305 = vrot.lane.b32.xlu2 %v3966_v3, %s3619_s29  ;;  %2099 = vmatmul.bf16.gmra.mxu1 %v1843_v13  ;;  %v1650_v3 = vsel %vm505_vm2, %v3902_v30, %v3118_v32 }
 0x149   : > { %3325 = vrot.lane.b32.xlu1 %v4020_v43, %s3618_s21  ;;  %v1649_v43 = vsel %vm505_vm2, %v3897_v26, %v3117_v57  ;;  %v1683_v17 = vsel %vm1675_vm5, %v1650_v3, %v3123_v31  ;;  %v3131_v26 = vpop.permute.xlu0 %3130 }
 0x14a   : > { %3320 = vrot.lane.b32.xlu0 %v3930_v44, %s3617_s20  ;;  %v3141_v14 = vpop.permute.xlu2 %3140  ;;  %v3127_v44 = vunpack.i.l.bf16 %v3126_v33  ;;  %v1682_v25 = vsel %vm1675_vm5, %v1649_v43, %v3122_v10  ;;  %v1716_v45 = vsel %vm1708_vm6, %v1683_v17, %v3128_v28  ;;  %v3133_v6 = vunpack.i.h.bf16 %v3131_v26 }
 0x14b   : > { %v3132_v7 = vunpack.i.l.bf16 %v3131_v26  ;;  %v3143_v12 = vunpack.i.h.bf16 %v3141_v14  ;;  %v3142_v32 = vunpack.i.l.bf16 %v3141_v14 }
 0x14c   : > { %v1715_v56 = vsel %vm1708_vm6, %v1682_v25, %v3127_v44 }
 0x14d   : > { %v1846_v33 = vpack.c.bf16 %v1716_v45, %v1715_v56 }
 0x150   : > { %3330 = vrot.lane.b32.xlu2 %v4392_v2, %s3619_s29 }
 0x151   : > { %3345 = vrot.lane.b32.xlu1 %v4071_v41, %s3618_s21 }
 0x152   : > { %3340 = vrot.lane.b32.xlu0 %v3968_v5, %s3617_s20  ;;  %v4408_v30 = vpop.permute.xlu2 %3155  ;;  %2958 = vmatmul.msk.bf16.gmra.mxu3 %vm505_vm2, %v1863_v24  ;;  %v3146_v13 = vpop.permute.xlu0 %3145 }
 0x153   : > { %v3158_v44 = vunpack.i.h.bf16 %v4408_v30 }
 0x154   : > { %v3151_v5 = vpop.permute.xlu1 %3150 }
 0x155   : > { %v3153_v3 = vunpack.i.h.bf16 %v3151_v5  ;;  %v3152_v43 = vunpack.i.l.bf16 %v3151_v5 }
 0x158   : > { %3335 = vrot.lane.b32.xlu2 %v4016_v42, %s3619_s29  ;;  %2104 = vmatmul.bf16.gmra.mxu1 %v1846_v33  ;;  %v1652_v42 = vsel %vm505_vm2, %v3970_v8, %v3133_v6  ;;  %v3009_v33 = vld [vmem:[%s5319_s3 + $0x68] sm:$0xff] }
 0x159   : > { %3360 = vrot.lane.b32.xlu1 %v4104_v37, %s3618_s21  ;;  %v1651_v37 = vsel %vm505_vm2, %v3961_v60, %v3132_v7  ;;  %v1685_v60 = vsel %vm1675_vm5, %v1652_v42, %v3138_v51  ;;  %v1872_v7 = vpack.c.bf16 %v4359_v11, %v4357_v22 }
 0x15a   : > { %3355 = vrot.lane.b32.xlu0 %v4022_v49, %s3617_s20  ;;  %v4419_v41 = vpop.permute.xlu2 %3170  ;;  %v1684_v8 = vsel %vm1675_vm5, %v1651_v37, %v3137_v62  ;;  %v5442_v37 = vld [vmem:[#allocation47_spill] sm:$0xff] }
 0x15b   : > { %v1717_v14 = vsel %vm1708_vm6, %v1684_v8, %v3142_v32  ;;  %v3173_v51 = vunpack.i.h.bf16 %v4419_v41  ;;  %v3172_v62 = vunpack.i.l.bf16 %v4419_v41 }
 0x160   : > { %3350 = vrot.lane.b32.xlu2 %v4076_v53, %s3619_s29  ;;  %v1718_v53 = vsel %vm1708_vm6, %v1685_v60, %v3143_v12 }
 0x161   : > { %3375 = vrot.lane.b32.xlu1 %v4135_v21, %s3618_s21  ;;  %v1849_v57 = vpack.c.bf16 %v1718_v53, %v1717_v14  ;;  %v3148_v21 = vunpack.i.h.bf16 %v3146_v13 }
 0x162   : > { %3370 = vrot.lane.b32.xlu0 %v4073_v48, %s3617_s20  ;;  %v4433_v49 = vpop.permute.xlu2 %3185  ;;  %2959 = vmatmul.msk.bf16.gmra.mxu3 %vm505_vm2, %v1866_v1  ;;  %v3147_v48 = vunpack.i.l.bf16 %v3146_v13  ;;  %v3008_v13 = vld [vmem:[%s5319_s3 + $0x60] sm:$0xff] }
 0x163   : > { %v4435_v19 = vpop.permute.xlu1 %3165 }
 0x164   : > { %v3161_v35 = vpop.permute.xlu0 %3160  ;;  %v1653_v28 = vsel %vm505_vm2, %v4005_v29, %v3147_v48  ;;  %v3167_v6 = vunpack.i.l.bf16 %v4435_v19 }
 0x165   : > { %v1686_v25 = vsel %vm1675_vm5, %v1653_v28, %v3152_v43  ;;  %v3162_v26 = vunpack.i.l.bf16 %v3161_v35 }
 0x168   : > { %3365 = vrot.lane.b32.xlu2 %v4109_v52, %s3619_s29  ;;  %2109 = vmatmul.bf16.gmra.mxu1 %v1849_v57  ;;  %v1654_v52 = vsel %vm505_vm2, %v4012_v38, %v3148_v21 }
 0x169   : > { %3390 = vrot.lane.b32.xlu1 %v4163_v18, %s3618_s21  ;;  %v1869_v18 = vpack.c.bf16 %v4316_v61, %v4314_v36  ;;  %v1687_v17 = vsel %vm1675_vm5, %v1654_v52, %v3153_v3 }
 0x16a   : > { %3385 = vrot.lane.b32.xlu0 %v4106_v39, %s3617_s20  ;;  %v4448_v31 = vpop.permute.xlu2 %3200  ;;  %v3157_v39 = vunpack.i.l.bf16 %v4408_v30  ;;  %v1720_v15 = vsel %vm1708_vm6, %v1687_v17, %v3158_v44  ;;  %v3163_v30 = vunpack.i.h.bf16 %v3161_v35  ;;  %v3005_v35 = vld [vmem:[%s5319_s3 + $0x48] sm:$0xff]  ;;  %v5446_v17 = vld [vmem:[#allocation44_spill] sm:$0xff] }
 0x16b   : > { %v4450_v10 = vpop.permute.xlu1 %3180 }
 0x16c   : > { %v4452_v24 = vpop.permute.xlu0 %3175  ;;  %v1719_v61 = vsel %vm1708_vm6, %v1686_v25, %v3157_v39  ;;  %v3183_v14 = vunpack.i.h.bf16 %v4450_v10  ;;  %v3182_v53 = vunpack.i.l.bf16 %v4450_v10  ;;  %v5445_v39 = vld [vmem:[#allocation30_spill] sm:$0xff] }
 0x16d   : > { %v3178_v12 = vunpack.i.h.bf16 %v4452_v24  ;;  %v3177_v32 = vunpack.i.l.bf16 %v4452_v24  ;;  %v4547_v24 = vld [vmem:[#allocation2 + $0x184] sm:$0xff] }
 0x16f   : > { %v1657_v25 = vsel %vm505_vm2, %v5445_v39, %v3177_v32  ;;  %v5451_v32 = vld [vmem:[#allocation48_spill] sm:$0xff] }
 0x170   : > { %3380 = vrot.lane.b32.xlu2 %v4140_v16, %s3619_s29  ;;  %v3011_v16 = vld [vmem:[%s5319_s3 + $0x78] sm:$0xff] }
 0x171   : > { %3405 = vrot.lane.b32.xlu1 %v4197_v46, %s3618_s21  ;;  %2170 = vmatpush.bf16.msrb.mxu2 %v3011_v16  ;;  %v1852_v46 = vpack.c.bf16 %v1720_v15, %v1719_v61  ;;  %v5447_v16 = vld [vmem:[#allocation43_spill] sm:$0xff] }
 0x172   : > { %3400 = vrot.lane.b32.xlu0 %v4137_v27, %s3617_s20  ;;  %v4470_v29 = vpop.permute.xlu2 %3215  ;;  %2960 = vmatmul.msk.bf16.gmra.mxu3 %vm505_vm2, %v1869_v18  ;;  %v3010_v27 = vld [vmem:[%s5319_s3 + $0x70] sm:$0xff]  ;;  %v5444_v18 = vld [vmem:[#allocation31_spill] sm:$0xff] }
 0x173   : > { %v4472_v38 = vpop.permute.xlu1 %3195  ;;  %v1658_v44 = vsel %vm505_vm2, %v5444_v18, %v3178_v12 }
 0x174   : > { %v4478_v36 = vpop.permute.xlu0 %3190  ;;  %v3197_v18 = vunpack.i.l.bf16 %v4472_v38 }
 0x175   : > { %2171 = vmatpush.bf16.msrb.mxu2 %v3010_v27  ;;  %v3188_v27 = vunpack.i.h.bf16 %v4433_v49 }
 0x178   : > { %3395 = vrot.lane.b32.xlu2 %v4173_v47, %s3619_s29  ;;  %2114 = vmatmul.bf16.gmra.mxu1 %v1852_v46  ;;  %v3168_v47 = vunpack.i.h.bf16 %v4435_v19  ;;  %v5443_v19 = vld [vmem:[#allocation46_spill] sm:$0xff] }
 0x179   : > { %3420 = vrot.lane.b32.xlu1 %v4227_v40, %s3618_s21  ;;  %v1656_v40 = vsel %vm505_vm2, %v4066_v34, %v3163_v30  ;;  %2172 = vmatpush.bf16.msrb.mxu2 %v3009_v33  ;;  %v3004_v46 = vld [vmem:[%s5319_s3 + $0x40] sm:$0xff]  ;;  %v3187_v30 = vunpack.i.l.bf16 %v4433_v49  ;;  %v5449_v49 = vld [vmem:[#allocation51_spill] sm:$0xff] }
 0x17a   : > { %3415 = vrot.lane.b32.xlu0 %v4167_v0, %s3617_s20  ;;  %v4491_v56 = vpop.permute.xlu2 %3230  ;;  %v1655_v0 = vsel %vm505_vm2, %v4057_v20, %v3162_v26  ;;  %v1689_v1 = vsel %vm1675_vm5, %v1656_v40, %v3168_v47  ;;  %v5448_v47 = vld [vmem:[#allocation52_spill] sm:$0xff]  ;;  %v1691_v40 = vsel %vm1675_vm5, %v1658_v44, %v3183_v14 }
 0x17b   : > { %v4493_v45 = vpop.permute.xlu1 %3210  ;;  %v1688_v34 = vsel %vm1675_vm5, %v1655_v0, %v3167_v6  ;;  %v1722_v42 = vsel %vm1708_vm6, %v1689_v1, %v3173_v51  ;;  %v1690_v6 = vsel %vm1675_vm5, %v1657_v25, %v3182_v53  ;;  %v4593_v53 = vpop.f32.mrf.mxu3 }
 0x17c   : > { %v4498_v5 = vpop.permute.xlu0 %3205  ;;  %v1721_v41 = vsel %vm1708_vm6, %v1688_v34, %v3172_v62 }
 0x17d   : > { %2173 = vmatpush.bf16.msrb.mxu2 %v3008_v13 }
 0x180   : > { %3410 = vrot.lane.b32.xlu2 %v4204_v23, %s3619_s29  ;;  %v3007_v23 = vld [vmem:[%s5319_s3 + $0x58] sm:$0xff] }
 0x181   : > { %3435 = vrot.lane.b32.xlu1 %v4256_v59, %s3618_s21  ;;  %v1855_v59 = vpack.c.bf16 %v1722_v42, %v1721_v41  ;;  %2174 = vmatpush.bf16.msrb.mxu2 %v3007_v23  ;;  %v1723_v23 = vsel %vm1708_vm6, %v1690_v6, %v3187_v30  ;;  %v1724_v41 = vsel %vm1708_vm6, %v1691_v40, %v3188_v27  ;;  %v5454_v27 = vld [vmem:[#allocation35_spill] sm:$0xff]  ;;  %v5457_v6 = vld [vmem:[#allocation53_spill] sm:$0xff] }
 0x182   : > { %3430 = vrot.lane.b32.xlu0 %v4201_v55, %s3617_s20  ;;  %v3246_v20 = vpop.permute.xlu2 %3245  ;;  %2961 = vmatmul.msk.bf16.gmra.mxu3 %vm505_vm2, %v1872_v7  ;;  %v3006_v55 = vld [vmem:[%s5319_s3 + $0x50] sm:$0xff] }
 0x183   : > { %v4521_v22 = vpop.permute.xlu1 %3225  ;;  %v3248_v3 = vunpack.i.h.bf16 %v3246_v20  ;;  %v3247_v43 = vunpack.i.l.bf16 %v3246_v20 }
 0x184   : > { %v4527_v11 = vpop.permute.xlu0 %3220 }
 0x185   : > { %2175 = vmatpush.bf16.msrb.mxu2 %v3006_v55 }
 0x188   : > { %3425 = vrot.lane.b32.xlu2 %v5442_v37, %s3619_s29  ;;  %2119 = vmatmul.bf16.gmra.mxu1 %v1855_v59  ;;  %v5450_v37 = vld [vmem:[#allocation49_spill] sm:$0xff] }
 0x189   : > { %3450 = vrot.lane.b32.xlu1 %v4292_v54, %s3618_s21  ;;  %v4549_v54 = vld [vmem:[#allocation2 + $0x18c] sm:$0xff]  ;;  %2176 = vmatpush.bf16.msrb.mxu2 %v3005_v35 }
 0x18a   : > { %3445 = vrot.lane.b32.xlu0 %v5443_v19, %s3617_s20  ;;  %v3261_v8 = vpop.permute.xlu2 %3260  ;;  %v1875_v15 = vpack.c.bf16 %v4549_v54, %v4547_v24 }
 0x18b   : > { %v3241_v60 = vpop.permute.xlu1 %3240  ;;  %v3263_v42 = vunpack.i.h.bf16 %v3261_v8 }
 0x18c   : > { %v3243_v57 = vunpack.i.h.bf16 %v3241_v60  ;;  %v3242_v21 = vunpack.i.l.bf16 %v3241_v60  ;;  %v3236_v48 = vpop.permute.xlu0 %3235  ;;  %v1858_v60 = vpack.c.bf16 %v1724_v41, %v1723_v23 }
 0x18d   : > { %v3238_v52 = vunpack.i.h.bf16 %v3236_v48  ;;  %v3237_v28 = vunpack.i.l.bf16 %v3236_v48  ;;  %2177 = vmatpush.bf16.msrb.mxu2 %v3004_v46  ;;  %v3193_v48 = vunpack.i.h.bf16 %v4478_v36 }
 0x18f   : > { %v1666_v10 = vsel %vm505_vm2, %v5446_v17, %v3238_v52  ;;  %v1665_v61 = vsel %vm505_vm2, %v5447_v16, %v3237_v28  ;;  %v3198_v28 = vunpack.i.h.bf16 %v4472_v38  ;;  %v1660_v30 = vsel %vm505_vm2, %v5454_v27, %v3193_v48  ;;  %v5456_v38 = vld [vmem:[#allocation54_spill] sm:$0xff] }
 0x190   : > { %v1698_v26 = vsel %vm1675_vm5, %v1665_v61, %v3242_v21  ;;  %v1699_v33 = vsel %vm1675_vm5, %v1666_v10, %v3243_v57  ;;  %3440 = vrot.lane.b32.xlu2 %v5448_v47, %s3619_s29  ;;  %v5452_v57 = vld [vmem:[#allocation57_spill] sm:$0xff]  ;;  %v4674_v27 = vld [vmem:[#allocation2 + $0x182] sm:$0xff] }
 0x191   : > { %v4573_v0 = vsel %vm1708_vm6, %v1698_v26, %v3247_v43  ;;  %v4576_v7 = vsel %vm1708_vm6, %v1699_v33, %v3248_v3  ;;  %3465 = vrot.lane.b32.xlu1 %v4320_v4, %s3618_s21  ;;  %v3262_v4 = vunpack.i.l.bf16 %v3261_v8  ;;  %v3192_v3 = vunpack.i.l.bf16 %v4478_v36  ;;  %v5453_v43 = vld [vmem:[#allocation56_spill] sm:$0xff]  ;;  %v4613_v10 = vld [vmem:[#allocation2 + $0x19c] sm:$0xff]  ;;  %v4615_v36 = vld [vmem:[#allocation2 + $0x1a4] sm:$0xff] }
 0x192   : > { %3460 = vrot.lane.b32.xlu0 %v5449_v49, %s3617_s20  ;;  %v1870_v13 = vpack.c.bf16 %v4576_v7, %v4573_v0  ;;  %v3276_v51 = vpop.permute.xlu2 %3275  ;;  %2962 = vmatmul.msk.bf16.gmra.mxu3 %vm505_vm2, %v1875_v15  ;;  %v5455_v26 = vld [vmem:[#allocation34_spill] sm:$0xff]  ;;  %v1878_v49 = vpack.c.bf16 %v4615_v36, %v4613_v10  ;;  %v1693_v41 = vsel %vm1675_vm5, %v1660_v30, %v3198_v28  ;;  %v5460_v28 = vld [vmem:[#allocation59_spill] sm:$0xff] }
 0x193   : > { %v3256_v62 = vpop.permute.xlu1 %3255  ;;  %v3278_v44 = vunpack.i.h.bf16 %v3276_v51  ;;  %v3277_v39 = vunpack.i.l.bf16 %v3276_v51  ;;  %v1659_v33 = vsel %vm505_vm2, %v5455_v26, %v3192_v3  ;;  %v3203_v51 = vunpack.i.h.bf16 %v4448_v31  ;;  %v4678_v30 = vld [vmem:[#allocation2 + $0x18a] sm:$0xff]  ;;  %v5478_v7 = vld [vmem:[#allocation22_spill] sm:$0xff] }
 0x194   : > { %v3258_v34 = vunpack.i.h.bf16 %v3256_v62  ;;  %v3257_v1 = vunpack.i.l.bf16 %v3256_v62  ;;  %v3251_v20 = vpop.permute.xlu0 %3250  ;;  %v3202_v62 = vunpack.i.l.bf16 %v4448_v31  ;;  %v1692_v23 = vsel %vm1675_vm5, %v1659_v33, %v3197_v18  ;;  %v5459_v31 = vld [vmem:[#allocation60_spill] sm:$0xff]  ;;  %v808_v33 = vld [vmem:[#allocation2 + $0x1b8] sm:$0xff] }
 0x195   : > { %v3253_v59 = vunpack.i.h.bf16 %v3251_v20  ;;  %v3252_v55 = vunpack.i.l.bf16 %v3251_v20  ;;  %v5458_v20 = vld [vmem:[#allocation61_spill] sm:$0xff]  ;;  %v807_v26 = vld [vmem:[#allocation2 + $0x1b0] sm:$0xff] }
 0x197   : > { %v1668_v12 = vsel %vm505_vm2, %v5450_v37, %v3253_v59  ;;  %v1667_v19 = vsel %vm505_vm2, %v5451_v32, %v3252_v55  ;;  %v4647_v55 = vpop.f32.mrf.mxu3 }
 0x198   : > { %v1700_v35 = vsel %vm1675_vm5, %v1667_v19, %v3257_v1  ;;  %v1701_v14 = vsel %vm1675_vm5, %v1668_v12, %v3258_v34  ;;  %3455 = vrot.lane.b32.xlu2 %v5452_v57, %s3619_s29  ;;  %2124 = vmatmul.bf16.gmra.mxu1 %v1858_v60  ;;  %v1725_v60 = vsel %vm1708_vm6, %v1692_v23, %v3202_v62  ;;  %v5462_v62 = vld [vmem:[#allocation38_spill] sm:$0xff]  ;;  %v714_v23 = vld [vmem:[#allocation2 + $0x32] sm:$0xff] }
 0x199   : > { %v4598_v8 = vsel %vm1708_vm6, %v1700_v35, %v3262_v4  ;;  %v4601_v21 = vsel %vm1708_vm6, %v1701_v14, %v3263_v42  ;;  %3480 = vrot.lane.b32.xlu1 %v4349_v50, %s3618_s21  ;;  %v1726_v35 = vsel %vm1708_vm6, %v1693_v41, %v3203_v51  ;;  %v715_v41 = vld [vmem:[#allocation2 + $0x3a] sm:$0xff] }
 0x19a   : > { %3475 = vrot.lane.b32.xlu0 %v5453_v43, %s3617_s20  ;;  %v1873_v52 = vpack.c.bf16 %v4601_v21, %v4598_v8  ;;  %v3291_v16 = vpop.permute.xlu2 %3290  ;;  %v5484_v21 = vld [vmem:[#allocation12_spill] sm:$0xff] }
 0x19b   : > { %v3271_v25 = vpop.permute.xlu1 %3270  ;;  %v3293_v37 = vunpack.i.h.bf16 %v3291_v16  ;;  %v3292_v12 = vunpack.i.l.bf16 %v3291_v16 }
 0x19c   : > { %v3266_v17 = vpop.permute.xlu0 %3265  ;;  %v3273_v50 = vunpack.i.h.bf16 %v3271_v25  ;;  %v3272_v61 = vunpack.i.l.bf16 %v3271_v25  ;;  %v1861_v25 = vpack.c.bf16 %v1726_v35, %v1725_v60  ;;  %v3217_v35 = vunpack.i.l.bf16 %v4470_v29 }
 0x19d   : > { %v3268_v15 = vunpack.i.h.bf16 %v3266_v17  ;;  %v3267_v46 = vunpack.i.l.bf16 %v3266_v17 }
 0x19f   : > { %v1670_v47 = vsel %vm505_vm2, %v5456_v38, %v3268_v15  ;;  %v1669_v40 = vsel %vm505_vm2, %v5457_v6, %v3267_v46  ;;  %v3208_v15 = vunpack.i.h.bf16 %v4498_v5  ;;  %v3207_v46 = vunpack.i.l.bf16 %v4498_v5 }
 0x1a0   : > { %v1702_v34 = vsel %vm1675_vm5, %v1669_v40, %v3272_v61  ;;  %v1703_v1 = vsel %vm1675_vm5, %v1670_v47, %v3273_v50  ;;  %3470 = vrot.lane.b32.xlu2 %v5458_v20, %s3619_s29  ;;  %v3218_v38 = vunpack.i.h.bf16 %v4470_v29  ;;  %v3213_v47 = vunpack.i.h.bf16 %v4493_v45 }
 0x1a1   : > { %v4636_v42 = vsel %vm1708_vm6, %v1702_v34, %v3277_v39  ;;  %v4639_v4 = vsel %vm1708_vm6, %v1703_v1, %v3278_v44  ;;  %3495 = vrot.lane.b32.xlu1 %v4361_v63, %s3618_s21  ;;  %v5461_v44 = vld [vmem:[#allocation58_spill] sm:$0xff]  ;;  %v3212_v5 = vunpack.i.l.bf16 %v4493_v45  ;;  %v1662_v34 = vsel %vm505_vm2, %v5462_v62, %v3208_v15  ;;  %v5463_v1 = vld [vmem:[#allocation37_spill] sm:$0xff] }
 0x1a2   : > { %3490 = vrot.lane.b32.xlu0 %v5459_v31, %s3617_s20  ;;  %v1876_v59 = vpack.c.bf16 %v4639_v4, %v4636_v42  ;;  %2963 = vmatmul.msk.bf16.gmra.mxu3 %vm505_vm2, %v1878_v49  ;;  %v3306_v43 = vpop.permute.xlu2 %3305  ;;  %v1661_v20 = vsel %vm505_vm2, %v5463_v1, %v3207_v46  ;;  %v3524_v45 = vpack.i.bf16 %v808_v33, %v807_v26  ;;  %v4705_v15 = vld [vmem:[#allocation2 + $0x19a] sm:$0xff]  ;;  %v4707_v46 = vld [vmem:[#allocation2 + $0x1a2] sm:$0xff] }
 0x1a3   : > { %v3286_v32 = vpop.permute.xlu1 %3285  ;;  %v5465_v62 = vld [vmem:[#allocation62_spill] sm:$0xff]  ;;  %v3514_v1 = vpack.i.bf16 %v4707_v46, %v4705_v15  ;;  %v5490_v4 = vld [vmem:[#allocation29_spill] sm:$0xff] }
 0x1a4   : > { %v3281_v19 = vpop.permute.xlu0 %3280  ;;  %v3288_v14 = vunpack.i.h.bf16 %v3286_v32  ;;  %v3287_v63 = vunpack.i.l.bf16 %v3286_v32  ;;  %v3307_v32 = vunpack.i.l.bf16 %v3306_v43 }
 0x1a5   : > { %v3283_v57 = vunpack.i.h.bf16 %v3281_v19  ;;  %v3282_v48 = vunpack.i.l.bf16 %v3281_v19  ;;  %v4652_v3 = vpop.f32.mrf.mxu1 }
 0x1a7   : > { %v1672_v18 = vsel %vm505_vm2, %v5460_v28, %v3283_v57  ;;  %v1671_v39 = vsel %vm505_vm2, %v5461_v44, %v3282_v48  ;;  %v1695_v44 = vsel %vm1675_vm5, %v1662_v34, %v3213_v47 }
 0x1a8   : > { %v1704_v17 = vsel %vm1675_vm5, %v1671_v39, %v3287_v63  ;;  %v1705_v16 = vsel %vm1675_vm5, %v1672_v18, %v3288_v14  ;;  %3485 = vrot.lane.b32.xlu2 %v4367_v58, %s3619_s29  ;;  %2129 = vmatmul.bf16.gmra.mxu1 %v1861_v25  ;;  %v3519_v14 = vpack.i.bf16 %v4549_v54, %v4547_v24  ;;  %v809_v24 = vld [vmem:[#allocation2 + $0x1c8] sm:$0xff]  ;;  %v810_v54 = vld [vmem:[#allocation2 + $0x1d0] sm:$0xff] }
 0x1a9   : > { %v4663_v50 = vsel %vm1708_vm6, %v1704_v17, %v3292_v12  ;;  %v4666_v61 = vsel %vm1708_vm6, %v1705_v16, %v3293_v37  ;;  %3510 = vrot.lane.b32.xlu1 %v4392_v2, %s3618_s21  ;;  %v3499_v37 = vpack.i.bf16 %v4678_v30, %v4674_v27  ;;  %v3308_v12 = vunpack.i.h.bf16 %v3306_v43 }
 0x1aa   : > { %3505 = vrot.lane.b32.xlu0 %v4365_v9, %s3617_s20  ;;  %v1879_v58 = vpack.c.bf16 %v4666_v61, %v4663_v50  ;;  %v3331_v48 = vpop.permute.xlu2 %3330  ;;  %v1694_v18 = vsel %vm1675_vm5, %v1661_v20, %v3212_v5  ;;  %v1728_v33 = vsel %vm1708_vm6, %v1695_v44, %v3218_v38  ;;  %v3534_v38 = vpack.i.bf16 %v4615_v36, %v4613_v10  ;;  %v5496_v61 = vld [vmem:[#allocation36_spill] sm:$0xff] }
 0x1ab   : > { %v3301_v6 = vpop.permute.xlu1 %3300  ;;  %v3333_v39 = vunpack.i.h.bf16 %v3331_v48  ;;  %v3332_v25 = vunpack.i.l.bf16 %v3331_v48  ;;  %v1727_v26 = vsel %vm1708_vm6, %v1694_v18, %v3217_v35  ;;  %v3228_v35 = vunpack.i.h.bf16 %v4521_v22 }
 0x1ac   : > { %v3296_v2 = vpop.permute.xlu0 %3295  ;;  %v3303_v40 = vunpack.i.h.bf16 %v3301_v6  ;;  %v3302_v49 = vunpack.i.l.bf16 %v3301_v6  ;;  %v1864_v20 = vpack.c.bf16 %v1728_v33, %v1727_v26 }
 0x1ad   : > { %v3298_v9 = vunpack.i.h.bf16 %v3296_v2  ;;  %v3297_v51 = vunpack.i.l.bf16 %v3296_v2  ;;  %v4687_v31 = vpop.f32.mrf.mxu1 }
 0x1af   : > { %v1742_v19 = vsel %vm505_vm2, %v715_v41, %v3298_v9  ;;  %v1741_v60 = vsel %vm505_vm2, %v714_v23, %v3297_v51  ;;  %v5464_v9 = vld [vmem:[#allocation63_spill] sm:$0xff] }
 0x1b0   : > { %v1773_v63 = vsel %vm1675_vm5, %v1741_v60, %v3302_v49  ;;  %v1774_v57 = vsel %vm1675_vm5, %v1742_v19, %v3303_v40  ;;  %3500 = vrot.lane.b32.xlu2 %v3499_v37, %s3619_s29  ;;  %v3539_v49 = vpack.i.bf16 %v810_v54, %v809_v24  ;;  %v839_v37 = vld [vmem:[#allocation2 + $0x1b2] sm:$0xff]  ;;  %v3223_v19 = vunpack.i.h.bf16 %v4527_v11 }
 0x1b1   : > { %v1805_v28 = vsel %vm1708_vm6, %v1773_v63, %v3307_v32  ;;  %v1806_v43 = vsel %vm1708_vm6, %v1774_v57, %v3308_v12  ;;  %3525 = vrot.lane.b32.xlu1 %v3524_v45, %s3618_s21  ;;  %v840_v45 = vld [vmem:[#allocation2 + $0x1ba] sm:$0xff]  ;;  %v3222_v60 = vunpack.i.l.bf16 %v4527_v11  ;;  %v5467_v24 = vld [vmem:[#allocation40_spill] sm:$0xff] }
 0x1b2   : > { %3520 = vrot.lane.b32.xlu0 %v3519_v14, %s3617_s20  ;;  %v1838_v29 = vpack.c.bf16 %v1806_v43, %v1805_v28  ;;  %v3336_v36 = vpop.permute.xlu2 %3335  ;;  %v3227_v14 = vunpack.i.l.bf16 %v4521_v22  ;;  %v3529_v48 = vpack.i.bf16 %v840_v45, %v839_v37  ;;  %v5466_v11 = vld [vmem:[#allocation41_spill] sm:$0xff] }
 0x1b3   : > { %v3316_v17 = vpop.permute.xlu1 %3315  ;;  %v1663_v54 = vsel %vm505_vm2, %v5467_v24, %v3222_v60  ;;  %v3337_v26 = vunpack.i.l.bf16 %v3336_v36 }
 0x1b4   : > { %v3311_v16 = vpop.permute.xlu0 %3310  ;;  %2178 = vmatmul.bf16.vlgmr.msrb.gmra.mxu2 %v1838_v29  ;;  %v3318_v47 = vunpack.i.h.bf16 %v3316_v17  ;;  %v3317_v5 = vunpack.i.l.bf16 %v3316_v17  ;;  %v1664_v29 = vsel %vm505_vm2, %v5466_v11, %v3223_v19  ;;  %v5470_v11 = vld [vmem:[#allocation10_spill] sm:$0xff] }
 0x1b5   : > { %v3313_v6 = vunpack.i.h.bf16 %v3311_v16  ;;  %v3312_v2 = vunpack.i.l.bf16 %v3311_v16  ;;  %v4711_v40 = vpop.f32.mrf.mxu1  ;;  %v3338_v16 = vunpack.i.h.bf16 %v3336_v36 }
 0x1b7   : > { %v1674_v51 = vsel %vm505_vm2, %v5464_v9, %v3313_v6  ;;  %v1673_v34 = vsel %vm505_vm2, %v5465_v62, %v3312_v2  ;;  %v1697_v62 = vsel %vm1675_vm5, %v1664_v29, %v3228_v35  ;;  %v5471_v29 = vld [vmem:[#allocation9_spill] sm:$0xff] }
 0x1b8   : > { %v1706_v23 = vsel %vm1675_vm5, %v1673_v34, %v3317_v5  ;;  %v1707_v41 = vsel %vm1675_vm5, %v1674_v51, %v3318_v47  ;;  %3515 = vrot.lane.b32.xlu2 %v3514_v1, %s3619_s29  ;;  %2134 = vmatmul.bf16.gmra.mxu1 %v1864_v20  ;;  %v3233_v47 = vunpack.i.h.bf16 %v4491_v56  ;;  %v3232_v5 = vunpack.i.l.bf16 %v4491_v56  ;;  %v5468_v34 = vld [vmem:[#allocation7_spill] sm:$0xff]  ;;  %v5469_v1 = vld [vmem:[#allocation6_spill] sm:$0xff] }
 0x1b9   : > { %v4725_v12 = vsel %vm1708_vm6, %v1706_v23, %v3332_v25  ;;  %v4728_v32 = vsel %vm1708_vm6, %v1707_v41, %v3333_v39  ;;  %3540 = vrot.lane.b32.xlu1 %v3539_v49, %s3618_s21  ;;  %v716_v39 = vld [vmem:[#allocation2 + $0x4a] sm:$0xff]  ;;  %v717_v25 = vld [vmem:[#allocation2 + $0x52] sm:$0xff]  ;;  %v1696_v51 = vsel %vm1675_vm5, %v1663_v54, %v3227_v14  ;;  %s2790_s21 = sshll.u32 %s5155_s23, 4  ;;  %s2791_s21 = int_to_ptr.vmem [resolvable:$true] %s2790_s21 }
 0x1ba   : > { %3535 = vrot.lane.b32.xlu0 %v3534_v38, %s3617_s20  ;;  %v1882_v10 = vpack.c.bf16 %v4728_v32, %v4725_v12  ;;  %v841_v20 = vld [vmem:[#allocation2 + $0x1ca] sm:$0xff]  ;;  %v842_v38 = vld [vmem:[#allocation2 + $0x1d2] sm:$0xff]  ;;  %v1729_v41 = vsel %vm1708_vm6, %v1696_v51, %v3232_v5  ;;  %v1730_v37 = vsel %vm1708_vm6, %v1697_v62, %v3233_v47  ;;  %s2789_s20 = scalar_lea.hbm %s5323_s7, %s3016_s8 }
 0x1bb   : > { %v3326_v63 = vpop.permute.xlu1 %3325  ;;  %v3544_v36 = vpack.i.bf16 %v842_v38, %v841_v20  ;;  %v1867_v14 = vpack.c.bf16 %v1730_v37, %v1729_v41  ;;  %v5473_v5 = vld [vmem:[#allocation19_spill] sm:$0xff]  ;;  %v5475_v41 = vld [vmem:[#allocation13_spill] sm:$0xff] }
 0x1bc   : > { %v3321_v57 = vpop.permute.xlu0 %3320  ;;  %v3328_v28 = vunpack.i.h.bf16 %v3326_v63  ;;  %v3327_v43 = vunpack.i.l.bf16 %v3326_v63  ;;  %v721_v20 = vld [vmem:[#allocation2 + $0x82] sm:$0xff]  ;;  %v844_v32 = vld [vmem:[#allocation2 + $0x6c] sm:$0xff] }
 0x1bd   : > { %v3323_v18 = vunpack.i.h.bf16 %v3321_v57  ;;  %v3322_v44 = vunpack.i.l.bf16 %v3321_v57  ;;  %v4742_v17 = vpop.f32.mrf.mxu1  ;;  %v843_v12 = vld [vmem:[#allocation2 + $0x64] sm:$0xff] }
 0x1bf   : > { %v1744_v22 = vsel %vm505_vm2, %v717_v25, %v3323_v18  ;;  %v1743_v33 = vsel %vm505_vm2, %v716_v39, %v3322_v44  ;;  %v3351_v44 = vpop.permute.xlu2 %3350 }
 0x1c0   : > { %v1775_v6 = vsel %vm1675_vm5, %v1743_v33, %v3327_v43  ;;  %v1776_v2 = vsel %vm1675_vm5, %v1744_v22, %v3328_v28  ;;  %3530 = vrot.lane.b32.xlu2 %v3529_v48, %s3619_s29  ;;  %v718_v48 = vld [vmem:[#allocation2 + $0x62] sm:$0xff]  ;;  %v719_v28 = vld [vmem:[#allocation2 + $0x6a] sm:$0xff]  ;;  %v3353_v39 = vunpack.i.h.bf16 %v3351_v44  ;;  %v3352_v25 = vunpack.i.l.bf16 %v3351_v44 }
 0x1c1   : > { %v1807_v49 = vsel %vm1708_vm6, %v1775_v6, %v3337_v26  ;;  %v1808_v9 = vsel %vm1708_vm6, %v1776_v2, %v3338_v16  ;;  %2587 = vrot.lane.b32.xlu1 %v5468_v34, %s3619_s29  ;;  %v5472_v33 = vld [vmem:[#allocation8_spill] sm:$0xff] }
 0x1c2   : > { %2585 = vrot.lane.b32.xlu0 %v5469_v1, %s3619_s29  ;;  %v1841_v56 = vpack.c.bf16 %v1808_v9, %v1807_v49  ;;  %v5474_v6 = vld [vmem:[#allocation16_spill] sm:$0xff] }
 0x1c3   : > { %v3346_v45 = vpop.permute.xlu1 %3345 }
 0x1c4   : > { %v3341_v23 = vpop.permute.xlu0 %3340  ;;  %2183 = vmatmul.bf16.gmra.mxu2 %v1841_v56  ;;  %v3348_v63 = vunpack.i.h.bf16 %v3346_v45  ;;  %v3347_v57 = vunpack.i.l.bf16 %v3346_v45  ;;  %v720_v56 = vld [vmem:[#allocation2 + $0x7a] sm:$0xff]  ;;  %v5476_v45 = vld [vmem:[#allocation11_spill] sm:$0xff] }
 0x1c5   : > { %v3343_v19 = vunpack.i.h.bf16 %v3341_v23  ;;  %v3342_v60 = vunpack.i.l.bf16 %v3341_v23  ;;  %v4761_v35 = vpop.f32.mrf.mxu1 }
 0x1c7   : > { %v1746_v43 = vsel %vm505_vm2, %v719_v28, %v3343_v19  ;;  %v1745_v18 = vsel %vm505_vm2, %v718_v48, %v3342_v60  ;;  %v3366_v37 = vpop.permute.xlu2 %3365  ;;  %v5477_v19 = vld [vmem:[#allocation25_spill] sm:$0xff]  ;;  %v5479_v28 = vld [vmem:[#allocation20_spill] sm:$0xff] }
 0x1c8   : > { %3545 = vrot.lane.b32.xlu2 %v3544_v36, %s3619_s29  ;;  %2139 = vmatmul.bf16.gmra.mxu1 %v1867_v14  ;;  %v1777_v24 = vsel %vm1675_vm5, %v1745_v18, %v3347_v57  ;;  %v1778_v54 = vsel %vm1675_vm5, %v1746_v43, %v3348_v63  ;;  %v3368_v14 = vunpack.i.h.bf16 %v3366_v37  ;;  %v3367_v63 = vunpack.i.l.bf16 %v3366_v37  ;;  %v5480_v43 = vld [vmem:[#allocation17_spill] sm:$0xff] }
 0x1c9   : > { %2593 = vrot.lane.b32.xlu1 %v5470_v11, %s3619_s29  ;;  %v1809_v26 = vsel %vm1708_vm6, %v1777_v24, %v3352_v25  ;;  %v1810_v22 = vsel %vm1708_vm6, %v1778_v54, %v3353_v39  ;;  %v722_v25 = vld [vmem:[#allocation2 + $0x92] sm:$0xff] }
 0x1ca   : > { %2591 = vrot.lane.b32.xlu0 %v5471_v29, %s3619_s29  ;;  %v1844_v2 = vpack.c.bf16 %v1810_v22, %v1809_v26  ;;  %v723_v26 = vld [vmem:[#allocation2 + $0x9a] sm:$0xff] }
 0x1cb   : > { %v3361_v49 = vpop.permute.xlu1 %3360 }
 0x1cc   : > { %v3356_v47 = vpop.permute.xlu0 %3355  ;;  %v3363_v34 = vunpack.i.h.bf16 %v3361_v49  ;;  %v3362_v1 = vunpack.i.l.bf16 %v3361_v49 }
 0x1cd   : > { %v4772_v16 = vpop.f32.mrf.mxu1  ;;  %v3358_v9 = vunpack.i.h.bf16 %v3356_v47  ;;  %v3357_v51 = vunpack.i.l.bf16 %v3356_v47  ;;  %v5481_v47 = vld [vmem:[#allocation14_spill] sm:$0xff] }
 0x1cf   : > { %v1748_v38 = vsel %vm505_vm2, %v721_v20, %v3358_v9  ;;  %v1747_v23 = vsel %vm505_vm2, %v720_v56, %v3357_v51  ;;  %v5485_v20 = vld [vmem:[#allocation27_spill] sm:$0xff] }
 0x1d0   : > { %2589 = vrot.lane.b32.xlu2 %v5472_v33, %s3619_s29  ;;  %v1779_v60 = vsel %vm1675_vm5, %v1747_v23, %v3362_v1  ;;  %v1780_v36 = vsel %vm1675_vm5, %v1748_v38, %v3363_v34  ;;  %v5486_v38 = vld [vmem:[#allocation24_spill] sm:$0xff] }
 0x1d1   : > { %2599 = vrot.lane.b32.xlu1 %v5473_v5, %s3619_s29  ;;  %v1811_v48 = vsel %vm1708_vm6, %v1779_v60, %v3367_v63  ;;  %v1812_v0 = vsel %vm1708_vm6, %v1780_v36, %v3368_v14  ;;  %v3381_v5 = vpop.permute.xlu2 %3380  ;;  %v724_v14 = vld [vmem:[#allocation2 + $0xaa] sm:$0xff]  ;;  %v725_v63 = vld [vmem:[#allocation2 + $0xb2] sm:$0xff] }
 0x1d2   : > { %2597 = vrot.lane.b32.xlu0 %v5474_v6, %s3619_s29  ;;  %v1847_v18 = vpack.c.bf16 %v1812_v0, %v1811_v48  ;;  %v5482_v6 = vld [vmem:[#allocation18_spill] sm:$0xff]  ;;  %v3383_v51 = vunpack.i.h.bf16 %v3381_v5  ;;  %v3382_v34 = vunpack.i.l.bf16 %v3381_v5 }
 0x1d3   : > { %v3376_v44 = vpop.permute.xlu1 %3375 }
 0x1d4   : > { %2188 = vmatmul.bf16.gmra.mxu2 %v1844_v2  ;;  %v3378_v54 = vunpack.i.h.bf16 %v3376_v44  ;;  %v3377_v39 = vunpack.i.l.bf16 %v3376_v44  ;;  %v5483_v2 = vld [vmem:[#allocation15_spill] sm:$0xff] }
 0x1d5   : > { %v4782_v62 = vpop.f32.mrf.mxu1 }
 0x1d8   : > { %2595 = vrot.lane.b32.xlu2 %v5475_v41, %s3619_s29  ;;  %2144 = vmatmul.bf16.gmra.mxu1 %v1870_v13  ;;  %v3371_v13 = vpop.permute.xlu0 %3370 }
 0x1d9   : > { %2605 = vrot.lane.b32.xlu1 %v5476_v45, %s3619_s29  ;;  %v3373_v11 = vunpack.i.h.bf16 %v3371_v13  ;;  %v3372_v29 = vunpack.i.l.bf16 %v3371_v13  ;;  %v3396_v13 = vpop.permute.xlu2 %3395 }
 0x1da   : > { %2603 = vrot.lane.b32.xlu0 %v5477_v19, %s3619_s29 }
 0x1db   : > { %v1750_v22 = vsel %vm505_vm2, %v723_v26, %v3373_v11  ;;  %v1749_v33 = vsel %vm505_vm2, %v722_v25, %v3372_v29  ;;  %v3391_v41 = vpop.permute.xlu1 %3390  ;;  %v3398_v11 = vunpack.i.h.bf16 %v3396_v13  ;;  %v3397_v29 = vunpack.i.l.bf16 %v3396_v13  ;;  %v5491_v25 = vld [vmem:[#allocation32_spill] sm:$0xff] }
 0x1dc   : > { %v1781_v49 = vsel %vm1675_vm5, %v1749_v33, %v3377_v39  ;;  %v1782_v9 = vsel %vm1675_vm5, %v1750_v22, %v3378_v54  ;;  %v3393_v60 = vunpack.i.h.bf16 %v3391_v41  ;;  %v3392_v36 = vunpack.i.l.bf16 %v3391_v41  ;;  %v5492_v26 = vld [vmem:[#allocation28_spill] sm:$0xff] }
 0x1dd   : > { %v4797_v57 = vpop.f32.mrf.mxu1  ;;  %v1813_v56 = vsel %vm1708_vm6, %v1781_v49, %v3382_v34  ;;  %v1814_v8 = vsel %vm1708_vm6, %v1782_v9, %v3383_v51  ;;  %v726_v9 = vld [vmem:[#allocation2 + $0xc2] sm:$0xff]  ;;  %v727_v51 = vld [vmem:[#allocation2 + $0xca] sm:$0xff] }
 0x1de   : > { %v1850_v23 = vpack.c.bf16 %v1814_v8, %v1813_v56  ;;  %v5493_v8 = vld [vmem:[#allocation26_spill] sm:$0xff] }
 0x1e0   : > { %2601 = vrot.lane.b32.xlu2 %v5478_v7, %s3619_s29  ;;  %v5487_v7 = vld [vmem:[#allocation21_spill] sm:$0xff] }
 0x1e1   : > { %2611 = vrot.lane.b32.xlu1 %v5479_v28, %s3619_s29  ;;  %v5488_v28 = vld [vmem:[#allocation23_spill] sm:$0xff] }
 0x1e2   : > { %2609 = vrot.lane.b32.xlu0 %v5480_v43, %s3619_s29  ;;  %v5489_v43 = vld [vmem:[#allocation33_spill] sm:$0xff] }
 0x1e3   : > { %v3406_v33 = vpop.permute.xlu1 %3405 }
 0x1e4   : > { %2193 = vmatmul.bf16.gmra.mxu2 %v1847_v18  ;;  %v3407_v49 = vunpack.i.l.bf16 %v3406_v33 }
 0x1e5   : > { %v4807_v24 = vpop.f32.mrf.mxu1 }
 0x1e8   : > { %2607 = vrot.lane.b32.xlu2 %v5481_v47, %s3619_s29  ;;  %2149 = vmatmul.bf16.gmra.mxu1 %v1873_v52  ;;  %v3386_v52 = vpop.permute.xlu0 %3385 }
 0x1e9   : > { %2617 = vrot.lane.b32.xlu1 %v5482_v6, %s3619_s29  ;;  %v3388_v37 = vunpack.i.h.bf16 %v3386_v52  ;;  %v3387_v45 = vunpack.i.l.bf16 %v3386_v52  ;;  %v5494_v52 = vld [vmem:[#allocation42_spill] sm:$0xff] }
 0x1ea   : > { %2615 = vrot.lane.b32.xlu0 %v5483_v2, %s3619_s29  ;;  %v3408_v2 = vunpack.i.h.bf16 %v3406_v33 }
 0x1eb   : > { %v1752_v48 = vsel %vm505_vm2, %v725_v63, %v3388_v37  ;;  %v1751_v0 = vsel %vm505_vm2, %v724_v14, %v3387_v45  ;;  %v5498_v14 = vld [vmem:[#allocation50_spill] sm:$0xff] }
 0x1ec   : > { %v1783_v18 = vsel %vm1675_vm5, %v1751_v0, %v3392_v36  ;;  %v1784_v44 = vsel %vm1675_vm5, %v1752_v48, %v3393_v60  ;;  %v5497_v36 = vld [vmem:[#allocation55_spill] sm:$0xff]  ;;  %v3421_v48 = vpop.permute.xlu1 %3420 }
 0x1ed   : > { %v4822_v1 = vpop.f32.mrf.mxu1  ;;  %v1815_v39 = vsel %vm1708_vm6, %v1783_v18, %v3397_v29  ;;  %v1816_v42 = vsel %vm1708_vm6, %v1784_v44, %v3398_v11  ;;  %v728_v18 = vld [vmem:[#allocation2 + $0xda] sm:$0xff]  ;;  %v729_v44 = vld [vmem:[#allocation2 + $0xe2] sm:$0xff] }
 0x1ee   : > { %v1853_v22 = vpack.c.bf16 %v1816_v42, %v1815_v39  ;;  %v5499_v39 = vld [vmem:[#allocation45_spill] sm:$0xff] }
 0x1f0   : > { %2613 = vrot.lane.b32.xlu2 %v5484_v21, %s3619_s29  ;;  %v3411_v21 = vpop.permute.xlu2 %3410 }
 0x1f1   : > { %2623 = vrot.lane.b32.xlu1 %v5485_v20, %s3619_s29  ;;  %v5495_v20 = vld [vmem:[#allocation39_spill] sm:$0xff]  ;;  %v3413_v41 = vunpack.i.h.bf16 %v3411_v21  ;;  %v3412_v37 = vunpack.i.l.bf16 %v3411_v21 }
 0x1f2   : > { %2621 = vrot.lane.b32.xlu0 %v5486_v38, %s3619_s29 }
 0x1f4   : > { %2198 = vmatmul.bf16.gmra.mxu2 %v1850_v23 }
 0x1f5   : > { %v4832_v19 = vpop.f32.mrf.mxu1 }
 0x1f8   : > { %2619 = vrot.lane.b32.xlu2 %v5487_v7, %s3619_s29  ;;  %2154 = vmatmul.bf16.gmra.mxu1 %v1876_v59  ;;  %v3401_v59 = vpop.permute.xlu0 %3400  ;;  %v3426_v42 = vpop.permute.xlu2 %3425 }
 0x1f9   : > { %2629 = vrot.lane.b32.xlu1 %v5488_v28, %s3619_s29  ;;  %v3403_v47 = vunpack.i.h.bf16 %v3401_v59  ;;  %v3402_v5 = vunpack.i.l.bf16 %v3401_v59  ;;  %v3423_v28 = vunpack.i.h.bf16 %v3421_v48 }
 0x1fa   : > { %2627 = vrot.lane.b32.xlu0 %v5489_v43, %s3619_s29  ;;  %v3422_v43 = vunpack.i.l.bf16 %v3421_v48  ;;  %v4915_v48 = vld [vmem:[%s5320_s4] ss:$0 sm:$0xff] }
 0x1fb   : > { %v1754_v34 = vsel %vm505_vm2, %v727_v51, %v3403_v47  ;;  %v1753_v56 = vsel %vm505_vm2, %v726_v9, %v3402_v5 }
 0x1fc   : > { %v1785_v38 = vsel %vm1675_vm5, %v1753_v56, %v3407_v49  ;;  %v1786_v23 = vsel %vm1675_vm5, %v1754_v34, %v3408_v2  ;;  %v4897_v49 = vpop.f32.mrf.mxu3  ;;  %v1839_v56 = vpack.c.bf16 %v844_v32, %v843_v12 }
 0x1fd   : > { %v4847_v54 = vpop.f32.mrf.mxu1  ;;  %v1817_v60 = vsel %vm1708_vm6, %v1785_v38, %v3412_v37  ;;  %v1818_v50 = vsel %vm1708_vm6, %v1786_v23, %v3413_v41 }
 0x1fe   : > { %v1856_v63 = vpack.c.bf16 %v1818_v50, %v1817_v60 }
 0x200   : > { %2625 = vrot.lane.b32.xlu2 %v5490_v4, %s3619_s29  ;;  %v3441_v41 = vpop.permute.xlu2 %3440 }
 0x201   : > { %2635 = vrot.lane.b32.xlu1 %v5491_v25, %s3619_s29  ;;  %v3428_v25 = vunpack.i.h.bf16 %v3426_v42 }
 0x202   : > { %2633 = vrot.lane.b32.xlu0 %v5492_v26, %s3619_s29  ;;  %v3427_v26 = vunpack.i.l.bf16 %v3426_v42 }
 0x204   : > { %2203 = vmatmul.bf16.gmra.mxu2 %v1853_v22  ;;  %v4906_v50 = vpop.f32.mrf.mxu3 }
 0x205   : > { %v4857_v6 = vpop.f32.mrf.mxu1 }
 0x208   : > { %2631 = vrot.lane.b32.xlu2 %v5493_v8, %s3619_s29  ;;  %2159 = vmatmul.bf16.gmra.mxu1 %v1879_v58  ;;  %v3416_v58 = vpop.permute.xlu0 %3415 }
 0x209   : > { %2641 = vrot.lane.b32.xlu1 %v5494_v52, %s3619_s29  ;;  %v3418_v0 = vunpack.i.h.bf16 %v3416_v58  ;;  %v3417_v7 = vunpack.i.l.bf16 %v3416_v58  ;;  %v730_v52 = vld [vmem:[#allocation2 + $0xf2] sm:$0xff]  ;;  %v3442_v58 = vunpack.i.l.bf16 %v3441_v41 }
 0x20a   : > { %2639 = vrot.lane.b32.xlu0 %v5495_v20, %s3619_s29  ;;  %v731_v20 = vld [vmem:[#allocation2 + $0xfa] sm:$0xff] }
 0x20b   : > { %v1756_v11 = vsel %vm505_vm2, %v729_v44, %v3418_v0  ;;  %v1755_v29 = vsel %vm505_vm2, %v728_v18, %v3417_v7  ;;  %v2091_v44 = vadd.f32 %v4915_v48, %v4652_v3 }
 0x20c   : > { %v1787_v4 = vsel %vm1675_vm5, %v1755_v29, %v3422_v43  ;;  %v1788_v59 = vsel %vm1675_vm5, %v1756_v11, %v3423_v28  ;;  %v4921_v29 = vpop.f32.mrf.mxu3 }
 0x20d   : > { %v4872_v45 = vpop.f32.mrf.mxu1  ;;  %v1819_v33 = vsel %vm1708_vm6, %v1787_v4, %v3427_v26  ;;  %v1820_v47 = vsel %vm1708_vm6, %v1788_v59, %v3428_v25  ;;  %v732_v59 = vld [vmem:[#allocation2 + $0x10a] sm:$0xff]  ;;  %v733_v25 = vld [vmem:[#allocation2 + $0x112] sm:$0xff] }
 0x20e   : > { %v1859_v2 = vpack.c.bf16 %v1820_v47, %v1819_v33 }
 0x210   : > { %2637 = vrot.lane.b32.xlu2 %v5496_v61, %s3619_s29  ;;  %v3431_v5 = vpop.permute.xlu0 %3430  ;;  %v3443_v61 = vunpack.i.h.bf16 %v3441_v41 }
 0x211   : > { %2647 = vrot.lane.b32.xlu1 %v5497_v36, %s3619_s29  ;;  %v3433_v9 = vunpack.i.h.bf16 %v3431_v5  ;;  %v3432_v51 = vunpack.i.l.bf16 %v3431_v5  ;;  %v3456_v5 = vpop.permute.xlu2 %3455 }
 0x212   : > { %2645 = vrot.lane.b32.xlu0 %v5498_v14, %s3619_s29  ;;  %v3458_v12 = vunpack.i.h.bf16 %v3456_v5  ;;  %v3457_v32 = vunpack.i.l.bf16 %v3456_v5 }
 0x213   : > { %v1758_v38 = vsel %vm505_vm2, %v731_v20, %v3433_v9  ;;  %v1757_v23 = vsel %vm505_vm2, %v730_v52, %v3432_v51 }
 0x214   : > { %2208 = vmatmul.bf16.gmra.mxu2 %v1856_v63  ;;  %v4937_v52 = vpop.f32.mrf.mxu3 }
 0x215   : > { %v4882_v13 = vpop.f32.mrf.mxu1 }
 0x218   : > { %2643 = vrot.lane.b32.xlu2 %v5499_v39, %s3619_s29  ;;  %2164 = vmatmul.bf16.gmra.mxu1 %v1882_v10  ;;  %v3436_v10 = vpop.permute.xlu1 %3435  ;;  %v3446_v0 = vpop.permute.xlu0 %3445  ;;  %s2792_s29 = sshll.u32 %s2789_s20, 4  ;;  %s2793_s29 = int_to_ptr.hbm [resolvable:$true] %s2792_s29 }
 0x219   : > { %v3438_v8 = vunpack.i.h.bf16 %v3436_v10  ;;  %v3437_v21 = vunpack.i.l.bf16 %v3436_v10  ;;  %v3448_v43 = vunpack.i.h.bf16 %v3446_v0  ;;  %v3447_v18 = vunpack.i.l.bf16 %v3446_v0  ;;  %v734_v0 = vld [vmem:[#allocation2 + $0x122] sm:$0xff]  ;;  %s3566_s14 = sshra.s32 %s2793_s29, 4  ;;  %s3567_s14 = int_to_ptr.hbm [resolvable:$true] %s3566_s14 }
 0x21a   : > { %v2093_v10 = vadd.f32 %v4915_v48, %v4687_v31  ;;  %s3568_s15 = scalar_lea.hbm %s3567_s14, 256  ;;  %p3573_p0 = scmp.lt.s32.totalorder %s3567_s14, %s5323_s7 }
 0x21b   : > { %v1789_v37 = vsel %vm1675_vm5, %v1757_v23, %v3437_v21  ;;  %v1790_v60 = vsel %vm1675_vm5, %v1758_v38, %v3438_v8  ;;  %v1760_v33 = vsel %vm505_vm2, %v733_v25, %v3448_v43  ;;  %v1759_v47 = vsel %vm505_vm2, %v732_v59, %v3447_v18  ;;  %v3015_v23 = vld [vmem:[%s5321_s5 + $0x8] sm:$0xff]  ;;  %p3569_p11 = scmp.ne.s32.totalorder %s3567_s14, %s3568_s15  ;;  %p3574_p1 = scmp.lt.s32.totalorder %s3572_s18, %s3568_s15 }
 0x21c   : > { %v1821_v14 = vsel %vm1708_vm6, %v1789_v37, %v3442_v58  ;;  %v1822_v63 = vsel %vm1708_vm6, %v1790_v60, %v3443_v61  ;;  %v2096_v60 = vadd.f32 %v4915_v48, %v4711_v40  ;;  %2470 = vmatpush.bf16.msrb.mxu0 %v3015_v23  ;;  %3022 = vmatpush.bf16.msrb.mxu1 %v3015_v23 }
 0x21d   : > { %v4893_v22 = vpop.f32.mrf.mxu1  ;;  %v1862_v7 = vpack.c.bf16 %v1822_v63, %v1821_v14  ;;  %v2098_v25 = vadd.f32 %v4915_v48, %v4742_v17  ;;  %p3570_p12 = pnand %p3569_p11, %p3700_p5  ;;  %p3575_p2 = por %p3574_p1, %p3573_p0 }
 0x21f   : > { %p3571_p13 = pneg %p3570_p12 }
 0x220   : > { %v3451_v28 = vpop.permute.xlu1 %3450  ;;  %v3461_v20 = vpop.permute.xlu0 %3460 }
 0x221   : > { %v3453_v42 = vunpack.i.h.bf16 %v3451_v28  ;;  %v3452_v4 = vunpack.i.l.bf16 %v3451_v28  ;;  %v3463_v31 = vunpack.i.h.bf16 %v3461_v20  ;;  %v3462_v37 = vunpack.i.l.bf16 %v3461_v20  ;;  %p3576_p3 = pnand %p3575_p2, %p3571_p13 }
 0x223   : > { %v1792_v3 = vsel %vm1675_vm5, %v1760_v33, %v3453_v42  ;;  %v1761_v18 = vsel %vm505_vm2, %v734_v0, %v3462_v37 }
 0x224   : > { %2213 = vmatmul.bf16.gmra.mxu2 %v1859_v2  ;;  %v1791_v2 = vsel %vm1675_vm5, %v1759_v47, %v3452_v4  ;;  %v1824_v8 = vsel %vm1708_vm6, %v1792_v3, %v3458_v12 }
 0x225   : > { %v4899_v34 = vpop.f32.mrf.mxu1 }
 0x228   : > { %2950 = vmatmul.msk.bf16.vlgmr.msra.gmra.mxu1 %vm505_vm2, %v1839_v56  ;;  %v1823_v56 = vsel %vm1708_vm6, %v1791_v2, %v3457_v32  ;;  %v3466_v41 = vpop.permute.xlu1 %3465  ;;  %v3476_v32 = vpop.permute.xlu0 %3475 }
 0x229   : > { %v1865_v38 = vpack.c.bf16 %v1824_v8, %v1823_v56  ;;  %v3468_v14 = vunpack.i.h.bf16 %v3466_v41  ;;  %v3467_v63 = vunpack.i.l.bf16 %v3466_v41  ;;  %v3477_v23 = vunpack.i.l.bf16 %v3476_v32 }
 0x22a   : > { %v2101_v41 = vadd.f32 %v4915_v48, %v4761_v35 }
 0x22b   : > { %v1793_v42 = vsel %vm1675_vm5, %v1761_v18, %v3467_v63 }
 0x22d   : > { %v4908_v36 = vpop.f32.mrf.mxu1 }
 0x230   : > { %v3481_v17 = vpop.permute.xlu1 %3480 }
 0x234   : > { %2218 = vmatmul.bf16.gmra.mxu2 %v1862_v7  ;;  %v735_v7 = vld [vmem:[#allocation2 + $0x12a] sm:$0xff] }
 0x235   : > { %v4919_v11 = vpop.f32.mrf.mxu1  ;;  %v1762_v43 = vsel %vm505_vm2, %v735_v7, %v3463_v31 }
 0x236   : > { %v1794_v40 = vsel %vm1675_vm5, %v1762_v43, %v3468_v14  ;;  %v737_v14 = vld [vmem:[#allocation2 + $0x142] sm:$0xff] }
 0x237   : > { %v2179_v39 = vpop.f32.mrf.mxu2 }
 0x238   : > { %v4923_v26 = vadd.f32 %v2179_v39, %v2091_v44  ;;  %v3471_v44 = vpop.permute.xlu2 %3470  ;;  %v4948_v39 = vpop.f32.mrf.mxu3 }
 0x239   : > { %v3473_v4 = vunpack.i.h.bf16 %v3471_v44  ;;  %v3472_v59 = vunpack.i.l.bf16 %v3471_v44 }
 0x23b   : > { %v1825_v5 = vsel %vm1708_vm6, %v1793_v42, %v3472_v59  ;;  %v1826_v2 = vsel %vm1708_vm6, %v1794_v40, %v3473_v4  ;;  %v2103_v42 = vadd.f32 %v4915_v48, %v4772_v16  ;;  %v3496_v16 = vpop.permute.xlu1 %3495 }
 0x23d   : > { %v4931_v9 = vpop.f32.mrf.mxu1 }
 0x23f   : > { %v2181_v51 = vpop.f32.mrf.mxu2 }
 0x240   : > { %v4935_v21 = vadd.f32 %v2181_v51, %v2093_v10  ;;  %v1868_v51 = vpack.c.bf16 %v1826_v2, %v1825_v5  ;;  %v4960_v20 = vpop.f32.mrf.mxu3 }
 0x244   : > { %2223 = vmatmul.bf16.gmra.mxu2 %v1865_v38  ;;  %v3478_v38 = vunpack.i.h.bf16 %v3476_v32 }
 0x245   : > { %v4944_v61 = vpop.f32.mrf.mxu1 }
 0x246   : > { %v1764_v0 = vsel %vm505_vm2, %v737_v14, %v3478_v38 }
 0x247   : > { %v2184_v58 = vpop.f32.mrf.mxu2 }
 0x248   : > { %v2185_v28 = vadd.f32 %v2184_v58, %v2096_v60  ;;  %v3483_v60 = vunpack.i.h.bf16 %v3481_v17  ;;  %v3482_v58 = vunpack.i.l.bf16 %v3481_v17  ;;  %v4976_v4 = vpop.f32.mrf.mxu3  ;;  %v2106_v17 = vadd.f32 %v4915_v48, %v4782_v62 }
 0x24a   : > { %v2274_v3 = vadd.f32 %v4593_v53, %v2185_v28  ;;  %v3486_v28 = vpop.permute.xlu2 %3485  ;;  %v1796_v18 = vsel %vm1675_vm5, %v1764_v0, %v3483_v60  ;;  %v738_v60 = vld [vmem:[#allocation2 + $0x152] sm:$0xff] }
 0x24b   : > { %v3488_v35 = vunpack.i.h.bf16 %v3486_v28  ;;  %v3487_v44 = vunpack.i.l.bf16 %v3486_v28  ;;  %v3014_v28 = vld [vmem:[%s5321_s5] sm:$0xff] }
 0x24c   : > { %v2350_v56 = vmax.f32 %v2274_v3, 0.0  ;;  %v3491_v3 = vpop.permute.xlu0 %3490  ;;  %2471 = vmatpush.bf16.msrb.mxu0 %v3014_v28  ;;  %3023 = vmatpush.bf16.msrb.mxu1 %v3014_v28 }
 0x24d   : > { %v4954_v33 = vpop.f32.mrf.mxu1 }
 0x24f   : > { %v2186_v47 = vpop.f32.mrf.mxu2 }
 0x250   : > { %v2187_v12 = vadd.f32 %v2186_v47, %v2098_v25  ;;  %v1828_v47 = vsel %vm1708_vm6, %v1796_v18, %v3488_v35  ;;  %v2108_v35 = vadd.f32 %v4915_v48, %v4797_v57  ;;  %v872_v57 = vld [vmem:[#allocation2 + $0x1bc] sm:$0xff] }
 0x252   : > { %v2276_v10 = vadd.f32 %v4647_v55, %v2187_v12  ;;  %v736_v55 = vld [vmem:[#allocation2 + $0x13a] sm:$0xff]  ;;  %v3501_v0 = vpop.permute.xlu2 %3500 }
 0x253   : > { %v1763_v7 = vsel %vm505_vm2, %v736_v55, %v3477_v23  ;;  %v4988_v55 = vpop.f32.mrf.mxu3  ;;  %v3502_v18 = vunpack.i.l.bf16 %v3501_v0 }
 0x254   : > { %v2351_v8 = vmax.f32 %v2276_v10, 0.0  ;;  %2228 = vmatmul.bf16.gmra.mxu2 %v1868_v51  ;;  %v1795_v43 = vsel %vm1675_vm5, %v1763_v7, %v3482_v58  ;;  %v739_v58 = vld [vmem:[#allocation2 + $0x15a] sm:$0xff] }
 0x255   : > { %v4964_v31 = vpop.f32.mrf.mxu1  ;;  %v1827_v25 = vsel %vm1708_vm6, %v1795_v43, %v3487_v44  ;;  %v3503_v43 = vunpack.i.h.bf16 %v3501_v0 }
 0x256   : > { %v4966_v37 = vpack.c.bf16 %v2351_v8, %v2350_v56  ;;  %v1871_v32 = vpack.c.bf16 %v1828_v47, %v1827_v25  ;;  %v3493_v56 = vunpack.i.h.bf16 %v3491_v3  ;;  %v3492_v8 = vunpack.i.l.bf16 %v3491_v3 }
 0x257   : > { %v2189_v53 = vpop.f32.mrf.mxu2 }
 0x258   : > { %v2190_v63 = vadd.f32 %v2189_v53, %v2101_v41  ;;  %v3497_v53 = vunpack.i.l.bf16 %v3496_v16  ;;  %v1766_v14 = vsel %vm505_vm2, %v739_v58, %v3493_v56 }
 0x25a   : > { %v2279_v5 = vadd.f32 %v4897_v49, %v2190_v63  ;;  %v3498_v49 = vunpack.i.h.bf16 %v3496_v16  ;;  %v1765_v63 = vsel %vm505_vm2, %v738_v60, %v3492_v8  ;;  %v3511_v8 = vpop.permute.xlu1 %3510 }
 0x25b   : > { %v1797_v7 = vsel %vm1675_vm5, %v1765_v63, %v3497_v53  ;;  %v3513_v60 = vunpack.i.h.bf16 %v3511_v8  ;;  %v3512_v58 = vunpack.i.l.bf16 %v3511_v8 }
 0x25c   : > { %v2352_v10 = vmax.f32 %v2279_v5, 0.0  ;;  %v1798_v62 = vsel %vm1675_vm5, %v1766_v14, %v3498_v49  ;;  %v2111_v49 = vadd.f32 %v4915_v48, %v4807_v24  ;;  %v741_v14 = vld [vmem:[#allocation2 + $0x172] sm:$0xff] }
 0x25d   : > { %v4974_v40 = vpop.f32.mrf.mxu1  ;;  %v1830_v25 = vsel %vm1708_vm6, %v1798_v62, %v3503_v43  ;;  %v3516_v62 = vpop.permute.xlu2 %3515 }
 0x25f   : > { %v2191_v59 = vpop.f32.mrf.mxu2 }
 0x260   : > { %v2192_v2 = vadd.f32 %v2191_v59, %v2103_v42  ;;  %v1829_v59 = vsel %vm1708_vm6, %v1797_v7, %v3502_v18  ;;  %v3518_v18 = vunpack.i.h.bf16 %v3516_v62 }
 0x262   : > { %v2281_v12 = vadd.f32 %v4906_v50, %v2192_v2  ;;  %v3506_v2 = vpop.permute.xlu0 %3505 }
 0x264   : > { %v2353_v51 = vmax.f32 %v2281_v12, 0.0  ;;  %2233 = vmatmul.bf16.gmra.mxu2 %v1871_v32  ;;  %v1874_v12 = vpack.c.bf16 %v1830_v25, %v1829_v59  ;;  %v5005_v32 = vpop.f32.mrf.mxu3 }
 0x265   : > { %v4984_v38 = vpop.f32.mrf.mxu1 }
 0x266   : > { %v4986_v23 = vpack.c.bf16 %v2353_v51, %v2352_v10  ;;  %v871_v10 = vld [vmem:[#allocation2 + $0x1b4] sm:$0xff] }
 0x267   : > { %v2194_v41 = vpop.f32.mrf.mxu2  ;;  %v1881_v56 = vpack.c.bf16 %v872_v57, %v871_v10 }
 0x268   : > { %v2195_v50 = vadd.f32 %v2194_v41, %v2106_v17  ;;  %v3508_v17 = vunpack.i.h.bf16 %v3506_v2  ;;  %v3507_v41 = vunpack.i.l.bf16 %v3506_v2 }
 0x269   : > { %2964 = vmatmul.msk.bf16.gmra.mxu3 %vm505_vm2, %v1881_v56 }
 0x26a   : > { %v2284_v47 = vadd.f32 %v4921_v29, %v2195_v50  ;;  %v740_v50 = vld [vmem:[#allocation2 + $0x16a] sm:$0xff]  ;;  %v1768_v0 = vsel %vm505_vm2, %v741_v14, %v3508_v17  ;;  %v3526_v17 = vpop.permute.xlu1 %3525 }
 0x26b   : > { %v1767_v7 = vsel %vm505_vm2, %v740_v50, %v3507_v41  ;;  %v1800_v24 = vsel %vm1675_vm5, %v1768_v0, %v3513_v60  ;;  %v3528_v50 = vunpack.i.h.bf16 %v3526_v17  ;;  %v3527_v14 = vunpack.i.l.bf16 %v3526_v17 }
 0x26c   : > { %v2354_v51 = vmax.f32 %v2284_v47, 0.0  ;;  %v1799_v28 = vsel %vm1675_vm5, %v1767_v7, %v3512_v58  ;;  %v5018_v43 = vpop.f32.mrf.mxu3 }
 0x26d   : > { %v4999_v44 = vpop.f32.mrf.mxu1 }
 0x26f   : > { %v2196_v42 = vpop.f32.mrf.mxu2 }
 0x270   : > { %v2197_v5 = vadd.f32 %v2196_v42, %v2108_v35  ;;  %v3517_v35 = vunpack.i.l.bf16 %v3516_v62  ;;  %v2113_v42 = vadd.f32 %v4915_v48, %v4822_v1  ;;  %v3531_v62 = vpop.permute.xlu2 %3530 }
 0x272   : > { %v2286_v3 = vadd.f32 %v4937_v52, %v2197_v5  ;;  %v1831_v47 = vsel %vm1708_vm6, %v1799_v28, %v3517_v35  ;;  %v1832_v5 = vsel %vm1708_vm6, %v1800_v24, %v3518_v18  ;;  %v3532_v28 = vunpack.i.l.bf16 %v3531_v62 }
 0x273   : > { %v1877_v57 = vpack.c.bf16 %v1832_v5, %v1831_v47  ;;  %v2118_v35 = vadd.f32 %v4915_v48, %v4847_v54 }
 0x274   : > { %v2355_v16 = vmax.f32 %v2286_v3, 0.0  ;;  %2238 = vmatmul.bf16.gmra.mxu2 %v1874_v12  ;;  %v3521_v12 = vpop.permute.xlu0 %3520 }
 0x275   : > { %v5009_v29 = vpop.f32.mrf.mxu1  ;;  %v3523_v41 = vunpack.i.h.bf16 %v3521_v12 }
 0x276   : > { %v5012_v52 = vpack.c.bf16 %v2355_v16, %v2354_v51  ;;  %v873_v51 = vld [vmem:[#allocation2 + $0x1cc] sm:$0xff]  ;;  %v874_v16 = vld [vmem:[#allocation2 + $0x1d4] sm:$0xff] }
 0x277   : > { %v2199_v53 = vpop.f32.mrf.mxu2  ;;  %v1884_v1 = vpack.c.bf16 %v874_v16, %v873_v51  ;;  %v1770_v0 = vsel %vm505_vm2, %v4678_v30, %v3523_v41  ;;  %v3541_v16 = vpop.permute.xlu1 %3540 }
 0x278   : > { %v2200_v63 = vadd.f32 %v2199_v53, %v2111_v49  ;;  %v3522_v49 = vunpack.i.l.bf16 %v3521_v12  ;;  %v2116_v53 = vadd.f32 %v4915_v48, %v4832_v19  ;;  %v3533_v19 = vunpack.i.h.bf16 %v3531_v62 }
 0x279   : > { %2965 = vmatmul.msk.bf16.gmra.mxu3 %vm505_vm2, %v1884_v1  ;;  %v1802_v18 = vsel %vm1675_vm5, %v1770_v0, %v3528_v50  ;;  %v3543_v41 = vunpack.i.h.bf16 %v3541_v16  ;;  %v3546_v50 = vpop.permute.xlu2 %3545  ;;  %v2123_v62 = vadd.f32 %v4915_v48, %v4872_v45  ;;  %v2126_v45 = vadd.f32 %v4915_v48, %v4882_v13 }
 0x27a   : > { %v2289_v2 = vadd.f32 %v4948_v39, %v2200_v63  ;;  %v1769_v7 = vsel %vm505_vm2, %v4674_v27, %v3522_v49  ;;  %v1834_v30 = vsel %vm1708_vm6, %v1802_v18, %v3533_v19  ;;  %v3542_v49 = vunpack.i.l.bf16 %v3541_v16 }
 0x27b   : > { %v1801_v24 = vsel %vm1675_vm5, %v1769_v7, %v3527_v14  ;;  %v3547_v0 = vunpack.i.l.bf16 %v3546_v50 }
 0x27c   : > { %v2356_v56 = vmax.f32 %v2289_v2, 0.0  ;;  %v1833_v47 = vsel %vm1708_vm6, %v1801_v24, %v3532_v28 }
 0x27d   : > { %v5022_v59 = vpop.f32.mrf.mxu1 }
 0x27f   : > { %v2201_v25 = vpop.f32.mrf.mxu2 }
 0x280   : > { %v2202_v3 = vadd.f32 %v2201_v25, %v2113_v42 }
 0x282   : > { %v2291_v10 = vadd.f32 %v4960_v20, %v2202_v3  ;;  %v5035_v20 = vpop.f32.mrf.mxu3  ;;  %v3536_v3 = vpop.permute.xlu0 %3535 }
 0x283   : > { %v3538_v54 = vunpack.i.h.bf16 %v3536_v3 }
 0x284   : > { %v2357_v8 = vmax.f32 %v2291_v10, 0.0  ;;  %2243 = vmatmul.bf16.gmra.mxu2 %v1877_v57  ;;  %v1880_v10 = vpack.c.bf16 %v1834_v30, %v1833_v47 }
 0x285   : > { %v5030_v60 = vpop.f32.mrf.mxu1 }
 0x286   : > { %v5033_v39 = vpack.c.bf16 %v2357_v8, %v2356_v56  ;;  %v3537_v56 = vunpack.i.l.bf16 %v3536_v3  ;;  %v2121_v8 = vadd.f32 %v4915_v48, %v4857_v6 }
 0x287   : > { %v2204_v58 = vpop.f32.mrf.mxu2 }
 0x288   : > { %v2205_v63 = vadd.f32 %v2204_v58, %v2116_v53  ;;  %v1771_v58 = vsel %vm505_vm2, %v4705_v15, %v3537_v56 }
 0x289   : > { %v1803_v6 = vsel %vm1675_vm5, %v1771_v58, %v3542_v49 }
 0x28a   : > { %v2294_v5 = vadd.f32 %v4976_v4, %v2205_v63  ;;  %v2305_v2 = vpop.f32.mrf.mxu3  ;;  %v3548_v63 = vunpack.i.h.bf16 %v3546_v50  ;;  %v1835_v24 = vsel %vm1708_vm6, %v1803_v6, %v3547_v0 }
 0x28c   : > { %v2358_v57 = vmax.f32 %v2294_v5, 0.0 }
 0x28d   : > { %v5045_v42 = vpop.f32.mrf.mxu1 }
 0x28f   : > { %v2206_v25 = vpop.f32.mrf.mxu2 }
 0x290   : > { %v2207_v27 = vadd.f32 %v2206_v25, %v2118_v35 }
 0x292   : > { %v2296_v12 = vadd.f32 %v4988_v55, %v2207_v27  ;;  %v1772_v55 = vsel %vm505_vm2, %v4707_v46, %v3538_v54  ;;  %v2308_v14 = vpop.f32.mrf.mxu3 }
 0x293   : > { %v1804_v7 = vsel %vm1675_vm5, %v1772_v55, %v3543_v41 }
 0x294   : > { %v2359_v51 = vmax.f32 %v2296_v12, 0.0  ;;  %2248 = vmatmul.bf16.gmra.mxu2 %v1880_v10  ;;  %v1836_v46 = vsel %vm1708_vm6, %v1804_v7, %v3548_v63 }
 0x295   : > { %v5053_v1 = vpop.f32.mrf.mxu1  ;;  %v1883_v25 = vpack.c.bf16 %v1836_v46, %v1835_v24 }
 0x296   : > { %v5055_v17 = vpack.c.bf16 %v2359_v51, %v2358_v57 }
 0x297   : > { %v2209_v4 = vpop.f32.mrf.mxu2 }
 0x298   : > { %v2210_v53 = vadd.f32 %v2209_v4, %v2121_v8 }
 0x29a   : > { %v2299_v15 = vadd.f32 %v5005_v32, %v2210_v53  ;;  %v2310_v5 = vpop.f32.mrf.mxu3  ;;  %v2128_v32 = vadd.f32 %v4915_v48, %v4893_v22 }
 0x29c   : > { %v2360_v47 = vmax.f32 %v2299_v15, 0.0 }
 0x29d   : > { %v5065_v19 = vpop.f32.mrf.mxu1 }
 0x29f   : > { %v2211_v28 = vpop.f32.mrf.mxu2 }
 0x2a0   : > { %v2212_v18 = vadd.f32 %v2211_v28, %v2123_v62 }
 0x2a2   : > { %v2301_v35 = vadd.f32 %v5018_v43, %v2212_v18  ;;  %v2313_v43 = vpop.f32.mrf.mxu3 }
 0x2a4   : > { %v2361_v30 = vmax.f32 %v2301_v35, 0.0  ;;  %2253 = vmatmul.bf16.gmra.mxu2 %v1883_v25 }
 0x2a5   : > { %v2268_v27 = vpop.f32.mrf.mxu1 }
 0x2a6   : > { %v5073_v3 = vpack.c.bf16 %v2361_v30, %v2360_v47  ;;  %v2269_v57 = vadd.f32 %v2268_v27, %v4923_v26  ;;  %v2131_v26 = vadd.f32 %v4915_v48, %v4899_v34  ;;  %v2136_v34 = vadd.f32 %v4915_v48, %v4919_v11 }
 0x2a7   : > { %v2214_v12 = vpop.f32.mrf.mxu2  ;;  %v2141_v11 = vadd.f32 %v4915_v48, %v4944_v61  ;;  %v2146_v61 = vadd.f32 %v4915_v48, %v4964_v31  ;;  %v2151_v31 = vadd.f32 %v4915_v48, %v4984_v38  ;;  %v2156_v38 = vadd.f32 %v4915_v48, %v5009_v29 }
 0x2a8   : > { %v2215_v10 = vadd.f32 %v2214_v12, %v2126_v45  ;;  %v2348_v4 = vmax.f32 %v2269_v57, 0.0  ;;  %v2161_v29 = vadd.f32 %v4915_v48, %v5030_v60 }
 0x2aa   : > { %v2304_v56 = vadd.f32 %v5035_v20, %v2215_v10  ;;  %v2315_v63 = vpop.f32.mrf.mxu3 }
 0x2ac   : > { %v2362_v53 = vmax.f32 %v2304_v56, 0.0 }
 0x2ad   : > { %v2270_v51 = vpop.f32.mrf.mxu1 }
 0x2ae   : > { %v2271_v54 = vadd.f32 %v2270_v51, %v4935_v21  ;;  %v2133_v21 = vadd.f32 %v4915_v48, %v4908_v36  ;;  %v2138_v36 = vadd.f32 %v4915_v48, %v4931_v9  ;;  %v2143_v9 = vadd.f32 %v4915_v48, %v4954_v33 }
 0x2af   : > { %v2216_v16 = vpop.f32.mrf.mxu2  ;;  %v2148_v33 = vadd.f32 %v4915_v48, %v4974_v40  ;;  %v2153_v40 = vadd.f32 %v4915_v48, %v4999_v44  ;;  %v2158_v44 = vadd.f32 %v4915_v48, %v5022_v59  ;;  %v2163_v59 = vadd.f32 %v4915_v48, %v5045_v42 }
 0x2b0   : > { %v2217_v8 = vadd.f32 %v2216_v16, %v2128_v32  ;;  %v2349_v13 = vmax.f32 %v2271_v54, 0.0  ;;  %v2168_v42 = vadd.f32 %v4915_v48, %v5065_v19 }
 0x2b2   : > { %v2306_v41 = vadd.f32 %v2305_v2, %v2217_v8  ;;  %v2380_v49 = vpack.c.bf16 %v2349_v13, %v2348_v4  ;;  %v2318_v7 = vpop.f32.mrf.mxu3 }
 0x2b4   : > { %v2363_v55 = vmax.f32 %v2306_v41, 0.0  ;;  %2974 = vmatmul.msk.bf16.vlgmr.msrb.gmra.mxu0 %vm505_vm2, %v2380_v49 }
 0x2b6   : > { %v5083_v22 = vpack.c.bf16 %v2363_v55, %v2362_v53 }
 0x2b7   : > { %v2219_v58 = vpop.f32.mrf.mxu2 }
 0x2b8   : > { %v2220_v50 = vadd.f32 %v2219_v58, %v2131_v26 }
 0x2ba   : > { %v2309_v0 = vadd.f32 %v2308_v14, %v2220_v50  ;;  %v2320_v18 = vpop.f32.mrf.mxu3 }
 0x2bc   : > { %v2364_v62 = vmax.f32 %v2309_v0, 0.0 }
 0x2bf   : > { %v2221_v20 = vpop.f32.mrf.mxu2 }
 0x2c0   : > { %v2222_v6 = vadd.f32 %v2221_v20, %v2133_v21 }
 0x2c2   : > { %v2311_v2 = vadd.f32 %v2310_v5, %v2222_v6  ;;  %v2323_v45 = vpop.f32.mrf.mxu3 }
 0x2c4   : > { %v2365_v28 = vmax.f32 %v2311_v2, 0.0  ;;  %2975 = vmatmul.msk.bf16.gmra.mxu0 %vm505_vm2, %v4966_v37 }
 0x2c6   : > { %v5091_v24 = vpack.c.bf16 %v2365_v28, %v2364_v62 }
 0x2c7   : > { %v2224_v46 = vpop.f32.mrf.mxu2 }
 0x2c8   : > { %v2225_v15 = vadd.f32 %v2224_v46, %v2136_v34 }
 0x2ca   : > { %v2314_v35 = vadd.f32 %v2313_v43, %v2225_v15  ;;  %v2325_v51 = vpop.f32.mrf.mxu3 }
 0x2cc   : > { %v2366_v30 = vmax.f32 %v2314_v35, 0.0 }
 0x2cf   : > { %v2226_v14 = vpop.f32.mrf.mxu2 }
 0x2d0   : > { %v2227_v25 = vadd.f32 %v2226_v14, %v2138_v36 }
 0x2d2   : > { %v2316_v47 = vadd.f32 %v2315_v63, %v2227_v25  ;;  %v2328_v4 = vpop.f32.mrf.mxu3 }
 0x2d4   : > { %v2367_v5 = vmax.f32 %v2316_v47, 0.0  ;;  %2976 = vmatmul.msk.bf16.gmra.mxu0 %vm505_vm2, %v4986_v23 }
 0x2d6   : > { %v5099_v37 = vpack.c.bf16 %v2367_v5, %v2366_v30 }
 0x2d7   : > { %v2229_v27 = vpop.f32.mrf.mxu2 }
 0x2d8   : > { %v2230_v12 = vadd.f32 %v2229_v27, %v2141_v11 }
 0x2da   : > { %v2319_v57 = vadd.f32 %v2318_v7, %v2230_v12  ;;  %v2330_v58 = vpop.f32.mrf.mxu3 }
 0x2dc   : > { %v2368_v16 = vmax.f32 %v2319_v57, 0.0 }
 0x2df   : > { %v2231_v10 = vpop.f32.mrf.mxu2 }
 0x2e0   : > { %v2232_v32 = vadd.f32 %v2231_v10, %v2143_v9 }
 0x2e2   : > { %v2321_v43 = vadd.f32 %v2320_v18, %v2232_v32  ;;  %v2333_v21 = vpop.f32.mrf.mxu3 }
 0x2e4   : > { %v2369_v54 = vmax.f32 %v2321_v43, 0.0  ;;  %2977 = vmatmul.msk.bf16.gmra.mxu0 %vm505_vm2, %v5012_v52 }
 0x2e6   : > { %v5107_v23 = vpack.c.bf16 %v2369_v54, %v2368_v16 }
 0x2e7   : > { %v2234_v56 = vpop.f32.mrf.mxu2 }
 0x2e8   : > { %v2235_v8 = vadd.f32 %v2234_v56, %v2146_v61  ;;  %v5146_v61 = vld [vmem:[%s5322_s6] ss:$0 sm:$0xff] }
 0x2ea   : > { %v2324_v41 = vadd.f32 %v2323_v45, %v2235_v8  ;;  %v2335_v46 = vpop.f32.mrf.mxu3 }
 0x2ec   : > { %v2370_v55 = vmax.f32 %v2324_v41, 0.0 }
 0x2ef   : > { %v2236_v13 = vpop.f32.mrf.mxu2 }
 0x2f0   : > { %v2237_v49 = vadd.f32 %v2236_v13, %v2148_v33  ;;  %v2586_v33 = vpop.permute.xlu0 %2585 }
 0x2f2   : > { %v2326_v53 = vadd.f32 %v2325_v51, %v2237_v49  ;;  %v2338_v14 = vpop.f32.mrf.mxu3  ;;  %v2166_v51 = vadd.f32 %v4915_v48, %v5053_v1 }
 0x2f4   : > { %v2371_v26 = vmax.f32 %v2326_v53, 0.0  ;;  %2978 = vmatmul.msk.bf16.gmra.mxu0 %vm505_vm2, %v5033_v39 }
 0x2f6   : > { %v5115_v52 = vpack.c.bf16 %v2371_v26, %v2370_v55  ;;  %v2588_v26 = vpop.permute.xlu1 %2587 }
 0x2f7   : > { %v2239_v50 = vpop.f32.mrf.mxu2 }
 0x2f8   : > { %v2240_v63 = vadd.f32 %v2239_v50, %v2151_v31 }
 0x2fa   : > { %v2329_v0 = vadd.f32 %v2328_v4, %v2240_v63  ;;  %v2340_v45 = vpop.f32.mrf.mxu3  ;;  %v2590_v63 = vpop.permute.xlu2 %2589 }
 0x2fc   : > { %v2372_v7 = vmax.f32 %v2329_v0, 0.0 }
 0x2ff   : > { %v2241_v20 = vpop.f32.mrf.mxu2 }
 0x300   : > { %v2242_v6 = vadd.f32 %v2241_v20, %v2153_v40 }
 0x302   : > { %v2331_v2 = vadd.f32 %v2330_v58, %v2242_v6  ;;  %v2343_v60 = vpop.f32.mrf.mxu3  ;;  %v2592_v6 = vpop.permute.xlu0 %2591 }
 0x304   : > { %v2373_v62 = vmax.f32 %v2331_v2, 0.0  ;;  %2979 = vmatmul.msk.bf16.gmra.mxu0 %vm505_vm2, %v5055_v17 }
 0x306   : > { %v5123_v39 = vpack.c.bf16 %v2373_v62, %v2372_v7 }
 0x307   : > { %v2244_v28 = vpop.f32.mrf.mxu2 }
 0x308   : > { %v2245_v34 = vadd.f32 %v2244_v28, %v2156_v38  ;;  %v2594_v28 = vpop.permute.xlu1 %2593 }
 0x30a   : > { %v2334_v18 = vadd.f32 %v2333_v21, %v2245_v34  ;;  %v2345_v54 = vpop.f32.mrf.mxu3 }
 0x30c   : > { %v2374_v25 = vmax.f32 %v2334_v18, 0.0 }
 0x30f   : > { %v2246_v15 = vpop.f32.mrf.mxu2 }
 0x310   : > { %v2247_v36 = vadd.f32 %v2246_v15, %v2158_v44  ;;  %v2596_v15 = vpop.permute.xlu2 %2595 }
 0x312   : > { %v2336_v35 = vadd.f32 %v2335_v46, %v2247_v36 }
 0x314   : > { %v2375_v47 = vmax.f32 %v2336_v35, 0.0  ;;  %2980 = vmatmul.msk.bf16.gmra.mxu0 %vm505_vm2, %v5073_v3 }
 0x316   : > { %v5131_v17 = vpack.c.bf16 %v2375_v47, %v2374_v25  ;;  %v2598_v25 = vpop.permute.xlu0 %2597 }
 0x317   : > { %v2249_v30 = vpop.f32.mrf.mxu2 }
 0x318   : > { %v2250_v5 = vadd.f32 %v2249_v30, %v2161_v29 }
 0x31a   : > { %v2339_v11 = vadd.f32 %v2338_v14, %v2250_v5  ;;  %v2600_v5 = vpop.permute.xlu1 %2599 }
 0x31c   : > { %v2376_v10 = vmax.f32 %v2339_v11, 0.0 }
 0x31f   : > { %v2251_v27 = vpop.f32.mrf.mxu2 }
 0x320   : > { %v2252_v12 = vadd.f32 %v2251_v27, %v2163_v59  ;;  %v2604_v59 = vpop.permute.xlu0 %2603 }
 0x322   : > { %v2341_v9 = vadd.f32 %v2340_v45, %v2252_v12 }
 0x324   : > { %v2377_v57 = vmax.f32 %v2341_v9, 0.0  ;;  %2981 = vmatmul.msk.bf16.gmra.mxu0 %vm505_vm2, %v5083_v22  ;;  %v2602_v9 = vpop.permute.xlu2 %2601 }
 0x326   : > { %v5137_v3 = vpack.c.bf16 %v2377_v57, %v2376_v10  ;;  %v2606_v57 = vpop.permute.xlu1 %2605 }
 0x327   : > { %v2254_v32 = vpop.f32.mrf.mxu2 }
 0x328   : > { %v2255_v43 = vadd.f32 %v2254_v32, %v2166_v51  ;;  %v2610_v32 = vpop.permute.xlu0 %2609 }
 0x32a   : > { %v2344_v56 = vadd.f32 %v2343_v60, %v2255_v43 }
 0x32c   : > { %v2378_v13 = vmax.f32 %v2344_v56, 0.0 }
 0x32f   : > { %v2256_v16 = vpop.f32.mrf.mxu2 }
 0x330   : > { %v2257_v22 = vadd.f32 %v2256_v16, %v2168_v42 }
 0x331   : > { %v2473_v4 = vpop.f32.mrf.mxu0 }
 0x332   : > { %v2346_v8 = vadd.f32 %v2345_v54, %v2257_v22  ;;  %v2474_v1 = vadd.f32 %v5146_v61, %v2473_v4  ;;  %v2612_v54 = vpop.permute.xlu1 %2611  ;;  %v2616_v22 = vpop.permute.xlu0 %2615 }
 0x334   : > { %v2379_v41 = vmax.f32 %v2346_v8, 0.0  ;;  %v2681_v48 = vadd.f32 %v2586_v33, %v2474_v1  ;;  %2982 = vmatmul.msk.bf16.gmra.mxu0 %vm505_vm2, %v5091_v24  ;;  %v2608_v33 = vpop.permute.xlu2 %2607 }
 0x336   : > { %v2395_v19 = vpack.c.bf16 %v2379_v41, %v2378_v13  ;;  %v2713_v49 = vmax.f32 %v2681_v48, 0.0 }
 0x338   : > { %2989 = vmatmul.msk.bf16.vlgmr.msrb.gmra.mxu1 %vm505_vm2, %v2395_v19  ;;  %2745 = vst.msk [vmem:[%s5155_s23] sm:$0xff] %vm505_vm2, %v2713_v49 }
 0x339   : > { %v2475_v53 = vpop.f32.mrf.mxu0 }
 0x33a   : > { %v2476_v55 = vadd.f32 %v5146_v61, %v2475_v53  ;;  %v2618_v13 = vpop.permute.xlu1 %2617  ;;  %v2622_v48 = vpop.permute.xlu0 %2621 }
 0x33c   : > { %v2682_v58 = vadd.f32 %v2588_v26, %v2476_v55 }
 0x33e   : > { %v2714_v31 = vmax.f32 %v2682_v58, 0.0 }
 0x340   : > { %2746 = vst.msk [vmem:[%s5155_s23 + $0x8] sm:$0xff] %vm505_vm2, %v2714_v31 }
 0x341   : > { %v2478_v24 = vpop.f32.mrf.mxu0 }
 0x342   : > { %v2479_v50 = vadd.f32 %v5146_v61, %v2478_v24  ;;  %v5205_v58 = vpop.permute.xlu0 %2627 }
 0x344   : > { %v2683_v40 = vadd.f32 %v2590_v63, %v2479_v50  ;;  %2983 = vmatmul.msk.bf16.gmra.mxu0 %vm505_vm2, %v5099_v37 }
 0x346   : > { %v2715_v21 = vmax.f32 %v2683_v40, 0.0 }
 0x348   : > { %2747 = vst.msk [vmem:[%s5155_s23 + $0x10] sm:$0xff] %vm505_vm2, %v2715_v21 }
 0x349   : > { %v2480_v20 = vpop.f32.mrf.mxu0 }
 0x34a   : > { %v2481_v0 = vadd.f32 %v5146_v61, %v2480_v20  ;;  %v5214_v20 = vpop.permute.xlu0 %2633 }
 0x34c   : > { %v2684_v2 = vadd.f32 %v2592_v6, %v2481_v0  ;;  %v2614_v0 = vpop.permute.xlu2 %2613 }
 0x34e   : > { %v2716_v7 = vmax.f32 %v2684_v2, 0.0 }
 0x350   : > { %2748 = vst.msk [vmem:[%s5155_s23 + $0x18] sm:$0xff] %vm505_vm2, %v2716_v7 }
 0x351   : > { %v2483_v62 = vpop.f32.mrf.mxu0 }
 0x352   : > { %v2484_v38 = vadd.f32 %v5146_v61, %v2483_v62 }
 0x354   : > { %v2685_v34 = vadd.f32 %v2594_v28, %v2484_v38  ;;  %2984 = vmatmul.msk.bf16.gmra.mxu0 %vm505_vm2, %v5107_v23  ;;  %v5222_v28 = vpop.permute.xlu0 %2639 }
 0x356   : > { %v2717_v37 = vmax.f32 %v2685_v34, 0.0 }
 0x358   : > { %2749 = vst.msk [vmem:[%s5155_s23 + $0x20] sm:$0xff] %vm505_vm2, %v2717_v37 }
 0x359   : > { %v2485_v46 = vpop.f32.mrf.mxu0 }
 0x35a   : > { %v2486_v44 = vadd.f32 %v5146_v61, %v2485_v46 }
 0x35c   : > { %v2686_v18 = vadd.f32 %v2596_v15, %v2486_v44 }
 0x35e   : > { %v2718_v36 = vmax.f32 %v2686_v18, 0.0 }
 0x360   : > { %2750 = vst.msk [vmem:[%s5155_s23 + $0x28] sm:$0xff] %vm505_vm2, %v2718_v36 }
 0x361   : > { %v2488_v14 = vpop.f32.mrf.mxu0 }
 0x362   : > { %v2489_v35 = vadd.f32 %v5146_v61, %v2488_v14 }
 0x364   : > { %v2687_v47 = vadd.f32 %v2598_v25, %v2489_v35  ;;  %2985 = vmatmul.msk.bf16.gmra.mxu0 %vm505_vm2, %v5115_v52  ;;  %v2646_v35 = vpop.permute.xlu0 %2645 }
 0x366   : > { %v2719_v23 = vmax.f32 %v2687_v47, 0.0 }
 0x368   : > { %2751 = vst.msk [vmem:[%s5155_s23 + $0x30] sm:$0xff] %vm505_vm2, %v2719_v23 }
 0x369   : > { %v2490_v29 = vpop.f32.mrf.mxu0 }
 0x36a   : > { %v2491_v30 = vadd.f32 %v5146_v61, %v2490_v29 }
 0x36c   : > { %v2688_v11 = vadd.f32 %v2600_v5, %v2491_v30  ;;  %v2620_v5 = vpop.permute.xlu2 %2619 }
 0x36e   : > { %v2720_v45 = vmax.f32 %v2688_v11, 0.0 }
 0x370   : > { %2752 = vst.msk [vmem:[%s5155_s23 + $0x38] sm:$0xff] %vm505_vm2, %v2720_v45 }
 0x371   : > { %v2493_v27 = vpop.f32.mrf.mxu0 }
 0x372   : > { %v2494_v12 = vadd.f32 %v5146_v61, %v2493_v27 }
 0x374   : > { %v2689_v10 = vadd.f32 %v2602_v9, %v2494_v12  ;;  %2986 = vmatmul.msk.bf16.gmra.mxu0 %vm505_vm2, %v5123_v39 }
 0x376   : > { %v2721_v52 = vmax.f32 %v2689_v10, 0.0 }
 0x378   : > { %2753 = vst.msk [vmem:[%s5155_s23 + $0x40] sm:$0xff] %vm505_vm2, %v2721_v52 }
 0x379   : > { %v2495_v60 = vpop.f32.mrf.mxu0 }
 0x37a   : > { %v2496_v51 = vadd.f32 %v5146_v61, %v2495_v60 }
 0x37c   : > { %v2690_v43 = vadd.f32 %v2604_v59, %v2496_v51 }
 0x37e   : > { %v2722_v42 = vmax.f32 %v2690_v43, 0.0 }
 0x380   : > { %2754 = vst.msk [vmem:[%s5155_s23 + $0x48] sm:$0xff] %vm505_vm2, %v2722_v42 }
 0x381   : > { %v2498_v16 = vpop.f32.mrf.mxu0 }
 0x382   : > { %v2499_v56 = vadd.f32 %v5146_v61, %v2498_v16 }
 0x384   : > { %v2691_v39 = vadd.f32 %v2606_v57, %v2499_v56  ;;  %2987 = vmatmul.msk.bf16.gmra.mxu0 %vm505_vm2, %v5131_v17  ;;  %v2624_v17 = vpop.permute.xlu1 %2623 }
 0x386   : > { %v2723_v8 = vmax.f32 %v2691_v39, 0.0 }
 0x388   : > { %2755 = vst.msk [vmem:[%s5155_s23 + $0x50] sm:$0xff] %vm505_vm2, %v2723_v8 }
 0x389   : > { %v2500_v4 = vpop.f32.mrf.mxu0 }
 0x38a   : > { %v2501_v1 = vadd.f32 %v5146_v61, %v2500_v4 }
 0x38c   : > { %v2692_v41 = vadd.f32 %v2608_v33, %v2501_v1  ;;  %v5210_v40 = vpop.permute.xlu1 %2629 }
 0x38e   : > { %v2724_v19 = vmax.f32 %v2692_v41, 0.0 }
 0x390   : > { %2756 = vst.msk [vmem:[%s5155_s23 + $0x58] sm:$0xff] %vm505_vm2, %v2724_v19 }
 0x391   : > { %v2503_v49 = vpop.f32.mrf.mxu0 }
 0x392   : > { %v2504_v53 = vadd.f32 %v5146_v61, %v2503_v49 }
 0x394   : > { %v2693_v55 = vadd.f32 %v2610_v32, %v2504_v53  ;;  %2988 = vmatmul.msk.bf16.gmra.mxu0 %vm505_vm2, %v5137_v3  ;;  %v5219_v62 = vpop.permute.xlu1 %2635 }
 0x396   : > { %v2725_v26 = vmax.f32 %v2693_v55, 0.0 }
 0x398   : > { %2757 = vst.msk [vmem:[%s5155_s23 + $0x60] sm:$0xff] %vm505_vm2, %v2725_v26 }
 0x399   : > { %v2505_v31 = vpop.f32.mrf.mxu0 }
 0x39a   : > { %v2506_v24 = vadd.f32 %v5146_v61, %v2505_v31 }
 0x39c   : > { %v2694_v50 = vadd.f32 %v2612_v54, %v2506_v24  ;;  %v5227_v15 = vpop.permute.xlu1 %2641 }
 0x39e   : > { %v2726_v63 = vmax.f32 %v2694_v50, 0.0 }
 0x3a0   : > { %2758 = vst.msk [vmem:[%s5155_s23 + $0x68] sm:$0xff] %vm505_vm2, %v2726_v63 }
 0x3a1   : > { %v2508_v21 = vpop.f32.mrf.mxu0 }
 0x3a2   : > { %v2509_v3 = vadd.f32 %v5146_v61, %v2508_v21 }
 0x3a4   : > { %v2695_v6 = vadd.f32 %v2614_v0, %v2509_v3  ;;  %v2648_v27 = vpop.permute.xlu1 %2647 }
 0x3a6   : > { %v2727_v2 = vmax.f32 %v2695_v6, 0.0 }
 0x3a8   : > { %2759 = vst.msk [vmem:[%s5155_s23 + $0x70] sm:$0xff] %vm505_vm2, %v2727_v2 }
 0x3a9   : > { %v2510_v7 = vpop.f32.mrf.mxu0 }
 0x3aa   : > { %v2511_v38 = vadd.f32 %v5146_v61, %v2510_v7 }
 0x3ac   : > { %v2696_v34 = vadd.f32 %v2616_v22, %v2511_v38  ;;  %v2626_v22 = vpop.permute.xlu2 %2625 }
 0x3ae   : > { %v2728_v37 = vmax.f32 %v2696_v34, 0.0 }
 0x3b0   : > { %2760 = vst.msk [vmem:[%s5155_s23 + $0x78] sm:$0xff] %vm505_vm2, %v2728_v37 }
 0x3b1   : > { %v2513_v46 = vpop.f32.mrf.mxu0 }
 0x3b2   : > { %v2514_v44 = vadd.f32 %v5146_v61, %v2513_v46 }
 0x3b4   : > { %v2697_v18 = vadd.f32 %v2618_v13, %v2514_v44 }
 0x3b5   : > { %v2548_v36 = vpop.f32.mrf.mxu1 }
 0x3b6   : > { %v2549_v14 = vadd.f32 %v5146_v61, %v2548_v36  ;;  %v2729_v25 = vmax.f32 %v2697_v18, 0.0 }
 0x3b8   : > { %v2711_v47 = vadd.f32 %v2646_v35, %v2549_v14  ;;  %2761 = vst.msk [vmem:[%s5155_s23 + $0x80] sm:$0xff] %vm505_vm2, %v2729_v25 }
 0x3b9   : > { %v2515_v29 = vpop.f32.mrf.mxu0 }
 0x3ba   : > { %v2743_v23 = vmax.f32 %v2711_v47, 0.0  ;;  %v2516_v30 = vadd.f32 %v5146_v61, %v2515_v29 }
 0x3bc   : > { %2775 = vst.msk [vmem:[%s5155_s23 + $0xf0] sm:$0xff] %vm505_vm2, %v2743_v23  ;;  %v2698_v11 = vadd.f32 %v2620_v5, %v2516_v30 }
 0x3bd   : > { %v2550_v45 = vpop.f32.mrf.mxu1 }
 0x3be   : > { %v2551_v59 = vadd.f32 %v5146_v61, %v2550_v45  ;;  %v2730_v12 = vmax.f32 %v2698_v11, 0.0 }
 0x3c0   : > { %v2712_v9 = vadd.f32 %v2648_v27, %v2551_v59  ;;  %2762 = vst.msk [vmem:[%s5155_s23 + $0x88] sm:$0xff] %vm505_vm2, %v2730_v12 }
 0x3c1   : > { %v2518_v52 = vpop.f32.mrf.mxu0 }
 0x3c2   : > { %v2744_v10 = vmax.f32 %v2712_v9, 0.0  ;;  %v2519_v57 = vadd.f32 %v5146_v61, %v2518_v52 }
 0x3c4   : > { %2776 = vst.msk [vmem:[%s5155_s23 + $0xf8] sm:$0xff] %vm505_vm2, %v2744_v10  ;;  %v2699_v60 = vadd.f32 %v2622_v48, %v2519_v57 }
 0x3c6   : > { %v2731_v32 = vmax.f32 %v2699_v60, 0.0 }
 0x3c8   : > { %2763 = vst.msk [vmem:[%s5155_s23 + $0x90] sm:$0xff] %vm505_vm2, %v2731_v32 }
 0x3c9   : > { %v2520_v51 = vpop.f32.mrf.mxu0 }
 0x3ca   : > { %v2521_v43 = vadd.f32 %v5146_v61, %v2520_v51 }
 0x3cc   : > { %v2700_v42 = vadd.f32 %v2624_v17, %v2521_v43  ;;  %v2632_v17 = vpop.permute.xlu2 %2631 }
 0x3ce   : > { %v2732_v16 = vmax.f32 %v2700_v42, 0.0 }
 0x3d0   : > { %2764 = vst.msk [vmem:[%s5155_s23 + $0x98] sm:$0xff] %vm505_vm2, %v2732_v16 }
 0x3d1   : > { %v2523_v54 = vpop.f32.mrf.mxu0 }
 0x3d2   : > { %v2524_v56 = vadd.f32 %v5146_v61, %v2523_v54 }
 0x3d4   : > { %v2701_v39 = vadd.f32 %v2626_v22, %v2524_v56  ;;  %v2638_v7 = vpop.permute.xlu2 %2637 }
 0x3d6   : > { %v2733_v8 = vmax.f32 %v2701_v39, 0.0 }
 0x3d8   : > { %2765 = vst.msk [vmem:[%s5155_s23 + $0xa0] sm:$0xff] %vm505_vm2, %v2733_v8 }
 0x3d9   : > { %v2525_v4 = vpop.f32.mrf.mxu0 }
 0x3da   : > { %v2526_v1 = vadd.f32 %v5146_v61, %v2525_v4 }
 0x3dc   : > { %v2702_v33 = vadd.f32 %v5205_v58, %v2526_v1  ;;  %v2644_v25 = vpop.permute.xlu2 %2643 }
 0x3de   : > { %v2734_v13 = vmax.f32 %v2702_v33, 0.0 }
 0x3e0   : > { %2766 = vst.msk [vmem:[%s5155_s23 + $0xa8] sm:$0xff] %vm505_vm2, %v2734_v13 }
 0x3e1   : > { %v2528_v41 = vpop.f32.mrf.mxu0 }
 0x3e2   : > { %v2529_v48 = vadd.f32 %v5146_v61, %v2528_v41 }
 0x3e4   : > { %v2703_v19 = vadd.f32 %v5210_v40, %v2529_v48 }
 0x3e6   : > { %v2735_v49 = vmax.f32 %v2703_v19, 0.0 }
 0x3e8   : > { %2767 = vst.msk [vmem:[%s5155_s23 + $0xb0] sm:$0xff] %vm505_vm2, %v2735_v49 }
 0x3e9   : > { %v2530_v53 = vpop.f32.mrf.mxu0 }
 0x3ea   : > { %v2531_v55 = vadd.f32 %v5146_v61, %v2530_v53 }
 0x3ec   : > { %v2704_v26 = vadd.f32 %v2632_v17, %v2531_v55 }
 0x3ee   : > { %v2736_v31 = vmax.f32 %v2704_v26, 0.0 }
 0x3f0   : > { %2768 = vst.msk [vmem:[%s5155_s23 + $0xb8] sm:$0xff] %vm505_vm2, %v2736_v31 }
 0x3f1   : > { %v2533_v58 = vpop.f32.mrf.mxu0 }
 0x3f2   : > { %v2534_v24 = vadd.f32 %v5146_v61, %v2533_v58 }
 0x3f4   : > { %v2705_v50 = vadd.f32 %v5214_v20, %v2534_v24 }
 0x3f6   : > { %v2737_v63 = vmax.f32 %v2705_v50, 0.0 }
 0x3f8   : > { %2769 = vst.msk [vmem:[%s5155_s23 + $0xc0] sm:$0xff] %vm505_vm2, %v2737_v63 }
 0x3f9   : > { %v2535_v40 = vpop.f32.mrf.mxu0 }
 0x3fa   : > { %v2536_v21 = vadd.f32 %v5146_v61, %v2535_v40 }
 0x3fc   : > { %v2706_v3 = vadd.f32 %v5219_v62, %v2536_v21 }
 0x3fe   : > { %v2738_v0 = vmax.f32 %v2706_v3, 0.0 }
 0x400   : > { %2770 = vst.msk [vmem:[%s5155_s23 + $0xc8] sm:$0xff] %vm505_vm2, %v2738_v0 }
 0x401   : > { %v2538_v6 = vpop.f32.mrf.mxu0 }
 0x402   : > { %v2539_v2 = vadd.f32 %v5146_v61, %v2538_v6 }
 0x404   : > { %v2707_v38 = vadd.f32 %v2638_v7, %v2539_v2 }
 0x406   : > { %v2739_v20 = vmax.f32 %v2707_v38, 0.0 }
 0x408   : > { %2771 = vst.msk [vmem:[%s5155_s23 + $0xd0] sm:$0xff] %vm505_vm2, %v2739_v20 }
 0x409   : > { %v2540_v34 = vpop.f32.mrf.mxu0 }
 0x40a   : > { %v2541_v37 = vadd.f32 %v5146_v61, %v2540_v34 }
 0x40c   : > { %v2708_v46 = vadd.f32 %v5222_v28, %v2541_v37 }
 0x40e   : > { %v2740_v62 = vmax.f32 %v2708_v46, 0.0 }
 0x410   : > { %2772 = vst.msk [vmem:[%s5155_s23 + $0xd8] sm:$0xff] %vm505_vm2, %v2740_v62 }
 0x411   : > { %v2543_v44 = vpop.f32.mrf.mxu0 }
 0x412   : > { %v2544_v18 = vadd.f32 %v5146_v61, %v2543_v44 }
 0x414   : > { %v2709_v36 = vadd.f32 %v5227_v15, %v2544_v18 }
 0x416   : > { %v2741_v14 = vmax.f32 %v2709_v36, 0.0 }
 0x418   : > { %2773 = vst.msk [vmem:[%s5155_s23 + $0xe0] sm:$0xff] %vm505_vm2, %v2741_v14 }
 0x419   : > { %v2545_v28 = vpop.f32.mrf.mxu0 }
 0x41a   : > { %v2546_v35 = vadd.f32 %v5146_v61, %v2545_v28 }
 0x41c   : > { %v2710_v47 = vadd.f32 %v2644_v25, %v2546_v35 }
 0x41e   : > { %v2742_v23 = vmax.f32 %v2710_v47, 0.0 }
 0x420   : > { %2774 = vst.msk [vmem:[%s5155_s23 + $0xe8] sm:$0xff] %vm505_vm2, %v2742_v23 }
 0x421   : > { %3579 = shalt.err (!%p3576_p3)
}
 0x422   : > { %s3620_s19 = smov 128   ;;  %s3621_s23 = smov 8  }
 0x423   : > { %3024 = dma.vmem_to_hbm [thread:$0]  (%p3700_p5), %s2791_s21, 4096, %s2793_s29, %s2778_s28, %s3620_s19, %s3620_s19, %s3621_s23  }
 0x424 PF: > { %p3030_p4 = scmp.ge.s32.totalorder %s3614_s27, 2  ;;  %s2807_s9 = sand.u32 1, %s3602_s24  }
 0x425   : > { %s2808_s13 = scalar_lea.sflag [#allocation4], %s2807_s9 }
 0x426   : > { %p3027_p7 = pnand %p3030_p4, %p3704_p6 }
 0x428   : > { %p3028_p8 = pneg %p3027_p7 }
 0x42a   : > { %3597 = dma.done.wait (%p3028_p8), %s2808_s13, 4096  }
 0x42b   : > { %3599 = vsyncadd (%p3028_p8), %s2808_s13, 4294963200  ;;  %p17_p9 = scmp.ge.s32.totalorder %s3687_s30, 4   ;;  %s5500_s24 = smov %s3606_s25 }
 0x42c   : > { %s5501_s25 = smov %s3610_s26  ;;  %s5502_s26 = smov %s3698_s10 }
 0x42d   : > { %s5503_s27 = smov %s3687_s30  ;;  %19 = sbr.rel (!%p17_p9) target bundleno = 3 (0x3), region = 86 }
 0x432   :  { %2814 = vsyncpa [#allocation4], 1 }
 0x433   :  { %2816 = vsyncpa [#allocation4 + $0x1], 1 }

</bundles_post_ra>
